<compile_context>
chip_gen: v5e
topology: v5e:2x2
jax: 0.10.0
libtpu: 0.0.40
codegen_flags: <defaults>
</compile_context>

<pallas_src>
import jax
import jax.numpy as jnp
from jax.experimental import pallas as pl
from jax.experimental.pallas import tpu as pltpu


def _critic_kernel(s_ref, a_ref, w1s_ref, w1a_ref, b1_ref,
                   w2_ref, b2_ref, w3_ref, b3_ref, q_ref):
    """One batch tile, feature-major layout (activations are [features, batch]).

    layer1: h1 = relu(W1_s @ s + W1_a @ a + b1)   -> (H1, tb)
    layer2: h2 = relu(W2 @ h1 + b2)               -> (H2, tb)
    layer3: q  = sum_k w3[k] * h2[k, :] + b3      -> (1, tb)  (VPU/XLU, no N=1 MXU pass)
    """
    h1 = (jnp.dot(w1s_ref[...], s_ref[...], preferred_element_type=jnp.float32)
          + jnp.dot(w1a_ref[...], a_ref[...], preferred_element_type=jnp.float32)
          + b1_ref[...])
    h1 = jnp.maximum(h1, 0.0)

    h2 = jnp.dot(w2_ref[...], h1, preferred_element_type=jnp.float32) + b2_ref[...]
    h2 = jnp.maximum(h2, 0.0)

    q = jnp.sum(w3_ref[...] * h2, axis=0, keepdims=True) + b3_ref[0]
    q_ref[...] = q.astype(q_ref.dtype)


def _round_up(x, m):
    return ((x + m - 1) // m) * m


def critic_forward(state, action, params, *, batch_tile=None):
    """Pallas forward pass reproducing Critic.forward semantics.

    params follow the PyTorch nn.Linear convention (weights are [out, in]):
      w1: (H1, Ds+Da), b1: (H1,), w2: (H2, H1), b2: (H2,), w3: (1, H2), b3: (1,)
    """
    w1, b1, w2, b2, w3, b3 = params

    # Flatten leading dims; the torch.cat is replaced by splitting W1 (no HBM concat).
    if state.ndim == 3:
        lead_shape = state.shape[:2]
        state2 = state.reshape(-1, state.shape[-1])
        action2 = action.reshape(-1, action.shape[-1])
    else:
        lead_shape = (state.shape[0],)
        state2 = state
        action2 = action

    B, Ds = state2.shape
    Da = action2.shape[1]
    H1 = w1.shape[0]
    H2 = w2.shape[0]

    # --- batch tiling (batch lives on the lane axis) ------------------------
    # Lane-dense tiles (multiple of 128); ~256 keeps the MXU N-dimension full
    # on v6e/v7x while leaving >=2 grid steps for pipelining / megacore.
    if batch_tile is None:
        tb = 256 if B > 256 else _round_up(max(B, 1), 128)
    else:
        tb = _round_up(batch_tile, 128)
    Bp = _round_up(B, tb)
    grid = (Bp // tb,)

    # Feature-major (transposed) activations, zero-padded along the batch.
    s_t = jnp.zeros((Ds, Bp), state2.dtype).at[:, :B].set(state2.T)
    a_t = jnp.zeros((Da, Bp), action2.dtype).at[:, :B].set(action2.T)

    # Split W1 along its input dim (zero-cost slice) -> no sa concat needed.
    w1s = w1[:, :Ds]
    w1a = w1[:, Ds:]

    b1c = b1.reshape(H1, 1)        # bias columns broadcast along lanes (batch)
    b2c = b2.reshape(H2, 1)
    w3c = w3.reshape(H2, 1)        # column so layer 3 is a sublane reduce
    b3s = b3.reshape(1)            # scalar bias lives in SMEM

    q_t = pl.pallas_call(
        _critic_kernel,
        out_shape=jax.ShapeDtypeStruct((1, Bp), state2.dtype),
        grid_spec=pltpu.PrefetchScalarGridSpec(
            num_scalar_prefetch=0,
            grid=grid,
            in_specs=[
                pl.BlockSpec((Ds, tb), lambda i: (0, i)),    # state   (lane-dense)
                pl.BlockSpec((Da, tb), lambda i: (0, i)),    # action  (lane-dense)
                pl.BlockSpec((H1, Ds), lambda i: (0, 0)),    # W1[:, :Ds]
                pl.BlockSpec((H1, Da), lambda i: (0, 0)),    # W1[:, Ds:]
                pl.BlockSpec((H1, 1), lambda i: (0, 0)),     # b1 column
                pl.BlockSpec((H2, H1), lambda i: (0, 0)),    # W2
                pl.BlockSpec((H2, 1), lambda i: (0, 0)),     # b2 column
                pl.BlockSpec((H2, 1), lambda i: (0, 0)),     # w3 column
                pl.BlockSpec(memory_space=pltpu.MemorySpace.SMEM),  # b3 scalar
            ],
            out_specs=pl.BlockSpec((1, tb), lambda i: (0, i)),   # q (1, tb) lane-dense
        ),
        compiler_params=pltpu.CompilerParams(
            dimension_semantics=("parallel",)),
    )(s_t, a_t, w1s, w1a, b1c, w2, b2c, w3c, b3s)

    q = q_t[0, :B]
    return q.reshape(*lead_shape, 1)


def init_critic_params(key, state_dim, action_dim, hidden_sizes=(400, 300)):
    """nn.Linear-style init U(-1/sqrt(fan_in), 1/sqrt(fan_in)); weights are [out, in]."""
    in_dim = state_dim + action_dim
    h1, h2 = hidden_sizes
    keys = jax.random.split(key, 6)

    def lin(kw, kb, fan_in, fan_out):
        bound = 1.0 / jnp.sqrt(float(fan_in))
        w = jax.random.uniform(kw, (fan_out, fan_in), jnp.float32, -bound, bound)
        b = jax.random.uniform(kb, (fan_out,), jnp.float32, -bound, bound)
        return w, b

    w1, b1 = lin(keys[0], keys[1], in_dim, h1)
    w2, b2 = lin(keys[2], keys[3], h1, h2)
    w3, b3 = lin(keys[4], keys[5], h2, 1)
    return (w1, b1, w2, b2, w3, b3)


def _reference_forward(state, action, params):
    w1, b1, w2, b2, w3, b3 = params
    sa = jnp.concatenate([state, action], axis=-1)
    q = jax.nn.relu(sa @ w1.T + b1)
    q = jax.nn.relu(q @ w2.T + b2)
    return q @ w3.T + b3


if __name__ == "__main__":
    key = jax.random.PRNGKey(0)
    k_s, k_a, k_p, k_s3, k_a3 = jax.random.split(key, 5)

    state_dim, action_dim = 12, 4
    hidden_sizes = (400, 300)          # module defaults
    params = init_critic_params(k_p, state_dim, action_dim, hidden_sizes)

    # 2-D path: batch big enough for >=2 grid steps (megacore-friendly on v7x).
    batch = 512
    state = jax.random.normal(k_s, (batch, state_dim), jnp.float32)
    action = jax.random.normal(k_a, (batch, action_dim), jnp.float32)
    q = jax.block_until_ready(critic_forward(state, action, params))
    q_ref = _reference_forward(state, action, params)
    assert q.shape == (batch, 1), q.shape
    assert jnp.allclose(q, q_ref, atol=1e-4, rtol=1e-4), "2-D mismatch vs reference"

    # 3-D path: ragged batch exercises the pad-to-128 / slice-back path.
    B, T = 2, 7
    state3 = jax.random.normal(k_s3, (B, T, state_dim), jnp.float32)
    action3 = jax.random.normal(k_a3, (B, T, action_dim), jnp.float32)
    q3 = jax.block_until_ready(critic_forward(state3, action3, params))
    q3_ref = _reference_forward(state3, action3, params)
    assert q3.shape == (B, T, 1), q3.shape
    assert jnp.allclose(q3, q3_ref, atol=1e-4, rtol=1e-4), "3-D mismatch vs reference"

    print("KERNEL_OK")
</pallas_src>

<mosaic_0001>
module attributes {stable_mosaic.version = 11 : i64} {
  func.func @_critic_kernel(%arg0: i32, %arg1: memref<12x256xf32, #tpu.memory_space<vmem>>, %arg2: memref<4x256xf32, #tpu.memory_space<vmem>>, %arg3: memref<400x12xf32, #tpu.memory_space<vmem>>, %arg4: memref<400x4xf32, #tpu.memory_space<vmem>>, %arg5: memref<400x1xf32, #tpu.memory_space<vmem>>, %arg6: memref<300x400xf32, #tpu.memory_space<vmem>>, %arg7: memref<300x1xf32, #tpu.memory_space<vmem>>, %arg8: memref<300x1xf32, #tpu.memory_space<vmem>>, %arg9: memref<1xf32, #tpu.memory_space<smem>>, %arg10: memref<1x256xf32, #tpu.memory_space<vmem>>) attributes {dimension_semantics = [#tpu.dimension_semantics<parallel>], iteration_bounds = array<i64: 2>, scalar_prefetch = 0 : i64, scratch_operands = 0 : i64, tpu.core_type = #tpu.core_type<tc>, window_params = [{transform_indices = @transform_0, window_bounds = array<i64: 12, 256>}, {transform_indices = @transform_1, window_bounds = array<i64: 4, 256>}, {pipeline_mode = #tpu.pipeline_mode<synchronous>, transform_indices = @transform_2, window_bounds = array<i64: 400, 12>}, {pipeline_mode = #tpu.pipeline_mode<synchronous>, transform_indices = @transform_3, window_bounds = array<i64: 400, 4>}, {pipeline_mode = #tpu.pipeline_mode<synchronous>, transform_indices = @transform_4, window_bounds = array<i64: 400, 1>}, {pipeline_mode = #tpu.pipeline_mode<synchronous>, transform_indices = @transform_5, window_bounds = array<i64: 300, 400>}, {pipeline_mode = #tpu.pipeline_mode<synchronous>, transform_indices = @transform_6, window_bounds = array<i64: 300, 1>}, {pipeline_mode = #tpu.pipeline_mode<synchronous>, transform_indices = @transform_7, window_bounds = array<i64: 300, 1>}, {transform_indices = @transform_8, window_bounds = array<i64: 1>}, {transform_indices = @transform_9, window_bounds = array<i64: 1, 256>}]} {
    %c0 = arith.constant 0 : index
    %c0_0 = arith.constant 0 : index
    %0 = vector.load %arg3[%c0, %c0_0] : memref<400x12xf32, #tpu.memory_space<vmem>>, vector<400x12xf32>
    %c0_1 = arith.constant 0 : index
    %c0_2 = arith.constant 0 : index
    %1 = vector.load %arg1[%c0_1, %c0_2] : memref<12x256xf32, #tpu.memory_space<vmem>>, vector<12x256xf32>
    %cst = arith.constant dense<0.000000e+00> : vector<400x256xf32>
    %2 = tpu.matmul %0, %1, %cst {dimension_numbers = #tpu.dot_dimension_numbers<[1], [0], [0], [1], [0, 0, 1, 1], [], []>} : vector<400x12xf32>, vector<12x256xf32>, vector<400x256xf32> -> vector<400x256xf32>
    %c0_3 = arith.constant 0 : index
    %c0_4 = arith.constant 0 : index
    %3 = vector.load %arg4[%c0_3, %c0_4] : memref<400x4xf32, #tpu.memory_space<vmem>>, vector<400x4xf32>
    %c0_5 = arith.constant 0 : index
    %c0_6 = arith.constant 0 : index
    %4 = vector.load %arg2[%c0_5, %c0_6] : memref<4x256xf32, #tpu.memory_space<vmem>>, vector<4x256xf32>
    %cst_7 = arith.constant dense<0.000000e+00> : vector<400x256xf32>
    %5 = tpu.matmul %3, %4, %cst_7 {dimension_numbers = #tpu.dot_dimension_numbers<[1], [0], [0], [1], [0, 0, 1, 1], [], []>} : vector<400x4xf32>, vector<4x256xf32>, vector<400x256xf32> -> vector<400x256xf32>
    %6 = arith.addf %2, %5 : vector<400x256xf32>
    %c0_8 = arith.constant 0 : index
    %c0_9 = arith.constant 0 : index
    %7 = vector.load %arg5[%c0_8, %c0_9] : memref<400x1xf32, #tpu.memory_space<vmem>>, vector<400x1xf32>
    %8 = vector.broadcast %7 : vector<400x1xf32> to vector<400x256xf32>
    %9 = arith.addf %6, %8 : vector<400x256xf32>
    %cst_10 = arith.constant 0.000000e+00 : f32
    %10 = vector.broadcast %cst_10 : f32 to vector<400x256xf32>
    %11 = arith.maximumf %9, %10 : vector<400x256xf32>
    %c0_11 = arith.constant 0 : index
    %c0_12 = arith.constant 0 : index
    %12 = vector.load %arg6[%c0_11, %c0_12] : memref<300x400xf32, #tpu.memory_space<vmem>>, vector<300x400xf32>
    %cst_13 = arith.constant dense<0.000000e+00> : vector<300x256xf32>
    %13 = tpu.matmul %12, %11, %cst_13 {dimension_numbers = #tpu.dot_dimension_numbers<[1], [0], [0], [1], [0, 0, 1, 1], [], []>} : vector<300x400xf32>, vector<400x256xf32>, vector<300x256xf32> -> vector<300x256xf32>
    %c0_14 = arith.constant 0 : index
    %c0_15 = arith.constant 0 : index
    %14 = vector.load %arg7[%c0_14, %c0_15] : memref<300x1xf32, #tpu.memory_space<vmem>>, vector<300x1xf32>
    %15 = vector.broadcast %14 : vector<300x1xf32> to vector<300x256xf32>
    %16 = arith.addf %13, %15 : vector<300x256xf32>
    %cst_16 = arith.constant 0.000000e+00 : f32
    %17 = vector.broadcast %cst_16 : f32 to vector<300x256xf32>
    %18 = arith.maximumf %16, %17 : vector<300x256xf32>
    %c0_17 = arith.constant 0 : index
    %c0_18 = arith.constant 0 : index
    %19 = vector.load %arg8[%c0_17, %c0_18] : memref<300x1xf32, #tpu.memory_space<vmem>>, vector<300x1xf32>
    %20 = vector.broadcast %19 : vector<300x1xf32> to vector<300x256xf32>
    %21 = arith.mulf %20, %18 : vector<300x256xf32>
    %cst_19 = arith.constant dense<0.000000e+00> : vector<256xf32>
    %22 = vector.multi_reduction <add>, %21, %cst_19 [0] : vector<300x256xf32> to vector<256xf32>
    %23 = vector.shape_cast %22 : vector<256xf32> to vector<1x256xf32>
    %c0_20 = arith.constant 0 : index
    %24 = memref.load %arg9[%c0_20] : memref<1xf32, #tpu.memory_space<smem>>
    %25 = vector.broadcast %24 : f32 to vector<1x256xf32>
    %26 = arith.addf %23, %25 : vector<1x256xf32>
    %c0_21 = arith.constant 0 : index
    %c0_22 = arith.constant 0 : index
    %27 = vector.load %arg10[%c0_21, %c0_22] : memref<1x256xf32, #tpu.memory_space<vmem>>, vector<1x256xf32>
    tpu.vector_store %arg10[%c0_21, %c0_22], %26 {strides = array<i32>} : memref<1x256xf32, #tpu.memory_space<vmem>>, vector<1x256xf32>,
    return
  }
  func.func @transform_0(%arg0: i32) -> (i32, i32) {
    %c0_i32 = arith.constant 0 : i32
    %c0_i32_0 = arith.constant 0 : i32
    return %c0_i32, %arg0 : i32, i32
  }
  func.func @transform_1(%arg0: i32) -> (i32, i32) {
    %c0_i32 = arith.constant 0 : i32
    %c0_i32_0 = arith.constant 0 : i32
    return %c0_i32, %arg0 : i32, i32
  }
  func.func @transform_2(%arg0: i32) -> (i32, i32) {
    %c0_i32 = arith.constant 0 : i32
    %c0_i32_0 = arith.constant 0 : i32
    %c0_i32_1 = arith.constant 0 : i32
    return %c0_i32, %c0_i32_0 : i32, i32
  }
  func.func @transform_3(%arg0: i32) -> (i32, i32) {
    %c0_i32 = arith.constant 0 : i32
    %c0_i32_0 = arith.constant 0 : i32
    %c0_i32_1 = arith.constant 0 : i32
    return %c0_i32, %c0_i32_0 : i32, i32
  }
  func.func @transform_4(%arg0: i32) -> (i32, i32) {
    %c0_i32 = arith.constant 0 : i32
    %c0_i32_0 = arith.constant 0 : i32
    %c0_i32_1 = arith.constant 0 : i32
    return %c0_i32, %c0_i32_0 : i32, i32
  }
  func.func @transform_5(%arg0: i32) -> (i32, i32) {
    %c0_i32 = arith.constant 0 : i32
    %c0_i32_0 = arith.constant 0 : i32
    %c0_i32_1 = arith.constant 0 : i32
    return %c0_i32, %c0_i32_0 : i32, i32
  }
  func.func @transform_6(%arg0: i32) -> (i32, i32) {
    %c0_i32 = arith.constant 0 : i32
    %c0_i32_0 = arith.constant 0 : i32
    %c0_i32_1 = arith.constant 0 : i32
    return %c0_i32, %c0_i32_0 : i32, i32
  }
  func.func @transform_7(%arg0: i32) -> (i32, i32) {
    %c0_i32 = arith.constant 0 : i32
    %c0_i32_0 = arith.constant 0 : i32
    %c0_i32_1 = arith.constant 0 : i32
    return %c0_i32, %c0_i32_0 : i32, i32
  }
  func.func @transform_8(%arg0: i32) -> i32 {
    %c0_i32 = arith.constant 0 : i32
    %c0_i32_0 = arith.constant 0 : i32
    return %c0_i32 : i32
  }
  func.func @transform_9(%arg0: i32) -> (i32, i32) {
    %c0_i32 = arith.constant 0 : i32
    %c0_i32_0 = arith.constant 0 : i32
    return %c0_i32, %arg0 : i32, i32
  }
}

</mosaic_0001>

<bundles_post_ra>
// kernel: tpu_custom_call.1
= control target key start
LH: loop header
LB: loop body
LE: loop exit
PB: predicated region body
PF: predicated region fallthrough
CT: control target
= control target key end

     0   :  { %s7993_s0 = inlined_call_operand.vmem [shape: f32[12,512], index: 0, kind: input, shape index: {}]   ;;  %s7994_s1 = inlined_call_operand.vmem [shape: f32[4,512], index: 1, kind: input, shape index: {}]   ;;  %s7995_s2 = inlined_call_operand.vmem [shape: f32[400,12], index: 2, kind: input, shape index: {}]   ;;  %s7996_s3 = inlined_call_operand.vmem [shape: f32[400,4], index: 3, kind: input, shape index: {}]   ;;  %s7997_s4 = inlined_call_operand.vmem [shape: f32[400,1], index: 4, kind: input, shape index: {}]   ;;  %s7998_s5 = inlined_call_operand.vmem [shape: f32[300,400], index: 5, kind: input, shape index: {}]   ;;  %s7999_s6 = inlined_call_operand.vmem [shape: f32[300,1], index: 6, kind: input, shape index: {}]   ;;  %s8000_s7 = inlined_call_operand.vmem [shape: f32[300,1], index: 7, kind: input, shape index: {}]   ;;  %s8001_s8 = inlined_call_operand.<no memory space> [shape: f32[1], index: 8, kind: input, shape index: {}]   ;;  %s8002_s9 = inlined_call_operand.hbm [shape: f32[1,512], index: 9, kind: output, shape index: {}]  }
   0x1   :  { %14 = sst [smem:[#allocation2]] %s8001_s8 }
   0x2   :  { %15 = vsyncpa [#allocation5], 0 }
   0x3   :  { %17 = vsyncpa [#allocation5 + $0x1], 0  ;;  %s4700_s11 = smov 0   ;;  %s4702_s12 = smov 0  }
   0x4   :  { %s4704_s13 = smov 0   ;;  %s4706_s14 = smov 0  }
   0x5 LB: > { %s4090_s8 = sadd.s32 4294967295, %s4644_s14   ;;  %s4091_s15 = sadd.s32 4294967294, %s4644_s14   ;;  %s4644_s14 = sphi %s4706_s14, %s8377_s14   ;;  %s4640_s13 = sphi %s4704_s13, %s8376_s13   ;;  %s4636_s12 = sphi %s4702_s12, %s8375_s12   ;;  %s4632_s11 = sphi %s4700_s11, %s8374_s11  }
   0x6   : > { %s4723_s16 = sadd.s32 1, %s4644_s14   ;;  %s30_s17 = sadd.s32 1, %s4640_s13 }
   0x7   : > { %s27_s18 = ssub.s32 %s4644_s14, %s4723_s16  ;;  %p37_p0 = scmp.ne.s32.totalorder %s4640_s13, %s4636_s12 }
   0x8   : > { %p28_p1 = scmp.eq.s32.totalorder %s27_s18, 0  ;;  %p38_p2 = scmp.eq.s32.totalorder %s4644_s14, 0 }
   0x9   : > { %p240_p3 = scmp.eq.s32.totalorder %s4090_s8, 1  ;;  %p245_p4 = scmp.ne.s32.totalorder %s4636_s12, %s4632_s11 }
   0xa   : > { %s4736_s19 = scalar_select %p28_p1, %s4640_s13, %s30_s17  }
   0xb   : > { %p39_p5 = por %p38_p2, %p37_p0  ;;  %p4738_p6 = por %p240_p3, %p37_p0 }
   0xc   : > { %p246_p7 = scmp.eq.s32.totalorder %s4091_s15, 1  ;;  %p4093_p9 = scmp.ge.s32.totalorder %s4644_s14, 2 }
   0xe   : > { %p4742_p8 = por %p246_p7, %p245_p4  ;;  %283 = sbr.rel (%p4093_p9) target bundleno = 27 (0x1b), region = 44 }
  0x13   : > { %286 = sbr.rel (!%p39_p5) target bundleno = 27 (0x1b), region = 48  ;;  %s288_s22 = sand.u32 (%p39_p5), 1, %s4640_s13  }
  0x14   : > { %s4386_s23 = sshll.u32 (%p39_p5), %s4644_s14, 4  ;;  %s4094_s24 = sshll.u32 (%p39_p5), %s288_s22, 5 }
  0x15   : > { %s293_s27 = scalar_lea.vmem (%p39_p5), %s7993_s0, %s4386_s23  ;;  %s290_s28 = scalar_lea.vmem (%p39_p5), [#allocation3], %s4094_s24 }
  0x16   : > { %v306_v0 = vld [vmem:[%s293_s27] sm:$0xff] (%p39_p5)  ;;  %v308_v1 = vld [vmem:[%s293_s27 + $0x8] sm:$0xff] (%p39_p5) }
  0x17   : > { %v310_v2 = vld [vmem:[%s293_s27 + $0x20] sm:$0xff] (%p39_p5)  ;;  %307 = vst [vmem:[%s290_s28] sm:$0xff] (%p39_p5), %v306_v0  ;;  %v312_v3 = vld [vmem:[%s293_s27 + $0x28] sm:$0xff] (%p39_p5) }
  0x18   : > { %309 = vst [vmem:[%s290_s28 + $0x8] sm:$0xff] %v308_v1 }
  0x19   : > { %311 = vst [vmem:[%s290_s28 + $0x10] sm:$0xff] %v310_v2 }
  0x1a   : > { %313 = vst [vmem:[%s290_s28 + $0x18] sm:$0xff] %v312_v3 }
  0x1b PF: > { %p4097_p10 = scmp.ge.s32.totalorder %s4644_s14, 1  ;;  %p327_p11 = scmp.lt.s32.totalorder %s4644_s14, 3 }
  0x1d   : > { %p328_p12 = pnand %p4097_p10, %p327_p11 }
  0x1f   : > { %331 = sbr.rel (%p328_p12) target bundleno = 1355 (0x54b), region = 75 }
  0x24   : > { %v1519_v4 = vld [vmem:[%s7997_s4 + $0x178] sm:$0xff]  ;;  %v1518_v5 = vld [vmem:[%s7997_s4 + $0x170] sm:$0xff]  ;;  %s4763_s17 = sand.u32 1, %s4636_s12   ;;  %v4646_v6 = vmov 0   ;;  %vm642_vm0 = vcmask 1043456   ;;  %s4768_s22 = sshll.u32 %s4090_s8, 1 }
  0x25   : > { %4428 = vset.pattern.permute.xlu1 %v4646_v6  ;;  %4427 = vset.pattern.permute.xlu0 %v4646_v6  ;;  %s4098_s18 = sshll.u32 %s4763_s17, 5  ;;  %p376_p13 = scmp.lt.s32.totalorder %s4768_s22, 3  ;;  %v382_v11 = vld [vmem:[%s7995_s2] sm:$0xff]  ;;  %vm981_vm1 = vcmask 97280   ;;  %v1487_v12 = vld [vmem:[%s7997_s4 + $0x78] sm:$0xff]  ;;  %v1486_v13 = vld [vmem:[%s7997_s4 + $0x70] sm:$0xff] }
  0x26   : > { %1759 = vperm.xlu0 %4427, %v1519_v4   ;;  %1754 = vperm.xlu1 %4428, %v1518_v5   ;;  %s336_s23 = scalar_lea.vmem [#allocation3], %s4098_s18  ;;  %v1503_v14 = vld [vmem:[%s7997_s4 + $0xf8] sm:$0xff]  ;;  %v383_v16 = vld [vmem:[%s7995_s2 + $0x8] sm:$0xff]  ;;  %v436_v18 = vld [vmem:[%s7996_s3] sm:$0xff]  ;;  %vm491_vm2 = vcmask 31744   ;;  %vm2352_vm3 = vcmask 130048   ;;  %s4009_s15 = scalar_lea.hbm %s8002_s9, %s4768_s22 }
  0x27   : > { %v434_v7 = vld [vmem:[%s336_s23 + $0x10] sm:$0xf]  ;;  %v435_v8 = vld [vmem:[%s336_s23 + $0x18] sm:$0xf]  ;;  %v432_v9 = vld [vmem:[%s336_s23] sm:$0xff]  ;;  %4429 = vset.pattern.permute.xlu2 %v4646_v6  ;;  %s377_s8 = scalar_select %p376_p13, %s4768_s22, 3 }
  0x28   : > { %4204 = vmatpush.msk.msra.mxu2 %vm642_vm0, %v434_v7  ;;  %4255 = vmatpush.msk.msra.mxu3 %vm642_vm0, %v435_v8  ;;  %v433_v10 = vld [vmem:[%s336_s23 + $0x8] sm:$0xff]  ;;  %v1517_v17 = vld [vmem:[%s7997_s4 + $0x168] sm:$0xff]  ;;  %v1516_v24 = vld [vmem:[%s7997_s4 + $0x160] sm:$0xff]  ;;  %s3983_s29 = sld [smem:[#allocation2]]  ;;  %s4099_s30 = sshll.u32 %s4763_s17, 1  ;;  %vm3990_vm4 = vcmask 1040384  }
  0x29   : > { %s4101_s26 = sshll.u32 %s377_s8, 2  ;;  %1679 = vperm.xlu2 %4429, %v1503_v14   ;;  %v1502_v19 = vld [vmem:[%s7997_s4 + $0xf0] sm:$0xff]  ;;  %v1485_v20 = vld [vmem:[%s7997_s4 + $0x68] sm:$0xff]  ;;  %v1484_v27 = vld [vmem:[%s7997_s4 + $0x60] sm:$0xff]  ;;  %s4013_s24 = sshll.u32 %s4009_s15, 4  ;;  %s4014_s24 = int_to_ptr.hbm [resolvable:$true] %s4013_s24 }
  0x2a   : > { %1153 = vmatpush.msra.mxu2 %v432_v9  ;;  %1320 = vmatpush.msra.mxu3 %v433_v10  ;;  %s379_s18 = scalar_lea.vmem %s7994_s1, %s4101_s26  ;;  %v384_v23 = vld [vmem:[%s7995_s2 + $0x10] sm:$0xff]  ;;  %v437_v25 = vld [vmem:[%s7996_s3 + $0x8] sm:$0xff]  ;;  %v385_v28 = vld [vmem:[%s7995_s2 + $0x18] sm:$0xff]  ;;  %s3999_s25 = scalar_lea.sflag [#allocation5], %s4763_s17 }
  0x2b   : > { %4205 = vmatmul.msk.f32.vlgmr.msra.gmra.mxu2 %vm981_vm1, %v382_v11  ;;  %4256 = vmatmul.msk.f32.vlgmr.msra.gmra.mxu3 %vm981_vm1, %v382_v11  ;;  %v486_v15 = vld [vmem:[%s379_s18] sm:$0xff]  ;;  %v1501_v26 = vld [vmem:[%s7997_s4 + $0xe8] sm:$0xff]  ;;  %v1515_v29 = vld [vmem:[%s7997_s4 + $0x158] sm:$0xff]  ;;  %s373_s18 = scalar_lea.vmem [#allocation4], %s4099_s30  ;;  %s4596_s22 = sshra.s32 %s4014_s24, 4  ;;  %s4597_s22 = int_to_ptr.hbm [resolvable:$true] %s4596_s22 }
  0x2c   : > { %488 = vst [vmem:[#allocation1] ss:$2 sm:$0xff] %v486_v15  ;;  %v438_v30 = vld [vmem:[%s7996_s3 + $0x10] sm:$0xff]  ;;  %v1500_v31 = vld [vmem:[%s7997_s4 + $0xe0] sm:$0xff]  ;;  %v1483_v32 = vld [vmem:[%s7997_s4 + $0x58] sm:$0xff]  ;;  %s4011_s23 = sshll.u32 %s373_s18, 4  ;;  %p4603_p3 = scmp.lt.s32.totalorder %s4597_s22, %s8002_s9  ;;  %s4012_s23 = int_to_ptr.vmem [resolvable:$true] %s4011_s23 }
  0x2d   : > { %v386_v33 = vld [vmem:[%s7995_s2 + $0x20] sm:$0xff]  ;;  %v1514_v34 = vld [vmem:[%s7997_s4 + $0x150] sm:$0xff]  ;;  %v439_v35 = vld [vmem:[%s7996_s3 + $0x18] sm:$0xff]  ;;  %s4598_s8 = scalar_lea.hbm %s4597_s22, 2 }
  0x2e   : > { %1599 = vperm.xlu0 %4427, %v1487_v12   ;;  %1594 = vperm.xlu1 %4428, %v1486_v13   ;;  %v1499_v36 = vld [vmem:[%s7997_s4 + $0xd8] sm:$0xff]  ;;  %v1482_v37 = vld [vmem:[%s7997_s4 + $0x50] sm:$0xff]  ;;  %v387_v38 = vld [vmem:[%s7995_s2 + $0x28] sm:$0xff]  ;;  %p4599_p0 = scmp.ne.s32.totalorder %s4597_s22, %s4598_s8 }
  0x2f   : > { %v1513_v39 = vld [vmem:[%s7997_s4 + $0x148] sm:$0xff]  ;;  %v440_v40 = vld [vmem:[%s7996_s3 + $0x20] sm:$0xff]  ;;  %v1498_v41 = vld [vmem:[%s7997_s4 + $0xd0] sm:$0xff] }
  0x30   : > { %v1481_v42 = vld [vmem:[%s7997_s4 + $0x48] sm:$0xff]  ;;  %v388_v43 = vld [vmem:[%s7995_s2 + $0x30] sm:$0xff]  ;;  %v1512_v44 = vld [vmem:[%s7997_s4 + $0x140] sm:$0xff]  ;;  %p4600_p1 = pnand %p4599_p0, %p4738_p6 }
  0x31   : > { %1749 = vperm.xlu2 %4429, %v1517_v17   ;;  %v441_v45 = vld [vmem:[%s7996_s3 + $0x28] sm:$0xff]  ;;  %v1480_v47 = vld [vmem:[%s7997_s4 + $0x40] sm:$0xff]  ;;  %v389_v48 = vld [vmem:[%s7995_s2 + $0x38] sm:$0xff] }
  0x32   : > { %v1497_v46 = vld [vmem:[%s7997_s4 + $0xc8] sm:$0xff]  ;;  %v1511_v49 = vld [vmem:[%s7997_s4 + $0x138] sm:$0xff]  ;;  %v442_v50 = vld [vmem:[%s7996_s3 + $0x30] sm:$0xff]  ;;  %p4601_p2 = pneg %p4600_p1 }
  0x33   : > { %4206 = vmatmul.msk.f32.gmra.mxu2 %vm981_vm1, %v383_v16  ;;  %4257 = vmatmul.msk.f32.gmra.mxu3 %vm981_vm1, %v383_v16  ;;  %v489_v21 = vld.sshfl [vmem:[#allocation1] sm:$0xff pattern:$0x75316420]  ;;  %v490_v22 = vld.sshfl [vmem:[#allocation1 + $0x8] sm:$0xff pattern:$0x75316420] }
  0x34   : > { %4102 = vmatpush.msk.msra.mxu0 %vm642_vm0, %v489_v21  ;;  %4153 = vmatpush.msk.msra.mxu1 %vm642_vm0, %v490_v22  ;;  %v1496_v51 = vld [vmem:[%s7997_s4 + $0xc0] sm:$0xff]  ;;  %v1479_v52 = vld [vmem:[%s7997_s4 + $0x38] sm:$0xff]  ;;  %v1510_v54 = vld [vmem:[%s7997_s4 + $0x130] sm:$0xff] }
  0x35   : > { %4103 = vmatmul.msk.f32.vlgmr.msra.gmra.mxu0 %vm491_vm2, %v436_v18  ;;  %4154 = vmatmul.msk.f32.vlgmr.msra.gmra.mxu1 %vm491_vm2, %v436_v18  ;;  %v390_v53 = vld [vmem:[%s7995_s2 + $0x40] sm:$0xff]  ;;  %v443_v55 = vld [vmem:[%s7996_s3 + $0x38] sm:$0xff]  ;;  %v1478_v57 = vld [vmem:[%s7997_s4 + $0x30] sm:$0xff] }
  0x36   : > { %1674 = vperm.xlu1 %4428, %v1502_v19   ;;  %1589 = vperm.xlu0 %4427, %v1485_v20   ;;  %v1495_v56 = vld [vmem:[%s7997_s4 + $0xb8] sm:$0xff]  ;;  %v391_v58 = vld [vmem:[%s7995_s2 + $0x48] sm:$0xff]  ;;  %v444_v60 = vld [vmem:[%s7996_s3 + $0x40] sm:$0xff] }
  0x37   : > { %v1509_v59 = vld [vmem:[%s7997_s4 + $0x128] sm:$0xff]  ;;  %v1494_v61 = vld [vmem:[%s7997_s4 + $0xb0] sm:$0xff]  ;;  %v1508_v0 = vld [vmem:[%s7997_s4 + $0x120] sm:$0xff] }
  0x38   : > { %v1477_v62 = vld [vmem:[%s7997_s4 + $0x28] sm:$0xff]  ;;  %v392_v63 = vld [vmem:[%s7995_s2 + $0x50] sm:$0xff]  ;;  %v1476_v3 = vld [vmem:[%s7997_s4 + $0x20] sm:$0xff] }
  0x39   : > { %1744 = vperm.xlu2 %4429, %v1516_v24   ;;  %v445_v1 = vld [vmem:[%s7996_s3 + $0x48] sm:$0xff]  ;;  %v393_v4 = vld [vmem:[%s7995_s2 + $0x58] sm:$0xff]  ;;  %v446_v6 = vld [vmem:[%s7996_s3 + $0x50] sm:$0xff] }
  0x3a   : > { %v1493_v2 = vld [vmem:[%s7997_s4 + $0xa8] sm:$0xff]  ;;  %v1507_v5 = vld [vmem:[%s7997_s4 + $0x118] sm:$0xff]  ;;  %v1492_v7 = vld [vmem:[%s7997_s4 + $0xa0] sm:$0xff] }
  0x3b   : > { %4207 = vmatmul.msk.f32.gmra.mxu2 %vm981_vm1, %v384_v23  ;;  %4258 = vmatmul.msk.f32.gmra.mxu3 %vm981_vm1, %v384_v23  ;;  %v1475_v8 = vld [vmem:[%s7997_s4 + $0x18] sm:$0xff]  ;;  %v394_v9 = vld [vmem:[%s7995_s2 + $0x60] sm:$0xff]  ;;  %v1506_v10 = vld [vmem:[%s7997_s4 + $0x110] sm:$0xff] }
  0x3c   : > { %v447_v11 = vld [vmem:[%s7996_s3 + $0x58] sm:$0xff]  ;;  %v1474_v13 = vld [vmem:[%s7997_s4 + $0x10] sm:$0xff]  ;;  %v395_v14 = vld [vmem:[%s7995_s2 + $0x68] sm:$0xff] }
  0x3d   : > { %4104 = vmatmul.msk.f32.gmra.mxu0 %vm491_vm2, %v437_v25  ;;  %4155 = vmatmul.msk.f32.gmra.mxu1 %vm491_vm2, %v437_v25  ;;  %v1491_v12 = vld [vmem:[%s7997_s4 + $0x98] sm:$0xff]  ;;  %v1505_v15 = vld [vmem:[%s7997_s4 + $0x108] sm:$0xff]  ;;  %v448_v16 = vld [vmem:[%s7996_s3 + $0x60] sm:$0xff] }
  0x3e   : > { %1669 = vperm.xlu1 %4428, %v1501_v26   ;;  %1584 = vperm.xlu0 %4427, %v1484_v27   ;;  %v1490_v17 = vld [vmem:[%s7997_s4 + $0x90] sm:$0xff]  ;;  %v1473_v18 = vld [vmem:[%s7997_s4 + $0x8] sm:$0xff]  ;;  %v1504_v21 = vld [vmem:[%s7997_s4 + $0x100] sm:$0xff] }
  0x3f   : > { %v396_v19 = vld [vmem:[%s7995_s2 + $0x70] sm:$0xff]  ;;  %v449_v22 = vld [vmem:[%s7996_s3 + $0x68] sm:$0xff]  ;;  %v1472_v24 = vld [vmem:[%s7997_s4] sm:$0xff] }
  0x40   : > { %v1521_v23 = vld [vmem:[%s7997_s4 + $0x188] sm:$0xff]  ;;  %v397_v25 = vld [vmem:[%s7995_s2 + $0x78] sm:$0xff] }
  0x41   : > { %1739 = vperm.xlu2 %4429, %v1515_v29   ;;  %v1489_v26 = vld [vmem:[%s7997_s4 + $0x88] sm:$0xff]  ;;  %v1520_v29 = vld [vmem:[%s7997_s4 + $0x180] sm:$0xff] }
  0x43   : > { %4208 = vmatmul.msk.f32.gmra.mxu2 %vm981_vm1, %v385_v28  ;;  %4259 = vmatmul.msk.f32.gmra.mxu3 %vm981_vm1, %v385_v28  ;;  %v450_v28 = vld [vmem:[%s7996_s3 + $0x70] sm:$0xff] }
  0x45   : > { %4105 = vmatmul.msk.f32.gmra.mxu0 %vm491_vm2, %v438_v30  ;;  %4156 = vmatmul.msk.f32.gmra.mxu1 %vm491_vm2, %v438_v30  ;;  %v1488_v30 = vld [vmem:[%s7997_s4 + $0x80] sm:$0xff] }
  0x46   : > { %1664 = vperm.xlu1 %4428, %v1500_v31   ;;  %1579 = vperm.xlu0 %4427, %v1483_v32   ;;  %v398_v32 = vld [vmem:[%s7995_s2 + $0x80] sm:$0xff] }
  0x49   : > { %1734 = vperm.xlu2 %4429, %v1514_v34   ;;  %v451_v34 = vld [vmem:[%s7996_s3 + $0x78] sm:$0xff] }
  0x4b   : > { %4209 = vmatmul.msk.f32.gmra.mxu2 %vm981_vm1, %v386_v33  ;;  %4260 = vmatmul.msk.f32.gmra.mxu3 %vm981_vm1, %v386_v33  ;;  %v2124_v33 = vld [vmem:[%s7999_s6] sm:$0xff] }
  0x4d   : > { %4106 = vmatmul.msk.f32.gmra.mxu0 %vm491_vm2, %v439_v35  ;;  %4157 = vmatmul.msk.f32.gmra.mxu1 %vm491_vm2, %v439_v35  ;;  %v2125_v35 = vld [vmem:[%s7999_s6 + $0x8] sm:$0xff] }
  0x4e   : > { %1659 = vperm.xlu1 %4428, %v1499_v36   ;;  %1574 = vperm.xlu0 %4427, %v1482_v37   ;;  %v2126_v36 = vld [vmem:[%s7999_s6 + $0x10] sm:$0xff] }
  0x51   : > { %1729 = vperm.xlu2 %4429, %v1513_v39  }
  0x53   : > { %4210 = vmatmul.msk.f32.gmra.mxu2 %vm981_vm1, %v387_v38  ;;  %4261 = vmatmul.msk.f32.gmra.mxu3 %vm981_vm1, %v387_v38 }
  0x55   : > { %4107 = vmatmul.msk.f32.gmra.mxu0 %vm491_vm2, %v440_v40  ;;  %4158 = vmatmul.msk.f32.gmra.mxu1 %vm491_vm2, %v440_v40  ;;  %v399_v40 = vld [vmem:[%s7995_s2 + $0x88] sm:$0xff] }
  0x56   : > { %1654 = vperm.xlu1 %4428, %v1498_v41   ;;  %1569 = vperm.xlu0 %4427, %v1481_v42   ;;  %v2127_v41 = vld [vmem:[%s7999_s6 + $0x18] sm:$0xff] }
  0x59   : > { %1724 = vperm.xlu2 %4429, %v1512_v44  }
  0x5b   : > { %4211 = vmatmul.msk.f32.gmra.mxu2 %vm981_vm1, %v388_v43  ;;  %4262 = vmatmul.msk.f32.gmra.mxu3 %vm981_vm1, %v388_v43 }
  0x5d   : > { %4108 = vmatmul.msk.f32.gmra.mxu0 %vm491_vm2, %v441_v45  ;;  %4159 = vmatmul.msk.f32.gmra.mxu1 %vm491_vm2, %v441_v45  ;;  %v452_v45 = vld [vmem:[%s7996_s3 + $0x80] sm:$0xff] }
  0x5e   : > { %1649 = vperm.xlu1 %4428, %v1497_v46   ;;  %1564 = vperm.xlu0 %4427, %v1480_v47   ;;  %v2128_v46 = vld [vmem:[%s7999_s6 + $0x20] sm:$0xff]  ;;  %v2129_v47 = vld [vmem:[%s7999_s6 + $0x28] sm:$0xff] }
  0x61   : > { %1719 = vperm.xlu2 %4429, %v1511_v49  }
  0x63   : > { %4212 = vmatmul.msk.f32.gmra.mxu2 %vm981_vm1, %v389_v48  ;;  %4263 = vmatmul.msk.f32.gmra.mxu3 %vm981_vm1, %v389_v48 }
  0x65   : > { %4109 = vmatmul.msk.f32.gmra.mxu0 %vm491_vm2, %v442_v50  ;;  %4160 = vmatmul.msk.f32.gmra.mxu1 %vm491_vm2, %v442_v50 }
  0x66   : > { %1644 = vperm.xlu1 %4428, %v1496_v51   ;;  %1559 = vperm.xlu0 %4427, %v1479_v52   ;;  %v400_v51 = vld [vmem:[%s7995_s2 + $0x90] sm:$0xff] }
  0x67   : > { %v2130_v52 = vld [vmem:[%s7999_s6 + $0x30] sm:$0xff] }
  0x69   : > { %1714 = vperm.xlu2 %4429, %v1510_v54  }
  0x6b   : > { %4213 = vmatmul.msk.f32.gmra.mxu2 %vm981_vm1, %v390_v53  ;;  %4264 = vmatmul.msk.f32.gmra.mxu3 %vm981_vm1, %v390_v53 }
  0x6d   : > { %4110 = vmatmul.msk.f32.gmra.mxu0 %vm491_vm2, %v443_v55  ;;  %4161 = vmatmul.msk.f32.gmra.mxu1 %vm491_vm2, %v443_v55  ;;  %v453_v55 = vld [vmem:[%s7996_s3 + $0x88] sm:$0xff] }
  0x6e   : > { %1639 = vperm.xlu1 %4428, %v1495_v56   ;;  %1554 = vperm.xlu0 %4427, %v1478_v57   ;;  %v2131_v56 = vld [vmem:[%s7999_s6 + $0x38] sm:$0xff]  ;;  %v2132_v57 = vld [vmem:[%s7999_s6 + $0x40] sm:$0xff] }
  0x71   : > { %1709 = vperm.xlu2 %4429, %v1509_v59  }
  0x73   : > { %4214 = vmatmul.msk.f32.gmra.mxu2 %vm981_vm1, %v391_v58  ;;  %4265 = vmatmul.msk.f32.gmra.mxu3 %vm981_vm1, %v391_v58 }
  0x75   : > { %4111 = vmatmul.msk.f32.gmra.mxu0 %vm491_vm2, %v444_v60  ;;  %4162 = vmatmul.msk.f32.gmra.mxu1 %vm491_vm2, %v444_v60 }
  0x76   : > { %1634 = vperm.xlu1 %4428, %v1494_v61   ;;  %1549 = vperm.xlu0 %4427, %v1477_v62   ;;  %v401_v61 = vld [vmem:[%s7995_s2 + $0x98] sm:$0xff]  ;;  %v2133_v62 = vld [vmem:[%s7999_s6 + $0x48] sm:$0xff] }
  0x79   : > { %1704 = vperm.xlu2 %4429, %v1508_v0  }
  0x7b   : > { %4215 = vmatmul.msk.f32.gmra.mxu2 %vm981_vm1, %v392_v63  ;;  %4266 = vmatmul.msk.f32.gmra.mxu3 %vm981_vm1, %v392_v63 }
  0x7d   : > { %4112 = vmatmul.msk.f32.gmra.mxu0 %vm491_vm2, %v445_v1  ;;  %4163 = vmatmul.msk.f32.gmra.mxu1 %vm491_vm2, %v445_v1 }
  0x7e   : > { %1629 = vperm.xlu1 %4428, %v1493_v2   ;;  %1544 = vperm.xlu0 %4427, %v1476_v3   ;;  %v454_v2 = vld [vmem:[%s7996_s3 + $0x90] sm:$0xff] }
  0x7f   : > { %v2134_v3 = vld [vmem:[%s7999_s6 + $0x50] sm:$0xff] }
  0x81   : > { %1699 = vperm.xlu2 %4429, %v1507_v5  }
  0x83   : > { %4216 = vmatmul.msk.f32.gmra.mxu2 %vm981_vm1, %v393_v4  ;;  %4267 = vmatmul.msk.f32.gmra.mxu3 %vm981_vm1, %v393_v4  ;;  %v2135_v4 = vld [vmem:[%s7999_s6 + $0x58] sm:$0xff] }
  0x85   : > { %4113 = vmatmul.msk.f32.gmra.mxu0 %vm491_vm2, %v446_v6  ;;  %4164 = vmatmul.msk.f32.gmra.mxu1 %vm491_vm2, %v446_v6 }
  0x86   : > { %1624 = vperm.xlu1 %4428, %v1492_v7   ;;  %1539 = vperm.xlu0 %4427, %v1475_v8   ;;  %v402_v8 = vld [vmem:[%s7995_s2 + $0xa0] sm:$0xff] }
  0x89   : > { %1694 = vperm.xlu2 %4429, %v1506_v10  }
  0x8b   : > { %4217 = vmatmul.msk.f32.gmra.mxu2 %vm981_vm1, %v394_v9  ;;  %4268 = vmatmul.msk.f32.gmra.mxu3 %vm981_vm1, %v394_v9  ;;  %v2136_v9 = vld [vmem:[%s7999_s6 + $0x60] sm:$0xff] }
  0x8d   : > { %4114 = vmatmul.msk.f32.gmra.mxu0 %vm491_vm2, %v447_v11  ;;  %4165 = vmatmul.msk.f32.gmra.mxu1 %vm491_vm2, %v447_v11 }
  0x8e   : > { %1619 = vperm.xlu1 %4428, %v1491_v12   ;;  %1534 = vperm.xlu0 %4427, %v1474_v13   ;;  %v455_v12 = vld [vmem:[%s7996_s3 + $0x98] sm:$0xff]  ;;  %v2137_v13 = vld [vmem:[%s7999_s6 + $0x68] sm:$0xff] }
  0x91   : > { %1689 = vperm.xlu2 %4429, %v1505_v15  }
  0x93   : > { %4218 = vmatmul.msk.f32.gmra.mxu2 %vm981_vm1, %v395_v14  ;;  %4269 = vmatmul.msk.f32.gmra.mxu3 %vm981_vm1, %v395_v14  ;;  %v2138_v14 = vld [vmem:[%s7999_s6 + $0x70] sm:$0xff] }
  0x95   : > { %4115 = vmatmul.msk.f32.gmra.mxu0 %vm491_vm2, %v448_v16  ;;  %4166 = vmatmul.msk.f32.gmra.mxu1 %vm491_vm2, %v448_v16 }
  0x96   : > { %1614 = vperm.xlu1 %4428, %v1490_v17   ;;  %1529 = vperm.xlu0 %4427, %v1473_v18   ;;  %v403_v18 = vld [vmem:[%s7995_s2 + $0xa8] sm:$0xff] }
  0x98   : > { %v5043_v20 = vpop.permute.xlu0 %1759  ;;  %v5082_v31 = vpop.permute.xlu1 %1754 }
  0x99   : > { %8095 = vst [vmem:[#allocation7_spill] sm:$0xff] %v5043_v20  ;;  %1684 = vperm.xlu2 %4429, %v1504_v21  }
  0x9a   : > { %8096 = vst [vmem:[#allocation8_spill] sm:$0xff] %v5082_v31 }
  0x9b   : > { %4219 = vmatmul.msk.f32.gmra.mxu2 %vm981_vm1, %v396_v19  ;;  %4270 = vmatmul.msk.f32.gmra.mxu3 %vm981_vm1, %v396_v19  ;;  %v2139_v19 = vld [vmem:[%s7999_s6 + $0x78] sm:$0xff] }
  0x9d   : > { %4116 = vmatmul.msk.f32.gmra.mxu0 %vm491_vm2, %v449_v22  ;;  %4167 = vmatmul.msk.f32.gmra.mxu1 %vm491_vm2, %v449_v22 }
  0x9e   : > { %1769 = vperm.xlu0 %4427, %v1521_v23   ;;  %1524 = vperm.xlu1 %4428, %v1472_v24   ;;  %v456_v24 = vld [vmem:[%s7996_s3 + $0xa0] sm:$0xff] }
  0xa0   : > { %v5067_v27 = vpop.permute.xlu0 %1599  ;;  %v5115_v42 = vpop.permute.xlu1 %1594 }
  0xa1   : > { %1609 = vperm.xlu2 %4429, %v1489_v26   ;;  %v2141_v26 = vld [vmem:[%s7999_s6 + $0x88] sm:$0xff] }
  0xa3   : > { %4220 = vmatmul.msk.f32.gmra.mxu2 %vm981_vm1, %v397_v25  ;;  %4271 = vmatmul.msk.f32.gmra.mxu3 %vm981_vm1, %v397_v25  ;;  %v2140_v25 = vld [vmem:[%s7999_s6 + $0x80] sm:$0xff] }
  0xa5   : > { %4117 = vmatmul.msk.f32.gmra.mxu0 %vm491_vm2, %v450_v28  ;;  %4168 = vmatmul.msk.f32.gmra.mxu1 %vm491_vm2, %v450_v28 }
  0xa6   : > { %1764 = vperm.xlu0 %4427, %v1520_v29   ;;  %1604 = vperm.xlu1 %4428, %v1488_v30  }
  0xa8   : > { %v5101_v37 = vpop.permute.xlu0 %1589  ;;  %v5161_v58 = vpop.permute.xlu1 %1674 }
  0xa9   : > { %2164 = vperm.xlu2 %4429, %v2124_v33   ;;  %8101 = vst [vmem:[#allocation13_spill] sm:$0xff] %v5161_v58  ;;  %v2142_v33 = vld [vmem:[%s7999_s6 + $0x90] sm:$0xff]  ;;  %v3595_v58 = vld [vmem:[%s8000_s7 + $0x20] sm:$0xff] }
  0xab   : > { %4221 = vmatmul.msk.f32.gmra.mxu2 %vm981_vm1, %v398_v32  ;;  %4272 = vmatmul.msk.f32.gmra.mxu3 %vm981_vm1, %v398_v32  ;;  %v404_v32 = vld [vmem:[%s7995_s2 + $0xb0] sm:$0xff] }
  0xad   : > { %4118 = vmatmul.msk.f32.gmra.mxu0 %vm491_vm2, %v451_v34  ;;  %4169 = vmatmul.msk.f32.gmra.mxu1 %vm491_vm2, %v451_v34 }
  0xae   : > { %v5105_v38 = vpop.f32.mrf.mxu2  ;;  %v5107_v39 = vpop.f32.mrf.mxu3  ;;  %2169 = vperm.xlu0 %4427, %v2125_v35   ;;  %2174 = vperm.xlu1 %4428, %v2126_v36   ;;  %v457_v36 = vld [vmem:[%s7996_s3 + $0xa8] sm:$0xff] }
  0xaf   : > { %8097 = vst [vmem:[#allocation9_spill] sm:$0xff] %v5107_v39 }
  0xb0   : > { %v5138_v50 = vpop.permute.xlu0 %1584  ;;  %v5198_v7 = vpop.permute.xlu1 %1669 }
  0xb1   : > { %2179 = vperm.xlu2 %4429, %v2127_v41   ;;  %8105 = vst [vmem:[#allocation17_spill] sm:$0xff] %v5198_v7  ;;  %v2144_v41 = vld [vmem:[%s7999_s6 + $0xa0] sm:$0xff] }
  0xb2   : > { %v5117_v43 = vpop.f32.mrf.mxu0  ;;  %v5119_v44 = vpop.f32.mrf.mxu1 }
  0xb3   : > { %8098 = vst [vmem:[#allocation10_spill] sm:$0xff] %v5119_v44  ;;  %4222 = vmatmul.msk.f32.gmra.mxu2 %vm981_vm1, %v399_v40  ;;  %4273 = vmatmul.msk.f32.gmra.mxu3 %vm981_vm1, %v399_v40  ;;  %v2143_v40 = vld [vmem:[%s7999_s6 + $0x98] sm:$0xff] }
  0xb5   : > { %4119 = vmatmul.msk.f32.gmra.mxu0 %vm491_vm2, %v452_v45  ;;  %4170 = vmatmul.msk.f32.gmra.mxu1 %vm491_vm2, %v452_v45 }
  0xb6   : > { %v5134_v48 = vpop.f32.mrf.mxu2  ;;  %v5136_v49 = vpop.f32.mrf.mxu3  ;;  %2184 = vperm.xlu0 %4427, %v2128_v46   ;;  %2189 = vperm.xlu1 %4428, %v2129_v47  }
  0xb7   : > { %8099 = vst [vmem:[#allocation11_spill] sm:$0xff] %v5136_v49 }
  0xb8   : > { %v5175_v63 = vpop.permute.xlu0 %1579  ;;  %v5235_v21 = vpop.permute.xlu1 %1664 }
  0xb9   : > { %2194 = vperm.xlu2 %4429, %v2130_v52   ;;  %8108 = vst [vmem:[#allocation20_spill] sm:$0xff] %v5235_v21  ;;  %v2145_v52 = vld [vmem:[%s7999_s6 + $0xa8] sm:$0xff] }
  0xba   : > { %v5146_v53 = vpop.f32.mrf.mxu0  ;;  %v5148_v54 = vpop.f32.mrf.mxu1 }
  0xbb   : > { %8100 = vst [vmem:[#allocation12_spill] sm:$0xff] %v5148_v54  ;;  %4223 = vmatmul.msk.f32.gmra.mxu2 %vm981_vm1, %v400_v51  ;;  %4274 = vmatmul.msk.f32.gmra.mxu3 %vm981_vm1, %v400_v51  ;;  %v405_v51 = vld [vmem:[%s7995_s2 + $0xb8] sm:$0xff] }
  0xbd   : > { %4120 = vmatmul.msk.f32.gmra.mxu0 %vm491_vm2, %v453_v55  ;;  %4171 = vmatmul.msk.f32.gmra.mxu1 %vm491_vm2, %v453_v55 }
  0xbe   : > { %v5165_v59 = vpop.f32.mrf.mxu2  ;;  %v5167_v60 = vpop.f32.mrf.mxu3  ;;  %2199 = vperm.xlu0 %4427, %v2131_v56   ;;  %2204 = vperm.xlu1 %4428, %v2132_v57  }
  0xbf   : > { %8102 = vst [vmem:[#allocation14_spill] sm:$0xff] %v5167_v60 }
  0xc0   : > { %v5221_v15 = vpop.permute.xlu0 %1574  ;;  %v5281_v45 = vpop.permute.xlu1 %1659 }
  0xc1   : > { %2209 = vperm.xlu2 %4429, %v2133_v62   ;;  %8112 = vst [vmem:[#allocation24_spill] sm:$0xff] %v5281_v45  ;;  %v2146_v62 = vld [vmem:[%s7999_s6 + $0xb0] sm:$0xff] }
  0xc2   : > { %v5177_v0 = vpop.f32.mrf.mxu0  ;;  %v5179_v1 = vpop.f32.mrf.mxu1 }
  0xc3   : > { %8103 = vst [vmem:[#allocation15_spill] sm:$0xff] %v5179_v1  ;;  %4224 = vmatmul.msk.f32.gmra.mxu2 %vm981_vm1, %v401_v61  ;;  %4275 = vmatmul.msk.f32.gmra.mxu3 %vm981_vm1, %v401_v61  ;;  %v458_v61 = vld [vmem:[%s7996_s3 + $0xb0] sm:$0xff]  ;;  %v3598_v1 = vld [vmem:[%s8000_s7 + $0x38] sm:$0xff] }
  0xc5   : > { %4121 = vmatmul.msk.f32.gmra.mxu0 %vm491_vm2, %v454_v2  ;;  %4172 = vmatmul.msk.f32.gmra.mxu1 %vm491_vm2, %v454_v2  ;;  %v2147_v2 = vld [vmem:[%s7999_s6 + $0xb8] sm:$0xff] }
  0xc6   : > { %v5194_v5 = vpop.f32.mrf.mxu2  ;;  %v5196_v6 = vpop.f32.mrf.mxu3  ;;  %2214 = vperm.xlu0 %4427, %v2134_v3   ;;  %2219 = vperm.xlu1 %4428, %v2135_v4  }
  0xc7   : > { %8104 = vst [vmem:[#allocation16_spill] sm:$0xff] %v5196_v6 }
  0xc8   : > { %v5258_v30 = vpop.permute.xlu0 %1569 }
  0xc9   : > { %2224 = vperm.xlu2 %4429, %v2136_v9   ;;  %v406_v9 = vld [vmem:[%s7995_s2 + $0xc0] sm:$0xff] }
  0xca   : > { %v5206_v10 = vpop.f32.mrf.mxu0  ;;  %v5208_v11 = vpop.f32.mrf.mxu1 }
  0xcb   : > { %8106 = vst [vmem:[#allocation18_spill] sm:$0xff] %v5208_v11  ;;  %4225 = vmatmul.msk.f32.gmra.mxu2 %vm981_vm1, %v402_v8  ;;  %4276 = vmatmul.msk.f32.gmra.mxu3 %vm981_vm1, %v402_v8  ;;  %v5316_v8 = vpop.permute.xlu1 %1654 }
  0xcc   : > { %8113 = vst [vmem:[#allocation25_spill] sm:$0xff] %v5316_v8 }
  0xcd   : > { %4122 = vmatmul.msk.f32.gmra.mxu0 %vm491_vm2, %v455_v12  ;;  %4173 = vmatmul.msk.f32.gmra.mxu1 %vm491_vm2, %v455_v12  ;;  %v2148_v12 = vld [vmem:[%s7999_s6 + $0xc0] sm:$0xff] }
  0xce   : > { %v5225_v16 = vpop.f32.mrf.mxu2  ;;  %v5227_v17 = vpop.f32.mrf.mxu3  ;;  %2229 = vperm.xlu0 %4427, %v2137_v13   ;;  %2234 = vperm.xlu1 %4428, %v2138_v14  }
  0xcf   : > { %8107 = vst [vmem:[#allocation19_spill] sm:$0xff] %v5227_v17  ;;  %v5544_v17 = vpop.permute.xlu2 %1679 }
  0xd0   : > { %v5295_v55 = vpop.permute.xlu0 %1564  ;;  %8123 = vst [vmem:[#allocation35_spill] sm:$0xff] %v5544_v17 }
  0xd1   : > { %2239 = vperm.xlu2 %4429, %v2139_v19  }
  0xd2   : > { %v5237_v22 = vpop.f32.mrf.mxu0  ;;  %v5239_v23 = vpop.f32.mrf.mxu1 }
  0xd3   : > { %8109 = vst [vmem:[#allocation21_spill] sm:$0xff] %v5239_v23  ;;  %4226 = vmatmul.msk.f32.gmra.mxu2 %vm981_vm1, %v403_v18  ;;  %4277 = vmatmul.msk.f32.gmra.mxu3 %vm981_vm1, %v403_v18  ;;  %v459_v18 = vld [vmem:[%s7996_s3 + $0xb8] sm:$0xff] }
  0xd5   : > { %4123 = vmatmul.msk.f32.gmra.mxu0 %vm491_vm2, %v456_v24  ;;  %4174 = vmatmul.msk.f32.gmra.mxu1 %vm491_vm2, %v456_v24  ;;  %v2149_v24 = vld [vmem:[%s7999_s6 + $0xc8] sm:$0xff] }
  0xd6   : > { %v5254_v28 = vpop.f32.mrf.mxu2  ;;  %v5256_v29 = vpop.f32.mrf.mxu3  ;;  %2244 = vperm.xlu0 %4427, %v2140_v25   ;;  %2249 = vperm.xlu1 %4428, %v2141_v26   ;;  %v2150_v25 = vld [vmem:[%s7999_s6 + $0xd0] sm:$0xff] }
  0xd7   : > { %8110 = vst [vmem:[#allocation22_spill] sm:$0xff] %v5256_v29 }
  0xd8   : > { %v5337_v26 = vpop.permute.xlu0 %1559 }
  0xd9   : > { %2254 = vperm.xlu2 %4429, %v2142_v33  }
  0xda   : > { %v5266_v34 = vpop.f32.mrf.mxu0  ;;  %v5268_v35 = vpop.f32.mrf.mxu1 }
  0xdb   : > { %8111 = vst [vmem:[#allocation23_spill] sm:$0xff] %v5268_v35  ;;  %4227 = vmatmul.msk.f32.gmra.mxu2 %vm981_vm1, %v404_v32  ;;  %4278 = vmatmul.msk.f32.gmra.mxu3 %vm981_vm1, %v404_v32 }
  0xdd   : > { %4124 = vmatmul.msk.f32.gmra.mxu0 %vm491_vm2, %v457_v36  ;;  %4175 = vmatmul.msk.f32.gmra.mxu1 %vm491_vm2, %v457_v36 }
  0xde   : > { %v5285_v46 = vpop.f32.mrf.mxu2  ;;  %v5287_v47 = vpop.f32.mrf.mxu3  ;;  %2259 = vperm.xlu0 %4427, %v2143_v40   ;;  %2264 = vperm.xlu1 %4428, %v2144_v41   ;;  %v407_v40 = vld [vmem:[%s7995_s2 + $0xc8] sm:$0xff]  ;;  %v2151_v41 = vld [vmem:[%s7999_s6 + $0xd8] sm:$0xff] }
  0xe1   : > { %2269 = vperm.xlu2 %4429, %v2145_v52  }
  0xe2   : > { %v5297_v56 = vpop.f32.mrf.mxu0  ;;  %v5299_v57 = vpop.f32.mrf.mxu1 }
  0xe3   : > { %4228 = vmatmul.msk.f32.gmra.mxu2 %vm981_vm1, %v405_v51  ;;  %4279 = vmatmul.msk.f32.gmra.mxu3 %vm981_vm1, %v405_v51  ;;  %v5350_v51 = vpop.permute.xlu1 %1649 }
  0xe4   : > { %8115 = vst [vmem:[#allocation27_spill] sm:$0xff] %v5350_v51 }
  0xe5   : > { %4125 = vmatmul.msk.f32.gmra.mxu0 %vm491_vm2, %v458_v61  ;;  %4176 = vmatmul.msk.f32.gmra.mxu1 %vm491_vm2, %v458_v61 }
  0xe6   : > { %v5314_v3 = vpop.f32.mrf.mxu2  ;;  %v1343_v4 = vpop.f32.mrf.mxu3  ;;  %2274 = vperm.xlu0 %4427, %v2146_v62   ;;  %2279 = vperm.xlu1 %4428, %v2147_v2   ;;  %v460_v62 = vld [vmem:[%s7996_s3 + $0xc0] sm:$0xff] }
  0xe9   : > { %2284 = vperm.xlu2 %4429, %v2148_v12   ;;  %v2153_v12 = vld [vmem:[%s7999_s6 + $0xe8] sm:$0xff] }
  0xea   : > { %v5324_v13 = vpop.f32.mrf.mxu0  ;;  %v852_v14 = vpop.f32.mrf.mxu1 }
  0xeb   : > { %4229 = vmatmul.msk.f32.gmra.mxu2 %vm981_vm1, %v406_v9  ;;  %4280 = vmatmul.msk.f32.gmra.mxu3 %vm981_vm1, %v406_v9  ;;  %v1344_v19 = vadd.f32 %v1343_v4, %v852_v14  ;;  %v2152_v9 = vld [vmem:[%s7999_s6 + $0xe0] sm:$0xff] }
  0xed   : > { %v5340_v32 = vadd.f32 %v5337_v26, %v1344_v19  ;;  %4126 = vmatmul.msk.f32.gmra.mxu0 %vm491_vm2, %v459_v18  ;;  %4177 = vmatmul.msk.f32.gmra.mxu1 %vm491_vm2, %v459_v18 }
  0xee   : > { %v1179_v33 = vpop.f32.mrf.mxu2  ;;  %v1346_v36 = vpop.f32.mrf.mxu3  ;;  %2289 = vperm.xlu0 %4427, %v2149_v24   ;;  %2294 = vperm.xlu1 %4428, %v2150_v25   ;;  %v408_v24 = vld [vmem:[%s7995_s2 + $0xd0] sm:$0xff] }
  0xef   : > { %8114 = vst [vmem:[#allocation26_spill] sm:$0xff] %v5340_v32  ;;  %v2154_v25 = vld [vmem:[%s7999_s6 + $0xf0] sm:$0xff] }
  0xf1   : > { %2299 = vperm.xlu2 %4429, %v2151_v41  }
  0xf2   : > { %v688_v52 = vpop.f32.mrf.mxu0  ;;  %v855_v61 = vpop.f32.mrf.mxu1 }
  0xf3   : > { %4230 = vmatmul.msk.f32.gmra.mxu2 %vm981_vm1, %v407_v40  ;;  %4281 = vmatmul.msk.f32.gmra.mxu3 %vm981_vm1, %v407_v40  ;;  %v5357_v2 = vadd.f32 %v1179_v33, %v688_v52  ;;  %v1347_v4 = vadd.f32 %v1346_v36, %v855_v61  ;;  %v461_v40 = vld [vmem:[%s7996_s3 + $0xc8] sm:$0xff]  ;;  %v2155_v52 = vld [vmem:[%s7999_s6 + $0xf8] sm:$0xff]  ;;  %v2156_v61 = vld [vmem:[%s7999_s6 + $0x100] sm:$0xff] }
  0xf5   : > { %v5366_v14 = vadd.f32 %v5295_v55, %v1347_v4  ;;  %4127 = vmatmul.msk.f32.gmra.mxu0 %vm491_vm2, %v460_v62  ;;  %4178 = vmatmul.msk.f32.gmra.mxu1 %vm491_vm2, %v460_v62  ;;  %v5391_v62 = vpop.permute.xlu1 %1644 }
  0xf6   : > { %v5370_v18 = vpop.f32.mrf.mxu2  ;;  %v1349_v19 = vpop.f32.mrf.mxu3  ;;  %2304 = vperm.xlu0 %4427, %v2152_v9   ;;  %2309 = vperm.xlu1 %4428, %v2153_v12   ;;  %8117 = vst [vmem:[#allocation29_spill] sm:$0xff] %v5391_v62 }
  0xf7   : > { %8116 = vst [vmem:[#allocation28_spill] sm:$0xff] %v5366_v14  ;;  %v414_v14 = vld [vmem:[%s7995_s2 + $0x100] sm:$0xff] }
  0xf9   : > { %2314 = vperm.xlu2 %4429, %v2154_v25  }
  0xfa   : > { %v5378_v33 = vpop.f32.mrf.mxu0  ;;  %v858_v36 = vpop.f32.mrf.mxu1 }
  0xfb   : > { %4231 = vmatmul.msk.f32.gmra.mxu2 %vm981_vm1, %v408_v24  ;;  %4282 = vmatmul.msk.f32.gmra.mxu3 %vm981_vm1, %v408_v24  ;;  %v1350_v41 = vadd.f32 %v1349_v19, %v858_v36  ;;  %v409_v19 = vld [vmem:[%s7995_s2 + $0xd8] sm:$0xff]  ;;  %v2157_v24 = vld [vmem:[%s7999_s6 + $0x108] sm:$0xff] }
  0xfd   : > { %v5394_v4 = vadd.f32 %v5258_v30, %v1350_v41  ;;  %4128 = vmatmul.msk.f32.gmra.mxu0 %vm491_vm2, %v461_v40  ;;  %4179 = vmatmul.msk.f32.gmra.mxu1 %vm491_vm2, %v461_v40  ;;  %v462_v40 = vld [vmem:[%s7996_s3 + $0xd0] sm:$0xff] }
  0xfe   : > { %v5398_v9 = vpop.f32.mrf.mxu2  ;;  %v1352_v12 = vpop.f32.mrf.mxu3  ;;  %2319 = vperm.xlu0 %4427, %v2155_v52   ;;  %2324 = vperm.xlu1 %4428, %v2156_v61   ;;  %v2158_v52 = vld [vmem:[%s7999_s6 + $0x110] sm:$0xff]  ;;  %v2159_v61 = vld [vmem:[%s7999_s6 + $0x118] sm:$0xff] }
  0xff   : > { %8118 = vst [vmem:[#allocation30_spill] sm:$0xff] %v5394_v4 }
 0x101   : > { %2329 = vperm.xlu2 %4429, %v2157_v24   ;;  %v2160_v24 = vld [vmem:[%s7999_s6 + $0x120] sm:$0xff] }
 0x102   : > { %v5406_v25 = vpop.f32.mrf.mxu0  ;;  %v861_v36 = vpop.f32.mrf.mxu1 }
 0x103   : > { %4232 = vmatmul.msk.f32.gmra.mxu2 %vm981_vm1, %v409_v19  ;;  %4283 = vmatmul.msk.f32.gmra.mxu3 %vm981_vm1, %v409_v19  ;;  %v1353_v41 = vadd.f32 %v1352_v12, %v861_v36  ;;  %v5426_v12 = vpop.permute.xlu1 %1639  ;;  %v410_v36 = vld [vmem:[%s7995_s2 + $0xe0] sm:$0xff] }
 0x104   : > { %8119 = vst [vmem:[#allocation31_spill] sm:$0xff] %v5426_v12  ;;  %v3591_v12 = vld [vmem:[%s8000_s7] sm:$0xff] }
 0x105   : > { %v5420_v31 = vadd.f32 %v5221_v15, %v1353_v41  ;;  %4129 = vmatmul.msk.f32.gmra.mxu0 %vm491_vm2, %v462_v40  ;;  %4180 = vmatmul.msk.f32.gmra.mxu1 %vm491_vm2, %v462_v40  ;;  %v463_v40 = vld [vmem:[%s7996_s3 + $0xd8] sm:$0xff] }
 0x106   : > { %v5424_v20 = vpop.f32.mrf.mxu2  ;;  %v1355_v19 = vpop.f32.mrf.mxu3  ;;  %2334 = vperm.xlu0 %4427, %v2158_v52   ;;  %2339 = vperm.xlu1 %4428, %v2159_v61   ;;  %v2161_v61 = vld [vmem:[%s7999_s6 + $0x128] sm:$0xf] }
 0x109   : > { %2344 = vperm.xlu2 %4429, %v2160_v24  }
 0x10a   : > { %v5434_v41 = vpop.f32.mrf.mxu0  ;;  %v864_v62 = vpop.f32.mrf.mxu1 }
 0x10b   : > { %4233 = vmatmul.msk.f32.gmra.mxu2 %vm981_vm1, %v410_v36  ;;  %4284 = vmatmul.msk.f32.gmra.mxu3 %vm981_vm1, %v410_v36  ;;  %v5441_v52 = vadd.f32 %v1355_v19, %v864_v62  ;;  %v5455_v62 = vpop.permute.xlu0 %1554  ;;  %v411_v19 = vld [vmem:[%s7995_s2 + $0xe8] sm:$0xff]  ;;  %v5463_v24 = vpop.permute.xlu1 %1634 }
 0x10c   : > { %v3592_v36 = vld [vmem:[%s8000_s7 + $0x8] sm:$0xff]  ;;  %8120 = vst [vmem:[#allocation32_spill] sm:$0xff] %v5463_v24  ;;  %v3594_v24 = vld [vmem:[%s8000_s7 + $0x18] sm:$0xff] }
 0x10d   : > { %4130 = vmatmul.msk.f32.gmra.mxu0 %vm491_vm2, %v463_v40  ;;  %4181 = vmatmul.msk.f32.gmra.mxu1 %vm491_vm2, %v463_v40 }
 0x10e   : > { %v5451_v51 = vpop.f32.mrf.mxu2  ;;  %v5453_v8 = vpop.f32.mrf.mxu3  ;;  %2349 = vperm.xlu0 %4427, %v2161_v61   ;;  %3631 = vperm.xlu1 %4428, %v3591_v12   ;;  %v464_v12 = vld [vmem:[%s7996_s3 + $0xe0] sm:$0xff]  ;;  %v3593_v61 = vld [vmem:[%s8000_s7 + $0x10] sm:$0xff] }
 0x111   : > { %3636 = vperm.xlu2 %4429, %v3592_v36  }
 0x112   : > { %v5465_v45 = vpop.f32.mrf.mxu0  ;;  %v5467_v40 = vpop.f32.mrf.mxu1 }
 0x113   : > { %4234 = vmatmul.msk.f32.gmra.mxu2 %vm981_vm1, %v411_v19  ;;  %4285 = vmatmul.msk.f32.gmra.mxu3 %vm981_vm1, %v411_v19  ;;  %v412_v19 = vld [vmem:[%s7995_s2 + $0xf0] sm:$0xff]  ;;  %v5490_v39 = vpop.permute.xlu0 %1549  ;;  %v5505_v49 = vpop.permute.xlu1 %1629 }
 0x114   : > { %8121 = vst [vmem:[#allocation33_spill] sm:$0xff] %v5505_v49 }
 0x115   : > { %4131 = vmatmul.msk.f32.gmra.mxu0 %vm491_vm2, %v464_v12  ;;  %4182 = vmatmul.msk.f32.gmra.mxu1 %vm491_vm2, %v464_v12  ;;  %v465_v12 = vld [vmem:[%s7996_s3 + $0xe8] sm:$0xff] }
 0x116   : > { %v1194_v21 = vpop.f32.mrf.mxu2  ;;  %v5482_v7 = vpop.f32.mrf.mxu3  ;;  %3641 = vperm.xlu0 %4427, %v3593_v61   ;;  %3646 = vperm.xlu1 %4428, %v3594_v24   ;;  %v3596_v24 = vld [vmem:[%s8000_s7 + $0x28] sm:$0xff]  ;;  %v3597_v61 = vld [vmem:[%s8000_s7 + $0x30] sm:$0xff] }
 0x119   : > { %3651 = vperm.xlu2 %4429, %v3595_v58  }
 0x11a   : > { %v703_v36 = vpop.f32.mrf.mxu0  ;;  %v5492_v44 = vpop.f32.mrf.mxu1 }
 0x11b   : > { %4235 = vmatmul.msk.f32.gmra.mxu2 %vm981_vm1, %v412_v19  ;;  %4286 = vmatmul.msk.f32.gmra.mxu3 %vm981_vm1, %v412_v19  ;;  %v413_v19 = vld [vmem:[%s7995_s2 + $0xf8] sm:$0xff]  ;;  %v5530_v49 = vpop.permute.xlu0 %1544 }
 0x11d   : > { %4132 = vmatmul.msk.f32.gmra.mxu0 %vm491_vm2, %v465_v12  ;;  %4183 = vmatmul.msk.f32.gmra.mxu1 %vm491_vm2, %v465_v12  ;;  %v466_v12 = vld [vmem:[%s7996_s3 + $0xf0] sm:$0xff] }
 0x11e   : > { %v1197_v54 = vpop.f32.mrf.mxu2  ;;  %v5509_v60 = vpop.f32.mrf.mxu3  ;;  %3656 = vperm.xlu0 %4427, %v3596_v24   ;;  %3661 = vperm.xlu1 %4428, %v3597_v61   ;;  %v3599_v24 = vld [vmem:[%s8000_s7 + $0x40] sm:$0xff]  ;;  %v3600_v61 = vld [vmem:[%s8000_s7 + $0x48] sm:$0xff] }
 0x121   : > { %3666 = vperm.xlu2 %4429, %v3598_v1   ;;  %v3601_v1 = vld [vmem:[%s8000_s7 + $0x50] sm:$0xff] }
 0x122   : > { %v706_v58 = vpop.f32.mrf.mxu0  ;;  %v5517_v6 = vpop.f32.mrf.mxu1 }
 0x123   : > { %4236 = vmatmul.msk.f32.gmra.mxu2 %vm981_vm1, %v413_v19  ;;  %4287 = vmatmul.msk.f32.gmra.mxu3 %vm981_vm1, %v413_v19  ;;  %v5536_v19 = vpop.permute.xlu1 %1624  ;;  %v1198_v23 = vadd.f32 %v1197_v54, %v706_v58  ;;  %v3603_v54 = vld [vmem:[%s8000_s7 + $0x60] sm:$0xff]  ;;  %v1195_v58 = vadd.f32 %v1194_v21, %v703_v36  ;;  %v5569_v35 = vpop.permute.xlu0 %1539  ;;  %v415_v36 = vld [vmem:[%s7995_s2 + $0x108] sm:$0xff] }
 0x124   : > { %8122 = vst [vmem:[#allocation34_spill] sm:$0xff] %v5536_v19  ;;  %v3602_v19 = vld [vmem:[%s8000_s7 + $0x58] sm:$0xff] }
 0x125   : > { %4133 = vmatmul.msk.f32.gmra.mxu0 %vm491_vm2, %v466_v12  ;;  %4184 = vmatmul.msk.f32.gmra.mxu1 %vm491_vm2, %v466_v12 }
 0x126   : > { %v1200_v11 = vpop.f32.mrf.mxu2  ;;  %v5534_v32 = vpop.f32.mrf.mxu3  ;;  %3671 = vperm.xlu0 %4427, %v3599_v24   ;;  %3676 = vperm.xlu1 %4428, %v3600_v61   ;;  %v467_v24 = vld [vmem:[%s7996_s3 + $0xf8] sm:$0xff] }
 0x129   : > { %3681 = vperm.xlu2 %4429, %v3601_v1   ;;  %v1189_v1 = vadd.f32 %v5424_v20, %v5434_v41  ;;  %v468_v20 = vld [vmem:[%s7996_s3 + $0x100] sm:$0xff] }
 0x12a   : > { %v709_v4 = vpop.f32.mrf.mxu0  ;;  %v5546_v12 = vpop.f32.mrf.mxu1 }
 0x12b   : > { %4237 = vmatmul.msk.f32.gmra.mxu2 %vm981_vm1, %v414_v14  ;;  %4288 = vmatmul.msk.f32.gmra.mxu3 %vm981_vm1, %v414_v14  ;;  %v1201_v61 = vadd.f32 %v1200_v11, %v709_v4  ;;  %v1800_v11 = vadd.f32 %v5115_v42, %v1198_v23  ;;  %v1192_v4 = vadd.f32 %v5451_v51, %v5465_v45  ;;  %v3604_v23 = vld [vmem:[%s8000_s7 + $0x68] sm:$0xff] }
 0x12d   : > { %4134 = vmatmul.msk.f32.gmra.mxu0 %vm491_vm2, %v467_v24  ;;  %4185 = vmatmul.msk.f32.gmra.mxu1 %vm491_vm2, %v467_v24  ;;  %v1802_v17 = vadd.f32 %v5067_v27, %v1201_v61  ;;  %v1798_v24 = vadd.f32 %v5101_v37, %v1195_v58  ;;  %v5580_v61 = vpop.permute.xlu1 %1619  ;;  %v1900_v45 = vmax.f32 %v1800_v11, 0.0  ;;  %v1796_v41 = vadd.f32 %v5138_v50, %v1192_v4 }
 0x12e   : > { %v5562_v29 = vpop.f32.mrf.mxu2  ;;  %v5564_v14 = vpop.f32.mrf.mxu3  ;;  %3686 = vperm.xlu0 %4427, %v3602_v19   ;;  %3691 = vperm.xlu1 %4428, %v3603_v54   ;;  %v3605_v54 = vld [vmem:[%s8000_s7 + $0x70] sm:$0xff]  ;;  %v1794_v11 = vadd.f32 %v5175_v63, %v1189_v1  ;;  %v1177_v1 = vadd.f32 %v5314_v3, %v5324_v13  ;;  %v469_v3 = vld [vmem:[%s7996_s3 + $0x108] sm:$0xff] }
 0x12f   : > { %8124 = vst [vmem:[#allocation36_spill] sm:$0xff] %v5564_v14  ;;  %v1902_v21 = vmax.f32 %v1802_v17, 0.0  ;;  %v1186_v17 = vadd.f32 %v5398_v9, %v5406_v25  ;;  %v5597_v9 = vpop.permute.xlu2 %1749  ;;  %v1183_v25 = vadd.f32 %v5370_v18, %v5378_v33  ;;  %v1898_v58 = vmax.f32 %v1798_v24, 0.0  ;;  %v416_v33 = vld [vmem:[%s7995_s2 + $0x110] sm:$0xff]  ;;  %v3608_v13 = vld [vmem:[%s8000_s7 + $0x88] sm:$0xff] }
 0x130   : > { %8126 = vst [vmem:[#allocation38_spill] sm:$0xff] %v5597_v9  ;;  %v1894_v24 = vmax.f32 %v1794_v11, 0.0  ;;  %v3609_v11 = vld [vmem:[%s8000_s7 + $0x90] sm:$0xff] }
 0x131   : > { %2467 = vmatpush.msrb.mxu0 %v1902_v21  ;;  %3696 = vperm.xlu2 %4429, %v3604_v23   ;;  %v3606_v21 = vld [vmem:[%s8000_s7 + $0x78] sm:$0xff]  ;;  %v1896_v23 = vmax.f32 %v1796_v41, 0.0  ;;  %v1792_v18 = vadd.f32 %v5221_v15, %v1186_v17  ;;  %v1174_v15 = vadd.f32 %v5285_v46, %v5297_v56 }
 0x132   : > { %v5584_v51 = vpop.f32.mrf.mxu0  ;;  %v5586_v19 = vpop.f32.mrf.mxu1 }
 0x133   : > { %8125 = vst [vmem:[#allocation37_spill] sm:$0xff] %v5586_v19  ;;  %4238 = vmatmul.msk.f32.gmra.mxu2 %vm981_vm1, %v415_v36  ;;  %4289 = vmatmul.msk.f32.gmra.mxu3 %vm981_vm1, %v415_v36 }
 0x134   : > { %2468 = vmatpush.msrb.mxu0 %v1900_v45  ;;  %v1790_v45 = vadd.f32 %v5258_v30, %v1183_v25  ;;  %v1788_v30 = vadd.f32 %v5295_v55, %v5357_v2  ;;  %v1786_v25 = vadd.f32 %v5337_v26, %v1177_v1  ;;  %v417_v26 = vld [vmem:[%s7995_s2 + $0x118] sm:$0xff]  ;;  %v1168_v1 = vadd.f32 %v5225_v16, %v5237_v22  ;;  %v470_v16 = vld [vmem:[%s7996_s3 + $0x110] sm:$0xff] }
 0x135   : > { %4135 = vmatmul.msk.f32.gmra.mxu0 %vm491_vm2, %v468_v20  ;;  %4186 = vmatmul.msk.f32.gmra.mxu1 %vm491_vm2, %v468_v20  ;;  %v3607_v20 = vld [vmem:[%s8000_s7 + $0x80] sm:$0xff]  ;;  %v1615_v46 = vpop.permute.xlu1 %1614 }
 0x136   : > { %v5607_v4 = vpop.f32.mrf.mxu2  ;;  %v5609_v36 = vpop.f32.mrf.mxu3  ;;  %2469 = vmatpush.msrb.mxu0 %v1898_v58  ;;  %3701 = vperm.xlu0 %4427, %v3605_v54   ;;  %v1892_v58 = vmax.f32 %v1792_v18, 0.0  ;;  %v1890_v56 = vmax.f32 %v1790_v45, 0.0  ;;  %v1784_v18 = vadd.f32 %v5455_v62, %v1174_v15  ;;  %v1886_v45 = vmax.f32 %v1786_v25, 0.0 }
 0x137   : > { %8127 = vst [vmem:[#allocation39_spill] sm:$0xff] %v5609_v36  ;;  %3706 = vperm.xlu1 %4428, %v3606_v21   ;;  %v5621_v54 = vpop.permute.xlu0 %1534  ;;  %v1171_v21 = vadd.f32 %v5254_v28, %v5266_v34  ;;  %v3610_v28 = vld [vmem:[%s8000_s7 + $0x98] sm:$0xff]  ;;  %v1165_v34 = vadd.f32 %v5194_v5, %v5206_v10  ;;  %v1162_v5 = vadd.f32 %v5165_v59, %v5177_v0 }
 0x138   : > { %2470 = vmatpush.msrb.mxu0 %v1896_v23  ;;  %v1888_v23 = vmax.f32 %v1788_v30, 0.0 }
 0x139   : > { %3711 = vperm.xlu2 %4429, %v3607_v20   ;;  %v1780_v20 = vadd.f32 %v5530_v49, %v1168_v1  ;;  %v1778_v10 = vadd.f32 %v5569_v35, %v1165_v34  ;;  %v418_v1 = vld [vmem:[%s7995_s2 + $0x120] sm:$0xff] }
 0x13a   : > { %2471 = vmatpush.msrb.mxu0 %v1894_v24  ;;  %v5625_v17 = vpop.f32.mrf.mxu0  ;;  %v5627_v41 = vpop.f32.mrf.mxu1  ;;  %v1782_v24 = vadd.f32 %v5490_v39, %v1171_v21 }
 0x13b   : > { %8128 = vst [vmem:[#allocation40_spill] sm:$0xff] %v5627_v41  ;;  %4239 = vmatmul.msk.f32.gmra.mxu2 %vm981_vm1, %v416_v33  ;;  %4290 = vmatmul.msk.f32.gmra.mxu3 %vm981_vm1, %v416_v33  ;;  %v5648_v33 = vpop.permute.xlu2 %1744  ;;  %v8160_v41 = vld [vmem:[#allocation35_spill] sm:$0xff] }
 0x13c   : > { %2472 = vmatpush.msrb.mxu0 %v1892_v58  ;;  %8129 = vst [vmem:[#allocation41_spill] sm:$0xff] %v5648_v33  ;;  %v1882_v25 = vmax.f32 %v1782_v24, 0.0  ;;  %v3613_v24 = vld [vmem:[%s8000_s7 + $0xb0] sm:$0xff]  ;;  %v430_v33 = vld [vmem:[%s7995_s2 + $0x180] sm:$0xff] }
 0x13d   : > { %4136 = vmatmul.msk.f32.gmra.mxu0 %vm491_vm2, %v469_v3  ;;  %4187 = vmatmul.msk.f32.gmra.mxu1 %vm491_vm2, %v469_v3  ;;  %v1884_v3 = vmax.f32 %v1784_v18, 0.0  ;;  %v1776_v18 = vadd.f32 %v5621_v54, %v1162_v5  ;;  %v3616_v5 = vld [vmem:[%s8000_s7 + $0xc8] sm:$0xff] }
 0x13e   : > { %v1209_v55 = vpop.f32.mrf.mxu2  ;;  %v1376_v2 = vpop.f32.mrf.mxu3  ;;  %2473 = vmatpush.msrb.mxu0 %v1890_v56  ;;  %3716 = vperm.xlu0 %4427, %v3608_v13   ;;  %v3611_v13 = vld [vmem:[%s8000_s7 + $0xa0] sm:$0xff] }
 0x13f   : > { %3721 = vperm.xlu1 %4428, %v3609_v11   ;;  %v5673_v56 = vpop.permute.xlu0 %1529  ;;  %v3612_v11 = vld [vmem:[%s8000_s7 + $0xa8] sm:$0xff] }
 0x140   : > { %2474 = vmatpush.msrb.mxu0 %v1888_v23  ;;  %v1159_v23 = vadd.f32 %v5134_v48, %v5146_v53  ;;  %v1878_v53 = vmax.f32 %v1778_v10, 0.0 }
 0x141   : > { %3726 = vperm.xlu2 %4429, %v3610_v28   ;;  %v1362_v28 = vadd.f32 %v5482_v7, %v5492_v44  ;;  %v1359_v44 = vadd.f32 %v5453_v8, %v5467_v40  ;;  %v419_v40 = vld [vmem:[%s7995_s2 + $0x128] sm:$0xff] }
 0x142   : > { %2475 = vmatpush.msrb.mxu0 %v1886_v45  ;;  %v718_v15 = vpop.f32.mrf.mxu0  ;;  %v885_v58 = vpop.f32.mrf.mxu1  ;;  %v1774_v48 = vadd.f32 %v5673_v56, %v1159_v23 }
 0x143   : > { %4240 = vmatmul.msk.f32.gmra.mxu2 %vm981_vm1, %v417_v26  ;;  %v1210_v22 = vadd.f32 %v1209_v55, %v718_v15  ;;  %v1377_v30 = vadd.f32 %v1376_v2, %v885_v58  ;;  %4291 = vmatmul.msk.f32.gmra.mxu3 %vm981_vm1, %v417_v26  ;;  %v1368_v55 = vadd.f32 %v5534_v32, %v5546_v12  ;;  %v1880_v32 = vmax.f32 %v1780_v20, 0.0  ;;  %v5693_v12 = vpop.permute.xlu1 %1524  ;;  %v5706_v45 = vpop.permute.xlu2 %1739  ;;  %v471_v20 = vld [vmem:[%s7996_s3 + $0x118] sm:$0xff]  ;;  %v3615_v58 = vld [vmem:[%s8000_s7 + $0xc0] sm:$0xff] }
 0x144   : > { %2476 = vmatpush.msrb.mxu0 %v1884_v3  ;;  %v1365_v26 = vadd.f32 %v5509_v60, %v5517_v6  ;;  %8132 = vst [vmem:[#allocation44_spill] sm:$0xff] %v5706_v45  ;;  %v1874_v7 = vmax.f32 %v1774_v48, 0.0  ;;  %v1893_v48 = vmax.f32 %v5420_v31, 0.0 }
 0x145   : > { %v5680_v2 = vadd.f32 %v1615_v46, %v1377_v30  ;;  %4137 = vmatmul.msk.f32.gmra.mxu0 %vm491_vm2, %v470_v16  ;;  %4188 = vmatmul.msk.f32.gmra.mxu1 %vm491_vm2, %v470_v16  ;;  %v5688_v21 = vadd.f32 %v1615_v46, %v1210_v22  ;;  %v1156_v46 = vadd.f32 %v5105_v38, %v5117_v43  ;;  %v1876_v43 = vmax.f32 %v1776_v18, 0.0 }
 0x146   : > { %v5684_v59 = vpop.f32.mrf.mxu2  ;;  %v5686_v0 = vpop.f32.mrf.mxu3  ;;  %2477 = vmatpush.msrb.mxu0 %v1882_v25  ;;  %3731 = vperm.xlu0 %4427, %v3611_v13   ;;  %v1803_v60 = vadd.f32 %v5067_v27, %v1368_v55  ;;  %v1801_v15 = vadd.f32 %v5115_v42, %v1365_v26  ;;  %v3614_v27 = vld [vmem:[%s8000_s7 + $0xb8] sm:$0xff]  ;;  %v1799_v22 = vadd.f32 %v5101_v37, %v1362_v28  ;;  %v3617_v55 = vld [vmem:[%s8000_s7 + $0xd0] sm:$0xff] }
 0x147   : > { %8130 = vst [vmem:[#allocation42_spill] sm:$0xff] %v5680_v2  ;;  %3736 = vperm.xlu1 %4428, %v3612_v11   ;;  %v1772_v6 = vadd.f32 %v5693_v12, %v1156_v46  ;;  %v1797_v13 = vadd.f32 %v5138_v50, %v1359_v44  ;;  %v1795_v37 = vadd.f32 %v5175_v63, %v5441_v52  ;;  %v472_v11 = vld [vmem:[%s7996_s3 + $0x120] sm:$0xff]  ;;  %v3618_v52 = vld [vmem:[%s8000_s7 + $0xd8] sm:$0xff] }
 0x148   : > { %8131 = vst [vmem:[#allocation43_spill] sm:$0xff] %v5686_v0  ;;  %2478 = vmatpush.msrb.mxu0 %v1880_v32  ;;  %v1903_v3 = vmax.f32 %v1803_v60, 0.0  ;;  %v1901_v30 = vmax.f32 %v1801_v15, 0.0  ;;  %v1899_v50 = vmax.f32 %v1799_v22, 0.0  ;;  %v1341_v46 = vadd.f32 %v5287_v47, %v5299_v57  ;;  %v8138_v60 = vld [vmem:[#allocation22_spill] sm:$0xff]  ;;  %v8140_v15 = vld [vmem:[#allocation21_spill] sm:$0xff] }
 0x149   : > { %3741 = vperm.xlu2 %4429, %v3613_v24   ;;  %v1872_v8 = vmax.f32 %v1772_v6, 0.0  ;;  %v1897_v63 = vmax.f32 %v1797_v13, 0.0  ;;  %v1895_v26 = vmax.f32 %v1795_v37, 0.0  ;;  %v8137_v24 = vld [vmem:[#allocation23_spill] sm:$0xff]  ;;  %v8139_v47 = vld [vmem:[#allocation30_spill] sm:$0xff]  ;;  %v421_v37 = vld [vmem:[%s7995_s2 + $0x138] sm:$0xff] }
 0x14a   : > { %2479 = vmatpush.msrb.mxu0 %v1878_v53  ;;  %v5712_v34 = vpop.f32.mrf.mxu0  ;;  %v5714_v38 = vpop.f32.mrf.mxu1  ;;  %v3619_v53 = vld [vmem:[%s8000_s7 + $0xe0] sm:$0xff]  ;;  %v1338_v6 = vadd.f32 %v8138_v60, %v8137_v24  ;;  %v1891_v31 = vmax.f32 %v8139_v47, 0.0  ;;  %v3620_v57 = vld [vmem:[%s8000_s7 + $0xe8] sm:$0xff]  ;;  %v3621_v22 = vld [vmem:[%s8000_s7 + $0xf0] sm:$0xff] }
 0x14b   : > { %8133 = vst [vmem:[#allocation45_spill] sm:$0xff] %v5714_v38  ;;  %4241 = vmatmul.msk.f32.gmra.mxu2 %vm981_vm1, %v418_v1  ;;  %4292 = vmatmul.msk.f32.gmra.mxu3 %vm981_vm1, %v418_v1  ;;  %v5758_v23 = vpop.permute.xlu2 %1734  ;;  %v420_v1 = vld [vmem:[%s7995_s2 + $0x130] sm:$0xff]  ;;  %v8162_v0 = vld [vmem:[#allocation13_spill] sm:$0xff] }
 0x14c   : > { %2480 = vmatpush.msrb.mxu0 %v1876_v43  ;;  %8136 = vst [vmem:[#allocation48_spill] sm:$0xff] %v5758_v23  ;;  %v474_v60 = vld [vmem:[%s7996_s3 + $0x130] sm:$0xff] }
 0x14d   : > { %4138 = vmatmul.msk.f32.gmra.mxu0 %vm491_vm2, %v471_v20  ;;  %4189 = vmatmul.msk.f32.gmra.mxu1 %vm491_vm2, %v471_v20  ;;  %v473_v20 = vld [vmem:[%s7996_s3 + $0x128] sm:$0xff] }
 0x14e   : > { %v5732_v42 = vpop.f32.mrf.mxu2  ;;  %v5734_v16 = vpop.f32.mrf.mxu3  ;;  %2481 = vmatpush.msrb.mxu0 %v1874_v7  ;;  %3746 = vperm.xlu0 %4427, %v3614_v27   ;;  %v8141_v27 = vld [vmem:[#allocation19_spill] sm:$0xff]  ;;  %v1785_v7 = vadd.f32 %v5455_v62, %v1341_v46  ;;  %v8143_v62 = vld [vmem:[#allocation26_spill] sm:$0xff] }
 0x14f   : > { %8134 = vst [vmem:[#allocation46_spill] sm:$0xff] %v5734_v16  ;;  %3751 = vperm.xlu1 %4428, %v3615_v58   ;;  %v1335_v44 = vadd.f32 %v8141_v27, %v8140_v15  ;;  %v8142_v58 = vld [vmem:[#allocation28_spill] sm:$0xff]  ;;  %v1887_v13 = vmax.f32 %v8143_v62, 0.0  ;;  %v3624_v15 = vld [vmem:[%s8000_s7 + $0x108] sm:$0xff] }
 0x150   : > { %2482 = vmatpush.msrb.mxu0 %v1872_v8 }
 0x151   : > { %3756 = vperm.xlu2 %4429, %v3616_v5  }
 0x152   : > { %2991 = vmatpush.msra.mxu0 %v1903_v3  ;;  %v5746_v10 = vpop.f32.mrf.mxu0  ;;  %v5748_v25 = vpop.f32.mrf.mxu1  ;;  %v1889_v3 = vmax.f32 %v8142_v58, 0.0  ;;  %v8152_v58 = vld [vmem:[#allocation9_spill] sm:$0xff] }
 0x153   : > { %8135 = vst [vmem:[#allocation47_spill] sm:$0xff] %v5748_v25  ;;  %4242 = vmatmul.msk.f32.gmra.mxu2 %vm981_vm1, %v419_v40  ;;  %4293 = vmatmul.msk.f32.gmra.mxu3 %vm981_vm1, %v419_v40  ;;  %v5808_v5 = vpop.permute.xlu2 %1729 }
 0x154   : > { %2992 = vmatpush.msra.mxu0 %v1901_v30  ;;  %v1783_v30 = vadd.f32 %v5490_v39, %v1338_v6  ;;  %8144 = vst [vmem:[#allocation23_spill] sm:$0xff] %v5808_v5  ;;  %v3622_v39 = vld [vmem:[%s8000_s7 + $0xf8] sm:$0xff] }
 0x155   : > { %4139 = vmatmul.msk.f32.gmra.mxu0 %vm491_vm2, %v472_v11  ;;  %4190 = vmatmul.msk.f32.gmra.mxu1 %vm491_vm2, %v472_v11  ;;  %v8145_v11 = vld [vmem:[#allocation18_spill] sm:$0xff]  ;;  %v8149_v6 = vld [vmem:[#allocation12_spill] sm:$0xff] }
 0x156   : > { %v5765_v18 = vpop.f32.mrf.mxu2  ;;  %v5767_v32 = vpop.f32.mrf.mxu3  ;;  %3761 = vperm.xlu0 %4427, %v3617_v55   ;;  %2993 = vmatpush.msra.mxu0 %v1899_v50  ;;  %v8146_v50 = vld [vmem:[#allocation16_spill] sm:$0xff] }
 0x157   : > { %3766 = vperm.xlu1 %4428, %v3618_v52   ;;  %v1332_v55 = vadd.f32 %v8146_v50, %v8145_v11  ;;  %v1885_v52 = vmax.f32 %v1785_v7, 0.0  ;;  %v8151_v7 = vld [vmem:[#allocation10_spill] sm:$0xff]  ;;  %v429_v5 = vld [vmem:[%s7995_s2 + $0x178] sm:$0xff] }
 0x158   : > { %2994 = vmatpush.msra.mxu0 %v1897_v63  ;;  %v1781_v63 = vadd.f32 %v5530_v49, %v1335_v44  ;;  %v3623_v49 = vld [vmem:[%s8000_s7 + $0x100] sm:$0xff] }
 0x159   : > { %3771 = vperm.xlu2 %4429, %v3619_v53  }
 0x15a   : > { %v5780_v28 = vpop.f32.mrf.mxu0  ;;  %v5782_v43 = vpop.f32.mrf.mxu1  ;;  %2995 = vmatpush.msra.mxu0 %v1895_v26  ;;  %v8147_v26 = vld [vmem:[#allocation15_spill] sm:$0xff] }
 0x15b   : > { %4243 = vmatmul.msk.f32.gmra.mxu2 %vm981_vm1, %v420_v1  ;;  %4294 = vmatmul.msk.f32.gmra.mxu3 %vm981_vm1, %v420_v1  ;;  %v8148_v1 = vld [vmem:[#allocation14_spill] sm:$0xff] }
 0x15c   : > { %2996 = vmatpush.msra.mxu0 %v1893_v48  ;;  %v1329_v46 = vadd.f32 %v8148_v1, %v8147_v26  ;;  %v1883_v48 = vmax.f32 %v1783_v30, 0.0 }
 0x15d   : > { %4140 = vmatmul.msk.f32.gmra.mxu0 %vm491_vm2, %v473_v20  ;;  %4191 = vmatmul.msk.f32.gmra.mxu1 %vm491_vm2, %v473_v20  ;;  %v8150_v20 = vld [vmem:[#allocation11_spill] sm:$0xff] }
 0x15e   : > { %v5802_v8 = vpop.f32.mrf.mxu2  ;;  %v5804_v40 = vpop.f32.mrf.mxu3  ;;  %3776 = vperm.xlu0 %4427, %v3620_v57   ;;  %2997 = vmatpush.msra.mxu0 %v1891_v31  ;;  %v1326_v47 = vadd.f32 %v8150_v20, %v8149_v6  ;;  %v1881_v31 = vmax.f32 %v1781_v63, 0.0  ;;  %v1779_v57 = vadd.f32 %v5569_v35, %v1332_v55  ;;  %v422_v35 = vld [vmem:[%s7995_s2 + $0x140] sm:$0xff]  ;;  %v475_v63 = vld [vmem:[%s7996_s3 + $0x138] sm:$0xff] }
 0x15f   : > { %3781 = vperm.xlu1 %4428, %v3621_v22   ;;  %v1777_v22 = vadd.f32 %v5621_v54, %v1329_v46  ;;  %v423_v46 = vld [vmem:[%s7995_s2 + $0x148] sm:$0xff]  ;;  %v476_v6 = vld [vmem:[%s7996_s3 + $0x140] sm:$0xff] }
 0x160   : > { %2998 = vmatpush.msra.mxu0 %v1889_v3  ;;  %v1323_v3 = vadd.f32 %v8152_v58, %v8151_v7  ;;  %v1879_v30 = vmax.f32 %v1779_v57, 0.0  ;;  %v1775_v62 = vadd.f32 %v5673_v56, %v1326_v47  ;;  %v3626_v56 = vld [vmem:[%s8000_s7 + $0x118] sm:$0xff] }
 0x161   : > { %3786 = vperm.xlu2 %4429, %v3622_v39   ;;  %v1877_v11 = vmax.f32 %v1777_v22, 0.0 }
 0x162   : > { %v5821_v53 = vpop.f32.mrf.mxu0  ;;  %v5823_v24 = vpop.f32.mrf.mxu1  ;;  %2999 = vmatpush.msra.mxu0 %v1887_v13  ;;  %v1773_v54 = vadd.f32 %v5693_v12, %v1323_v3  ;;  %v3627_v12 = vld [vmem:[%s8000_s7 + $0x120] sm:$0xff]  ;;  %v477_v3 = vld [vmem:[%s7996_s3 + $0x148] sm:$0xff] }
 0x163   : > { %4244 = vmatmul.msk.f32.gmra.mxu2 %vm981_vm1, %v421_v37  ;;  %4295 = vmatmul.msk.f32.gmra.mxu3 %vm981_vm1, %v421_v37  ;;  %v5852_v13 = vpop.permute.xlu2 %1724  ;;  %v3625_v37 = vld [vmem:[%s8000_s7 + $0x110] sm:$0xff] }
 0x164   : > { %3000 = vmatpush.msra.mxu0 %v1885_v52  ;;  %8153 = vst [vmem:[#allocation22_spill] sm:$0xff] %v5852_v13  ;;  %v1875_v52 = vmax.f32 %v1775_v62, 0.0  ;;  %v1873_v1 = vmax.f32 %v1773_v54, 0.0  ;;  %v425_v62 = vld [vmem:[%s7995_s2 + $0x158] sm:$0xff]  ;;  %v478_v54 = vld [vmem:[%s7996_s3 + $0x150] sm:$0xff] }
 0x165   : > { %4141 = vmatmul.msk.f32.gmra.mxu0 %vm491_vm2, %v474_v60  ;;  %4192 = vmatmul.msk.f32.gmra.mxu1 %vm491_vm2, %v474_v60 }
 0x166   : > { %v5841_v27 = vpop.f32.mrf.mxu2  ;;  %v5843_v44 = vpop.f32.mrf.mxu3  ;;  %3791 = vperm.xlu0 %4427, %v3623_v49   ;;  %3001 = vmatpush.msra.mxu0 %v1883_v48  ;;  %v3628_v48 = vld [vmem:[%s8000_s7 + $0x128] sm:$0xf] }
 0x167   : > { %3796 = vperm.xlu1 %4428, %v3624_v15   ;;  %v424_v15 = vld [vmem:[%s7995_s2 + $0x150] sm:$0xff] }
 0x168   : > { %3002 = vmatpush.msra.mxu0 %v1881_v31 }
 0x169   : > { %3801 = vperm.xlu2 %4429, %v3625_v37  }
 0x16a   : > { %v5858_v50 = vpop.f32.mrf.mxu0  ;;  %v5860_v55 = vpop.f32.mrf.mxu1  ;;  %3003 = vmatpush.msra.mxu0 %v1879_v30 }
 0x16b   : > { %4245 = vmatmul.msk.f32.gmra.mxu2 %vm981_vm1, %v422_v35  ;;  %4296 = vmatmul.msk.f32.gmra.mxu3 %vm981_vm1, %v422_v35  ;;  %v5892_v47 = vpop.permute.xlu2 %1719 }
 0x16c   : > { %3004 = vmatpush.msra.mxu0 %v1877_v11  ;;  %8154 = vst [vmem:[#allocation30_spill] sm:$0xff] %v5892_v47 }
 0x16d   : > { %4142 = vmatmul.msk.f32.gmra.mxu0 %vm491_vm2, %v475_v63  ;;  %4193 = vmatmul.msk.f32.gmra.mxu1 %vm491_vm2, %v475_v63 }
 0x16e   : > { %v1227_v39 = vpop.f32.mrf.mxu2  ;;  %v5875_v26 = vpop.f32.mrf.mxu3  ;;  %3806 = vperm.xlu0 %4427, %v3626_v56   ;;  %3005 = vmatpush.msra.mxu0 %v1875_v52  ;;  %v426_v52 = vld [vmem:[%s7995_s2 + $0x160] sm:$0xff] }
 0x16f   : > { %3811 = vperm.xlu1 %4428, %v3627_v12  }
 0x170   : > { %3006 = vmatpush.msra.mxu0 %v1873_v1 }
 0x171   : > { %3816 = vperm.xlu2 %4429, %v3628_v48  }
 0x172   : > { %v736_v60 = vpop.f32.mrf.mxu0  ;;  %v5883_v49 = vpop.f32.mrf.mxu1 }
 0x173   : > { %4246 = vmatmul.msk.f32.gmra.mxu2 %vm981_vm1, %v423_v46  ;;  %v5889_v20 = vadd.f32 %v1227_v39, %v736_v60  ;;  %4297 = vmatmul.msk.f32.gmra.mxu3 %vm981_vm1, %v423_v46  ;;  %v5918_v30 = vpop.permute.xlu2 %1714  ;;  %v479_v46 = vld [vmem:[%s7996_s3 + $0x158] sm:$0xff] }
 0x174   : > { %8155 = vst [vmem:[#allocation21_spill] sm:$0xff] %v5918_v30 }
 0x175   : > { %4143 = vmatmul.msk.f32.gmra.mxu0 %vm491_vm2, %v476_v6  ;;  %4194 = vmatmul.msk.f32.gmra.mxu1 %vm491_vm2, %v476_v6  ;;  %v427_v6 = vld [vmem:[%s7995_s2 + $0x168] sm:$0xff] }
 0x176   : > { %v5896_v31 = vpop.f32.mrf.mxu2  ;;  %v5898_v57 = vpop.f32.mrf.mxu3 }
 0x17a   : > { %v5903_v7 = vpop.f32.mrf.mxu0  ;;  %v5905_v58 = vpop.f32.mrf.mxu1 }
 0x17b   : > { %4247 = vmatmul.msk.f32.gmra.mxu2 %vm981_vm1, %v424_v15  ;;  %4298 = vmatmul.msk.f32.gmra.mxu3 %vm981_vm1, %v424_v15  ;;  %v5941_v12 = vpop.permute.xlu2 %1709 }
 0x17c   : > { %8156 = vst [vmem:[#allocation19_spill] sm:$0xff] %v5941_v12  ;;  %v428_v12 = vld [vmem:[%s7995_s2 + $0x170] sm:$0xff] }
 0x17d   : > { %4144 = vmatmul.msk.f32.gmra.mxu0 %vm491_vm2, %v477_v3  ;;  %4195 = vmatmul.msk.f32.gmra.mxu1 %vm491_vm2, %v477_v3 }
 0x17e   : > { %v5914_v22 = vpop.f32.mrf.mxu2  ;;  %v5916_v35 = vpop.f32.mrf.mxu3 }
 0x182   : > { %v5923_v37 = vpop.f32.mrf.mxu0  ;;  %v5925_v11 = vpop.f32.mrf.mxu1 }
 0x183   : > { %4248 = vmatmul.msk.f32.gmra.mxu2 %vm981_vm1, %v425_v62  ;;  %4299 = vmatmul.msk.f32.gmra.mxu3 %vm981_vm1, %v425_v62  ;;  %v480_v62 = vld [vmem:[%s7996_s3 + $0x160] sm:$0xff] }
 0x185   : > { %4145 = vmatmul.msk.f32.gmra.mxu0 %vm491_vm2, %v478_v54  ;;  %4196 = vmatmul.msk.f32.gmra.mxu1 %vm491_vm2, %v478_v54  ;;  %v5964_v54 = vpop.permute.xlu2 %1704 }
 0x186   : > { %v5934_v63 = vpop.f32.mrf.mxu2  ;;  %v5936_v56 = vpop.f32.mrf.mxu3  ;;  %8157 = vst [vmem:[#allocation28_spill] sm:$0xff] %v5964_v54 }
 0x18a   : > { %v745_v39 = vpop.f32.mrf.mxu0  ;;  %v5943_v1 = vpop.f32.mrf.mxu1 }
 0x18b   : > { %4249 = vmatmul.msk.f32.gmra.mxu2 %vm981_vm1, %v426_v52  ;;  %4300 = vmatmul.msk.f32.gmra.mxu3 %vm981_vm1, %v426_v52 }
 0x18d   : > { %4146 = vmatmul.msk.f32.gmra.mxu0 %vm491_vm2, %v479_v46  ;;  %4197 = vmatmul.msk.f32.gmra.mxu1 %vm491_vm2, %v479_v46  ;;  %v5984_v13 = vpop.permute.xlu2 %1699 }
 0x18e   : > { %v1239_v48 = vpop.f32.mrf.mxu2  ;;  %v5952_v60 = vpop.f32.mrf.mxu3  ;;  %8158 = vst [vmem:[#allocation26_spill] sm:$0xff] %v5984_v13 }
 0x192   : > { %v748_v15 = vpop.f32.mrf.mxu0  ;;  %v5957_v3 = vpop.f32.mrf.mxu1 }
 0x193   : > { %4250 = vmatmul.msk.f32.gmra.mxu2 %vm981_vm1, %v427_v6  ;;  %4301 = vmatmul.msk.f32.gmra.mxu3 %vm981_vm1, %v427_v6  ;;  %v481_v6 = vld [vmem:[%s7996_s3 + $0x168] sm:$0xff]  ;;  %v1240_v16 = vadd.f32 %v1239_v48, %v748_v15  ;;  %v8168_v15 = vld [vmem:[#allocation25_spill] sm:$0xff] }
 0x195   : > { %4147 = vmatmul.msk.f32.gmra.mxu0 %vm491_vm2, %v480_v62  ;;  %4198 = vmatmul.msk.f32.gmra.mxu1 %vm491_vm2, %v480_v62  ;;  %v6003_v9 = vpop.permute.xlu2 %1694 }
 0x196   : > { %v1242_v52 = vpop.f32.mrf.mxu2  ;;  %v5968_v46 = vpop.f32.mrf.mxu3  ;;  %8159 = vst [vmem:[#allocation18_spill] sm:$0xff] %v6003_v9 }
 0x19a   : > { %v751_v30 = vpop.f32.mrf.mxu0  ;;  %v5973_v47 = vpop.f32.mrf.mxu1 }
 0x19b   : > { %4251 = vmatmul.msk.f32.gmra.mxu2 %vm981_vm1, %v428_v12  ;;  %4302 = vmatmul.msk.f32.gmra.mxu3 %vm981_vm1, %v428_v12  ;;  %v482_v12 = vld [vmem:[%s7996_s3 + $0x170] sm:$0xff]  ;;  %v1243_v36 = vadd.f32 %v1242_v52, %v751_v30  ;;  %v8163_v30 = vld [vmem:[#allocation17_spill] sm:$0xff] }
 0x19d   : > { %4148 = vmatmul.msk.f32.gmra.mxu0 %vm491_vm2, %v481_v6  ;;  %4199 = vmatmul.msk.f32.gmra.mxu1 %vm491_vm2, %v481_v6  ;;  %v1830_v52 = vadd.f32 %v8163_v30, %v1243_v36  ;;  %v1231_v36 = vadd.f32 %v5896_v31, %v5903_v7  ;;  %v8169_v7 = vld [vmem:[#allocation27_spill] sm:$0xff] }
 0x19e   : > { %v1245_v62 = vpop.f32.mrf.mxu2  ;;  %v5982_v54 = vpop.f32.mrf.mxu3 }
 0x1a2   : > { %v754_v23 = vpop.f32.mrf.mxu0  ;;  %v5989_v45 = vpop.f32.mrf.mxu1 }
 0x1a3   : > { %4252 = vmatmul.msk.f32.gmra.mxu2 %vm981_vm1, %v429_v5  ;;  %4303 = vmatmul.msk.f32.gmra.mxu3 %vm981_vm1, %v429_v5  ;;  %v1246_v2 = vadd.f32 %v1245_v62, %v754_v23  ;;  %v483_v5 = vld [vmem:[%s7996_s3 + $0x178] sm:$0xff] }
 0x1a5   : > { %4149 = vmatmul.msk.f32.gmra.mxu0 %vm491_vm2, %v482_v12  ;;  %4200 = vmatmul.msk.f32.gmra.mxu1 %vm491_vm2, %v482_v12  ;;  %v1832_v38 = vadd.f32 %v8162_v0, %v1246_v2  ;;  %v8165_v2 = vld [vmem:[#allocation20_spill] sm:$0xff] }
 0x1a6   : > { %v1248_v6 = vpop.f32.mrf.mxu2  ;;  %v5998_v13 = vpop.f32.mrf.mxu3  ;;  %v1828_v48 = vadd.f32 %v8165_v2, %v1240_v16 }
 0x1a8   : > { %v1928_v16 = vmax.f32 %v1828_v48, 0.0  ;;  %v8171_v48 = vld [vmem:[#allocation29_spill] sm:$0xff] }
 0x1aa   : > { %v757_v14 = vpop.f32.mrf.mxu0  ;;  %v6005_v19 = vpop.f32.mrf.mxu1 }
 0x1ab   : > { %4253 = vmatmul.msk.f32.gmra.mxu2 %vm981_vm1, %v430_v33  ;;  %v1249_v12 = vadd.f32 %v1248_v6, %v757_v14  ;;  %4304 = vmatmul.msk.f32.gmra.mxu3 %vm981_vm1, %v430_v33  ;;  %v431_v14 = vld [vmem:[%s7995_s2 + $0x188] sm:$0xff]  ;;  %v1237_v33 = vadd.f32 %v5934_v63, %v745_v39  ;;  %v1932_v6 = vmax.f32 %v1832_v38, 0.0  ;;  %v6036_v63 = vpop.permute.xlu2 %1689  ;;  %v1930_v38 = vmax.f32 %v1830_v52, 0.0 }
 0x1ac   : > { %v1822_v52 = vadd.f32 %v8169_v7, %v1231_v36 }
 0x1ad   : > { %4150 = vmatmul.msk.f32.gmra.mxu0 %vm491_vm2, %v483_v5  ;;  %4201 = vmatmul.msk.f32.gmra.mxu1 %vm491_vm2, %v483_v5  ;;  %v1834_v9 = vadd.f32 %v8160_v41, %v1249_v12  ;;  %v1234_v5 = vadd.f32 %v5914_v22, %v5923_v37 }
 0x1ae   : > { %v6015_v23 = vpop.f32.mrf.mxu2  ;;  %v6017_v62 = vpop.f32.mrf.mxu3  ;;  %v1922_v36 = vmax.f32 %v1822_v52, 0.0 }
 0x1af   : > { %8161 = vst [vmem:[#allocation16_spill] sm:$0xff] %v6017_v62  ;;  %v1934_v25 = vmax.f32 %v1834_v9, 0.0  ;;  %v484_v9 = vld [vmem:[%s7996_s3 + $0x180] sm:$0xff] }
 0x1b1   : > { %2598 = vmatpush.msrb.mxu1 %v1934_v25  ;;  %v8166_v25 = vld [vmem:[#allocation24_spill] sm:$0xff] }
 0x1b2   : > { %v6027_v12 = vpop.f32.mrf.mxu0  ;;  %v6029_v62 = vpop.f32.mrf.mxu1  ;;  %v1826_v22 = vadd.f32 %v8166_v25, %v1237_v33  ;;  %v1222_v33 = vadd.f32 %v5802_v8, %v5821_v53 }
 0x1b3   : > { %8164 = vst [vmem:[#allocation15_spill] sm:$0xff] %v6029_v62  ;;  %4254 = vmatmul.msk.f32.gmra.mxu2 %vm981_vm1, %v431_v14  ;;  %2599 = vmatpush.msrb.mxu1 %v1932_v6  ;;  %v1824_v6 = vadd.f32 %v8168_v15, %v1234_v5  ;;  %v485_v5 = vld [vmem:[%s7996_s3 + $0x188] sm:$0xff]  ;;  %v6066_v53 = vpop.permute.xlu2 %1684 }
 0x1b4   : > { %4305 = vmatmul.msk.f32.gmra.mxu3 %vm981_vm1, %v431_v14  ;;  %v1225_v14 = vadd.f32 %v5841_v27, %v5858_v50  ;;  %v1926_v31 = vmax.f32 %v1826_v22, 0.0  ;;  %v1820_v27 = vadd.f32 %v8171_v48, %v5889_v20  ;;  %v1219_v50 = vadd.f32 %v5765_v18, %v5780_v28  ;;  %8173 = vst [vmem:[#allocation11_spill] sm:$0xff] %v6066_v53  ;;  %v8175_v18 = vld [vmem:[#allocation32_spill] sm:$0xff] }
 0x1b5   : > { %4151 = vmatmul.msk.f32.gmra.mxu0 %vm491_vm2, %v484_v9  ;;  %4202 = vmatmul.msk.f32.gmra.mxu1 %vm491_vm2, %v484_v9  ;;  %v1816_v28 = vadd.f32 %v8175_v18, %v1222_v33  ;;  %v1207_v33 = vadd.f32 %v5607_v4, %v5625_v17  ;;  %v1413_v17 = vadd.f32 %v5982_v54, %v5989_v45  ;;  %v1976_v45 = vld [vmem:[%s7998_s5 + $0x20] sm:$0xff] }
 0x1b6   : > { %v6044_v37 = vpop.f32.mrf.mxu2  ;;  %v6046_v39 = vpop.f32.mrf.mxu3  ;;  %2600 = vmatpush.msrb.mxu1 %v1930_v38  ;;  %v8172_v38 = vld [vmem:[#allocation31_spill] sm:$0xff]  ;;  %v1920_v20 = vmax.f32 %v1820_v27, 0.0 }
 0x1b7   : > { %8167 = vst [vmem:[#allocation14_spill] sm:$0xff] %v6046_v39  ;;  %v1924_v39 = vmax.f32 %v1824_v6, 0.0  ;;  %v1818_v8 = vadd.f32 %v8172_v38, %v1225_v14  ;;  %v1916_v53 = vmax.f32 %v1816_v28, 0.0  ;;  %v1833_v54 = vadd.f32 %v8162_v0, %v1413_v17 }
 0x1b8   : > { %2601 = vmatpush.msrb.mxu1 %v1928_v16  ;;  %v1216_v16 = vadd.f32 %v5732_v42, %v5746_v10  ;;  %v1972_v42 = vld [vmem:[%s7998_s5] sm:$0xff]  ;;  %v1404_v0 = vadd.f32 %v5936_v56, %v5943_v1  ;;  %v1398_v56 = vadd.f32 %v5898_v57, %v5905_v58  ;;  %v1392_v57 = vadd.f32 %v5843_v44, %v5860_v55 }
 0x1b9   : > { %v1918_v14 = vmax.f32 %v1818_v8, 0.0  ;;  %v8178_v10 = vld [vmem:[#allocation34_spill] sm:$0xff]  ;;  %v1416_v8 = vadd.f32 %v5998_v13, %v6005_v19  ;;  %v1386_v55 = vadd.f32 %v5767_v32, %v5782_v43  ;;  %v8188_v43 = vld [vmem:[#allocation45_spill] sm:$0xff] }
 0x1ba   : > { %2602 = vmatpush.msrb.mxu1 %v1926_v31  ;;  %v6054_v9 = vpop.f32.mrf.mxu0  ;;  %v6056_v62 = vpop.f32.mrf.mxu1  ;;  %v8176_v31 = vld [vmem:[#allocation33_spill] sm:$0xff]  ;;  %v1812_v27 = vadd.f32 %v8178_v10, %v1216_v16  ;;  %v1827_v1 = vadd.f32 %v8166_v25, %v1404_v0  ;;  %v1823_v58 = vadd.f32 %v8169_v7, %v1398_v56  ;;  %v1819_v7 = vadd.f32 %v8172_v38, %v1392_v57  ;;  %v8189_v38 = vld [vmem:[#allocation43_spill] sm:$0xff] }
 0x1bb   : > { %8170 = vst [vmem:[#allocation12_spill] sm:$0xff] %v6056_v62  ;;  %v1814_v52 = vadd.f32 %v8176_v31, %v1219_v50  ;;  %v6099_v16 = vpop.permute.xlu2 %1609  ;;  %v1835_v19 = vadd.f32 %v8160_v41, %v1416_v8  ;;  %v1407_v41 = vadd.f32 %v5952_v60, %v5957_v3  ;;  %v1401_v60 = vadd.f32 %v5916_v35, %v5925_v11  ;;  %v1980_v8 = vld [vmem:[%s7998_s5 + $0x40] sm:$0xff] }
 0x1bc   : > { %2603 = vmatpush.msrb.mxu1 %v1924_v39  ;;  %v1213_v39 = vadd.f32 %v5684_v59, %v5712_v34  ;;  %v1806_v4 = vadd.f32 %v6099_v16, %v1207_v33  ;;  %v1395_v11 = vadd.f32 %v5875_v26, %v5883_v49  ;;  %v1927_v25 = vmax.f32 %v1827_v1, 0.0  ;;  %v1988_v0 = vld [vmem:[%s7998_s5 + $0x80] sm:$0xff]  ;;  %v8194_v1 = vld [vmem:[#allocation36_spill] sm:$0xff] }
 0x1bd   : > { %4152 = vmatmul.msk.f32.gmra.mxu0 %vm491_vm2, %v485_v5  ;;  %4203 = vmatmul.msk.f32.gmra.mxu1 %vm491_vm2, %v485_v5  ;;  %v1914_v59 = vmax.f32 %v1814_v52, 0.0  ;;  %v1908_v52 = vmax.f32 %v5688_v21, 0.0  ;;  %v1973_v21 = vld [vmem:[%s7998_s5 + $0x8] sm:$0xff]  ;;  %v1829_v3 = vadd.f32 %v8165_v2, %v1407_v41  ;;  %v1825_v2 = vadd.f32 %v8168_v15, %v1401_v60  ;;  %v8191_v60 = vld [vmem:[#allocation40_spill] sm:$0xff] }
 0x1be   : > { %v6070_v22 = vpop.f32.mrf.mxu2  ;;  %2604 = vmatpush.msrb.mxu1 %v1922_v36  ;;  %v6074_v6 = vpop.f32.mrf.mxu3  ;;  %v1810_v34 = vadd.f32 %v5580_v61, %v1213_v39  ;;  %v1204_v36 = vadd.f32 %v5562_v29, %v5584_v51  ;;  %v1410_v51 = vadd.f32 %v5968_v46, %v5973_v47  ;;  %v1935_v46 = vmax.f32 %v1835_v19, 0.0 }
 0x1bf   : > { %8174 = vst [vmem:[#allocation10_spill] sm:$0xff] %v6074_v6  ;;  %v6104_v39 = vpop.permute.xlu1 %1604  ;;  %v1389_v26 = vadd.f32 %v5804_v40, %v5823_v24  ;;  %v1821_v49 = vadd.f32 %v8171_v48, %v1395_v11  ;;  %v1925_v44 = vmax.f32 %v1825_v2, 0.0  ;;  %v1923_v19 = vmax.f32 %v1823_v58, 0.0  ;;  %v8185_v24 = vld [vmem:[#allocation47_spill] sm:$0xff]  ;;  %v8186_v48 = vld [vmem:[#allocation46_spill] sm:$0xff] }
 0x1c0   : > { %2605 = vmatpush.msrb.mxu1 %v1920_v20  ;;  %v1912_v20 = vmax.f32 %v1812_v27, 0.0  ;;  %v1804_v29 = vadd.f32 %v6104_v39, %v1204_v36  ;;  %v1831_v47 = vadd.f32 %v8163_v30, %v1410_v51  ;;  %v1984_v51 = vld [vmem:[%s7998_s5 + $0x60] sm:$0xff]  ;;  %v1380_v41 = vadd.f32 %v8189_v38, %v8188_v43  ;;  %v1985_v2 = vld [vmem:[%s7998_s5 + $0x68] sm:$0xff] }
 0x1c1   : > { %v1921_v32 = vmax.f32 %v1821_v49, 0.0  ;;  %v1992_v49 = vld [vmem:[%s7998_s5 + $0xa0] sm:$0xff] }
 0x1c2   : > { %2606 = vmatpush.msrb.mxu1 %v1918_v14  ;;  %v6080_v5 = vpop.f32.mrf.mxu0  ;;  %v6082_v62 = vpop.f32.mrf.mxu1  ;;  %v1904_v33 = vmax.f32 %v1804_v29, 0.0 }
 0x1c3   : > { %8177 = vst [vmem:[#allocation9_spill] sm:$0xff] %v6082_v62 }
 0x1c4   : > { %2607 = vmatpush.msrb.mxu1 %v1916_v53  ;;  %v1910_v53 = vmax.f32 %v1810_v34, 0.0  ;;  %v1933_v34 = vmax.f32 %v1833_v54, 0.0  ;;  %v1981_v54 = vld [vmem:[%s7998_s5 + $0x48] sm:$0xff] }
 0x1c5   : > { %2483 = vmatmul.f32.vlgmr.msrb.gmra.mxu0 %v1972_v42  ;;  %v1906_v42 = vmax.f32 %v1806_v4, 0.0  ;;  %v1977_v4 = vld [vmem:[%s7998_s5 + $0x28] sm:$0xff] }
 0x1c6   : > { %v6091_v50 = vpop.f32.mrf.mxu2  ;;  %2608 = vmatpush.msrb.mxu1 %v1914_v59  ;;  %v6097_v28 = vpop.f32.mrf.mxu3 }
 0x1c7   : > { %8179 = vst [vmem:[#allocation35_spill] sm:$0xff] %v6097_v28 }
 0x1c8   : > { %2609 = vmatpush.msrb.mxu1 %v1912_v20  ;;  %v1931_v20 = vmax.f32 %v1831_v47, 0.0  ;;  %v1815_v47 = vadd.f32 %v8176_v31, %v1386_v55  ;;  %v1811_v31 = vadd.f32 %v5580_v61, %v1380_v41  ;;  %v2000_v41 = vld [vmem:[%s7998_s5 + $0xe0] sm:$0xff] }
 0x1ca   : > { %2610 = vmatpush.msrb.mxu1 %v1910_v53  ;;  %v6110_v13 = vpop.f32.mrf.mxu0  ;;  %v6112_v14 = vpop.f32.mrf.mxu1  ;;  %v1929_v53 = vmax.f32 %v1829_v3, 0.0  ;;  %v8192_v3 = vld [vmem:[#allocation39_spill] sm:$0xff]  ;;  %v1911_v61 = vmax.f32 %v1811_v31, 0.0 }
 0x1cb   : > { %8180 = vst [vmem:[#allocation13_spill] sm:$0xff] %v6112_v14 }
 0x1cc   : > { %2611 = vmatpush.msrb.mxu1 %v1908_v52  ;;  %v1383_v52 = vadd.f32 %v8186_v48, %v8185_v24 }
 0x1cd   : > { %2486 = vmatmul.f32.gmra.mxu0 %v1976_v45  ;;  %v1817_v45 = vadd.f32 %v8175_v18, %v1389_v26 }
 0x1ce   : > { %v6119_v27 = vpop.f32.mrf.mxu2  ;;  %2612 = vmatpush.msrb.mxu1 %v1906_v42  ;;  %v6127_v59 = vpop.f32.mrf.mxu3 }
 0x1cf   : > { %8181 = vst [vmem:[#allocation17_spill] sm:$0xff] %v6127_v59 }
 0x1d0   : > { %2613 = vmatpush.msrb.mxu1 %v1904_v33  ;;  %v1813_v33 = vadd.f32 %v8178_v10, %v1383_v52  ;;  %v8193_v10 = vld [vmem:[#allocation37_spill] sm:$0xff] }
 0x1d1   : > { %2614 = vmatmul.f32.vlgmr.msrb.gmra.mxu1 %v1973_v21  ;;  %v1371_v11 = vadd.f32 %v8194_v1, %v8193_v10  ;;  %v1996_v52 = vld [vmem:[%s7998_s5 + $0xc0] sm:$0xff] }
 0x1d2   : > { %v6134_v30 = vpop.f32.mrf.mxu0  ;;  %v6136_v36 = vpop.f32.mrf.mxu1  ;;  %3122 = vmatpush.msra.mxu1 %v1935_v46  ;;  %v1919_v46 = vmax.f32 %v1819_v7, 0.0  ;;  %v2008_v1 = vld [vmem:[%s7998_s5 + $0x120] sm:$0xff] }
 0x1d3   : > { %8182 = vst [vmem:[#allocation20_spill] sm:$0xff] %v6136_v36  ;;  %v1805_v58 = vadd.f32 %v6104_v39, %v1371_v11  ;;  %v1989_v39 = vld [vmem:[%s7998_s5 + $0x88] sm:$0xff]  ;;  %v8199_v36 = vld [vmem:[#allocation8_spill] sm:$0xff] }
 0x1d4   : > { %3123 = vmatpush.msra.mxu1 %v1933_v34  ;;  %v1917_v34 = vmax.f32 %v1817_v45, 0.0 }
 0x1d5   : > { %2489 = vmatmul.f32.gmra.mxu0 %v1980_v8  ;;  %v1374_v8 = vadd.f32 %v8192_v3, %v8191_v60  ;;  %v1905_v7 = vmax.f32 %v1805_v58, 0.0  ;;  %v2004_v60 = vld [vmem:[%s7998_s5 + $0x100] sm:$0xff] }
 0x1d6   : > { %v6144_v35 = vpop.f32.mrf.mxu2  ;;  %v6152_v17 = vpop.f32.mrf.mxu3  ;;  %3124 = vmatpush.msra.mxu1 %v1931_v20  ;;  %v1915_v20 = vmax.f32 %v1815_v47, 0.0  ;;  %v2012_v58 = vld [vmem:[%s7998_s5 + $0x140] sm:$0xff] }
 0x1d7   : > { %8183 = vst [vmem:[#allocation24_spill] sm:$0xff] %v6152_v17  ;;  %v1807_v57 = vadd.f32 %v6099_v16, %v1374_v8  ;;  %v2001_v8 = vld [vmem:[%s7998_s5 + $0xe8] sm:$0xff] }
 0x1d8   : > { %3125 = vmatpush.msra.mxu1 %v1929_v53  ;;  %v1913_v53 = vmax.f32 %v1813_v33, 0.0 }
 0x1d9   : > { %2617 = vmatmul.f32.gmra.mxu1 %v1977_v4  ;;  %v1907_v55 = vmax.f32 %v1807_v57, 0.0 }
 0x1da   : > { %v6160_v15 = vpop.f32.mrf.mxu0  ;;  %v6162_v29 = vpop.f32.mrf.mxu1  ;;  %3126 = vmatpush.msra.mxu1 %v1927_v25 }
 0x1db   : > { %8184 = vst [vmem:[#allocation25_spill] sm:$0xff] %v6162_v29 }
 0x1dc   : > { %3127 = vmatpush.msra.mxu1 %v1925_v44 }
 0x1dd   : > { %2492 = vmatmul.f32.gmra.mxu0 %v1984_v51  ;;  %v8197_v51 = vld [vmem:[#allocation42_spill] sm:$0xff] }
 0x1de   : > { %v6170_v40 = vpop.f32.mrf.mxu2  ;;  %v6178_v42 = vpop.f32.mrf.mxu3  ;;  %3128 = vmatpush.msra.mxu1 %v1923_v19  ;;  %v1909_v44 = vmax.f32 %v8197_v51, 0.0  ;;  %v2009_v51 = vld [vmem:[%s7998_s5 + $0x128] sm:$0xff] }
 0x1df   : > { %8187 = vst [vmem:[#allocation27_spill] sm:$0xff] %v6178_v42 }
 0x1e0   : > { %3129 = vmatpush.msra.mxu1 %v1921_v32 }
 0x1e1   : > { %2620 = vmatmul.f32.gmra.mxu1 %v1981_v54  ;;  %v1993_v54 = vld [vmem:[%s7998_s5 + $0xa8] sm:$0xff] }
 0x1e2   : > { %v6184_v21 = vpop.f32.mrf.mxu0  ;;  %v6186_v18 = vpop.f32.mrf.mxu1  ;;  %3130 = vmatpush.msra.mxu1 %v1919_v46  ;;  %v1997_v46 = vld [vmem:[%s7998_s5 + $0xc8] sm:$0xff] }
 0x1e3   : > { %8190 = vst [vmem:[#allocation29_spill] sm:$0xff] %v6186_v18  ;;  %v8200_v18 = vld [vmem:[#allocation38_spill] sm:$0xff] }
 0x1e4   : > { %3131 = vmatpush.msra.mxu1 %v1917_v34 }
 0x1e5   : > { %2495 = vmatmul.f32.gmra.mxu0 %v1988_v0 }
 0x1e6   : > { %v6194_v56 = vpop.f32.mrf.mxu2  ;;  %v6201_v4 = vpop.f32.mrf.mxu3  ;;  %3132 = vmatpush.msra.mxu1 %v1915_v20 }
 0x1e7   : > { %8195 = vst [vmem:[#allocation31_spill] sm:$0xff] %v6201_v4 }
 0x1e8   : > { %3133 = vmatpush.msra.mxu1 %v1913_v53 }
 0x1e9   : > { %2623 = vmatmul.f32.gmra.mxu1 %v1985_v2  ;;  %v2005_v2 = vld [vmem:[%s7998_s5 + $0x108] sm:$0xff] }
 0x1ea   : > { %v6205_v25 = vpop.f32.mrf.mxu0  ;;  %v6207_v26 = vpop.f32.mrf.mxu1  ;;  %3134 = vmatpush.msra.mxu1 %v1911_v61 }
 0x1eb   : > { %8196 = vst [vmem:[#allocation32_spill] sm:$0xff] %v6207_v26 }
 0x1ec   : > { %3135 = vmatpush.msra.mxu1 %v1909_v44 }
 0x1ed   : > { %2498 = vmatmul.f32.gmra.mxu0 %v1992_v49 }
 0x1ee   : > { %v6213_v16 = vpop.f32.mrf.mxu2  ;;  %v6218_v19 = vpop.f32.mrf.mxu3  ;;  %3136 = vmatpush.msra.mxu1 %v1907_v55 }
 0x1f0   : > { %3137 = vmatpush.msra.mxu1 %v1905_v7 }
 0x1f1   : > { %2626 = vmatmul.f32.gmra.mxu1 %v1989_v39  ;;  %v2016_v39 = vld [vmem:[%s7998_s5 + $0x160] sm:$0xff] }
 0x1f2   : > { %v6220_v24 = vpop.f32.mrf.mxu0  ;;  %v6222_v48 = vpop.f32.mrf.mxu1 }
 0x1f5   : > { %2501 = vmatmul.f32.gmra.mxu0 %v1996_v52 }
 0x1f6   : > { %v6227_v45 = vpop.f32.mrf.mxu2  ;;  %v6232_v32 = vpop.f32.mrf.mxu3 }
 0x1f9   : > { %2629 = vmatmul.f32.gmra.mxu1 %v1993_v54  ;;  %v2013_v54 = vld [vmem:[%s7998_s5 + $0x148] sm:$0xff] }
 0x1fa   : > { %v6234_v43 = vpop.f32.mrf.mxu0  ;;  %v6236_v38 = vpop.f32.mrf.mxu1 }
 0x1fd   : > { %2504 = vmatmul.f32.gmra.mxu0 %v2000_v41 }
 0x1fe   : > { %v1281_v47 = vpop.f32.mrf.mxu2  ;;  %v6244_v33 = vpop.f32.mrf.mxu3 }
 0x201   : > { %2632 = vmatmul.f32.gmra.mxu1 %v1997_v46 }
 0x202   : > { %v790_v0 = vpop.f32.mrf.mxu0  ;;  %v6246_v34 = vpop.f32.mrf.mxu1 }
 0x203   : > { %v1282_v26 = vadd.f32 %v1281_v47, %v790_v0  ;;  %v2025_v0 = vld [vmem:[%s7998_s5 + $0x1a8] sm:$0xff] }
 0x205   : > { %2507 = vmatmul.f32.gmra.mxu0 %v2004_v60 }
 0x206   : > { %v1284_v3 = vpop.f32.mrf.mxu2  ;;  %v6254_v31 = vpop.f32.mrf.mxu3 }
 0x209   : > { %2635 = vmatmul.f32.gmra.mxu1 %v2001_v8  ;;  %v2020_v8 = vld [vmem:[%s7998_s5 + $0x180] sm:$0xff] }
 0x20a   : > { %v793_v20 = vpop.f32.mrf.mxu0  ;;  %v6256_v10 = vpop.f32.mrf.mxu1 }
 0x20b   : > { %v1285_v29 = vadd.f32 %v1284_v3, %v793_v20  ;;  %v8202_v3 = vld [vmem:[#allocation44_spill] sm:$0xff]  ;;  %v1273_v20 = vadd.f32 %v6194_v56, %v6205_v25  ;;  %v2032_v56 = vld [vmem:[%s7998_s5 + $0x1e0] sm:$0xff] }
 0x20d   : > { %2510 = vmatmul.f32.gmra.mxu0 %v2008_v1 }
 0x20e   : > { %v1287_v11 = vpop.f32.mrf.mxu2  ;;  %v6264_v53 = vpop.f32.mrf.mxu3 }
 0x211   : > { %2638 = vmatmul.f32.gmra.mxu1 %v2005_v2  ;;  %v2017_v2 = vld [vmem:[%s7998_s5 + $0x168] sm:$0xff] }
 0x212   : > { %v796_v57 = vpop.f32.mrf.mxu0  ;;  %v6266_v61 = vpop.f32.mrf.mxu1 }
 0x213   : > { %v1288_v14 = vadd.f32 %v1287_v11, %v796_v57  ;;  %v8201_v11 = vld [vmem:[#allocation41_spill] sm:$0xff] }
 0x215   : > { %2513 = vmatmul.f32.gmra.mxu0 %v2012_v58  ;;  %v1860_v57 = vadd.f32 %v8201_v11, %v1288_v14 }
 0x216   : > { %v1290_v49 = vpop.f32.mrf.mxu2  ;;  %v6274_v44 = vpop.f32.mrf.mxu3 }
 0x217   : > { %v1960_v14 = vmax.f32 %v1860_v57, 0.0 }
 0x219   : > { %2641 = vmatmul.f32.gmra.mxu1 %v2009_v51 }
 0x21a   : > { %v799_v55 = vpop.f32.mrf.mxu0  ;;  %v6276_v7 = vpop.f32.mrf.mxu1 }
 0x21b   : > { %v1291_v62 = vadd.f32 %v1290_v49, %v799_v55 }
 0x21d   : > { %2516 = vmatmul.f32.gmra.mxu0 %v2016_v39  ;;  %v1862_v4 = vadd.f32 %v8200_v18, %v1291_v62  ;;  %v1858_v62 = vadd.f32 %v8202_v3, %v1285_v29 }
 0x21e   : > { %v1293_v52 = vpop.f32.mrf.mxu2  ;;  %v6284_v41 = vpop.f32.mrf.mxu3 }
 0x221   : > { %2644 = vmatmul.f32.gmra.mxu1 %v2013_v54  ;;  %v2024_v54 = vld [vmem:[%s7998_s5 + $0x1a0] sm:$0xff] }
 0x222   : > { %v802_v46 = vpop.f32.mrf.mxu0  ;;  %v6286_v60 = vpop.f32.mrf.mxu1 }
 0x223   : > { %v1294_v51 = vadd.f32 %v1293_v52, %v802_v46  ;;  %v2021_v52 = vld [vmem:[%s7998_s5 + $0x188] sm:$0xff] }
 0x225   : > { %2519 = vmatmul.f32.gmra.mxu0 %v2020_v8  ;;  %v8198_v8 = vld [vmem:[#allocation7_spill] sm:$0xff]  ;;  %v1864_v17 = vadd.f32 %v8199_v36, %v1294_v51  ;;  %v1770_v51 = vpop.permute.xlu0 %1769 }
 0x226   : > { %v1296_v1 = vpop.f32.mrf.mxu2  ;;  %v6294_v58 = vpop.f32.mrf.mxu3 }
 0x227   : > { %v1964_v49 = vmax.f32 %v1864_v17, 0.0  ;;  %v8203_v17 = vld [vmem:[#allocation48_spill] sm:$0xff] }
 0x228   : > { %v1856_v47 = vadd.f32 %v8203_v17, %v1282_v26  ;;  %v8205_v26 = vld [vmem:[#allocation22_spill] sm:$0xff] }
 0x229   : > { %2647 = vmatmul.f32.gmra.mxu1 %v2017_v2 }
 0x22a   : > { %v805_v39 = vpop.f32.mrf.mxu0  ;;  %v6296_v6 = vpop.f32.mrf.mxu1 }
 0x22b   : > { %v1297_v28 = vadd.f32 %v1296_v1, %v805_v39  ;;  %v2028_v1 = vld [vmem:[%s7998_s5 + $0x1c0] sm:$0xff]  ;;  %v1279_v39 = vadd.f32 %v6227_v45, %v6234_v43  ;;  %v1958_v45 = vmax.f32 %v1858_v62, 0.0 }
 0x22c   : > { %v8206_v62 = vld [vmem:[#allocation30_spill] sm:$0xff] }
 0x22d   : > { %2522 = vmatmul.f32.gmra.mxu0 %v2024_v54  ;;  %v1866_v59 = vadd.f32 %v8198_v8, %v1297_v28 }
 0x22e   : > { %v1299_v46 = vpop.f32.mrf.mxu2  ;;  %v1466_v2 = vpop.f32.mrf.mxu3 }
 0x22f   : > { %v1966_v42 = vmax.f32 %v1866_v59, 0.0  ;;  %v1962_v59 = vmax.f32 %v1862_v4, 0.0  ;;  %v8204_v4 = vld [vmem:[#allocation23_spill] sm:$0xff] }
 0x230   : > { %v1854_v43 = vadd.f32 %v8204_v4, %v1279_v39 }
 0x231   : > { %2650 = vmatmul.f32.gmra.mxu1 %v2021_v52  ;;  %2729 = vmatpush.msrb.mxu2 %v1966_v42  ;;  %v1276_v42 = vadd.f32 %v6213_v16, %v6220_v24  ;;  %v1270_v16 = vadd.f32 %v6170_v40, %v6184_v21  ;;  %v1956_v24 = vmax.f32 %v1856_v47, 0.0  ;;  %v1267_v40 = vadd.f32 %v6144_v35, %v6160_v15  ;;  %v1765_v21 = vpop.permute.xlu0 %1764 }
 0x232   : > { %v808_v55 = vpop.f32.mrf.mxu0  ;;  %v975_v28 = vpop.f32.mrf.mxu1  ;;  %v1954_v39 = vmax.f32 %v1854_v43, 0.0  ;;  %v2029_v43 = vld [vmem:[%s7998_s5 + $0x1c8] sm:$0xff]  ;;  %v1261_v15 = vadd.f32 %v6091_v50, %v6110_v13  ;;  %v1975_v13 = vld [vmem:[%s7998_s5 + $0x18] sm:$0xff] }
 0x233   : > { %2730 = vmatpush.msrb.mxu2 %v1964_v49  ;;  %v1852_v52 = vadd.f32 %v8205_v26, %v1276_v42  ;;  %v1300_v49 = vadd.f32 %v1299_v46, %v808_v55  ;;  %v1467_v47 = vadd.f32 %v1466_v2, %v975_v28  ;;  %v8207_v42 = vld [vmem:[#allocation21_spill] sm:$0xff]  ;;  %v8208_v2 = vld [vmem:[#allocation19_spill] sm:$0xff] }
 0x234   : > { %v1846_v28 = vadd.f32 %v8208_v2, %v1267_v40  ;;  %v8211_v40 = vld [vmem:[#allocation18_spill] sm:$0xff] }
 0x235   : > { %2525 = vmatmul.f32.gmra.mxu0 %v2028_v1  ;;  %2731 = vmatpush.msrb.mxu2 %v1962_v59  ;;  %v1952_v46 = vmax.f32 %v1852_v52, 0.0 }
 0x236   : > { %v1302_v29 = vpop.f32.mrf.mxu2 }
 0x237   : > { %2732 = vmatpush.msrb.mxu2 %v1960_v14  ;;  %v1469_v54 = vpop.f32.mrf.mxu3  ;;  %v1850_v14 = vadd.f32 %v8206_v62, %v1273_v20 }
 0x239   : > { %2653 = vmatmul.f32.gmra.mxu1 %v2025_v0  ;;  %2733 = vmatpush.msrb.mxu2 %v1958_v45  ;;  %v1848_v0 = vadd.f32 %v8207_v42, %v1270_v16  ;;  %v1264_v45 = vadd.f32 %v6119_v27, %v6134_v30  ;;  %v1258_v27 = vadd.f32 %v6070_v22, %v6080_v5  ;;  %v1946_v5 = vmax.f32 %v1846_v28, 0.0 }
 0x23a   : > { %v811_v57 = vpop.f32.mrf.mxu0  ;;  %v978_v1 = vpop.f32.mrf.mxu1  ;;  %v1255_v22 = vadd.f32 %v6044_v37, %v6054_v9  ;;  %v1464_v37 = vadd.f32 %v6294_v58, %v6296_v6  ;;  %v1979_v6 = vld [vmem:[%s7998_s5 + $0x38] sm:$0xff]  ;;  %v1458_v58 = vadd.f32 %v6274_v44, %v6276_v7  ;;  %v1974_v44 = vld [vmem:[%s7998_s5 + $0x10] sm:$0xff]  ;;  %v1452_v7 = vadd.f32 %v6254_v31, %v6256_v10 }
 0x23b   : > { %v1303_v25 = vadd.f32 %v1302_v29, %v811_v57  ;;  %v1470_v59 = vadd.f32 %v1469_v54, %v978_v1  ;;  %2734 = vmatpush.msrb.mxu2 %v1956_v24  ;;  %v1868_v29 = vadd.f32 %v1765_v21, %v1300_v49  ;;  %v1950_v54 = vmax.f32 %v1850_v14, 0.0  ;;  %v8209_v49 = vld [vmem:[#allocation28_spill] sm:$0xff]  ;;  %v8210_v1 = vld [vmem:[#allocation26_spill] sm:$0xff] }
 0x23c   : > { %v1869_v24 = vadd.f32 %v1765_v21, %v1467_v47  ;;  %v1948_v16 = vmax.f32 %v1848_v0, 0.0  ;;  %v1844_v57 = vadd.f32 %v8209_v49, %v1264_v45  ;;  %v2033_v14 = vld [vmem:[%s7998_s5 + $0x1e8] sm:$0xff]  ;;  %v1840_v21 = vadd.f32 %v8211_v40, %v1258_v27 }
 0x23d   : > { %2528 = vmatmul.f32.gmra.mxu0 %v2032_v56  ;;  %2735 = vmatpush.msrb.mxu2 %v1954_v39  ;;  %v1870_v55 = vadd.f32 %v1770_v51, %v1303_v25  ;;  %v1871_v20 = vadd.f32 %v1770_v51, %v1470_v59  ;;  %v1968_v52 = vmax.f32 %v1868_v29, 0.0  ;;  %v2036_v51 = vld [vmem:[%s7998_s5 + $0x200] sm:$0xff]  ;;  %v1842_v56 = vadd.f32 %v8210_v1, %v1261_v15  ;;  %v8212_v0 = vld [vmem:[#allocation11_spill] sm:$0xff] }
 0x23e   : > { %v1969_v25 = vmax.f32 %v1869_v24, 0.0  ;;  %v1252_v59 = vadd.f32 %v6015_v23, %v6027_v12  ;;  %v1944_v39 = vmax.f32 %v1844_v57, 0.0  ;;  %v1838_v47 = vadd.f32 %v6036_v63, %v1255_v22  ;;  %v2044_v24 = vld [vmem:[%s7998_s5 + $0x240] sm:$0xff]  ;;  %v8216_v57 = vld [vmem:[#allocation27_spill] sm:$0xff] }
 0x23f   : > { %2736 = vmatpush.msrb.mxu2 %v1952_v46  ;;  %v1970_v35 = vmax.f32 %v1870_v55, 0.0  ;;  %v1971_v50 = vmax.f32 %v1871_v20, 0.0  ;;  %v1942_v9 = vmax.f32 %v1842_v56, 0.0  ;;  %v1461_v23 = vadd.f32 %v6284_v41, %v6286_v60  ;;  %v2040_v55 = vld [vmem:[%s7998_s5 + $0x220] sm:$0xff] }
 0x240   : > { %v1940_v46 = vmax.f32 %v1840_v21, 0.0  ;;  %v1836_v45 = vadd.f32 %v8212_v0, %v1252_v59  ;;  %v1938_v41 = vmax.f32 %v1838_v47, 0.0  ;;  %v1455_v60 = vadd.f32 %v6264_v53, %v6266_v61  ;;  %v2048_v56 = vld [vmem:[%s7998_s5 + $0x260] sm:$0xff]  ;;  %v8218_v59 = vld [vmem:[#allocation24_spill] sm:$0xff] }
 0x241   : > { %2656 = vmatmul.f32.gmra.mxu1 %v2029_v43  ;;  %2737 = vmatpush.msrb.mxu2 %v1950_v54  ;;  %v1867_v43 = vadd.f32 %v8198_v8, %v1464_v37  ;;  %v1865_v29 = vadd.f32 %v8199_v36, %v1461_v23  ;;  %v1863_v53 = vadd.f32 %v8200_v18, %v1458_v58  ;;  %v1983_v18 = vld [vmem:[%s7998_s5 + $0x58] sm:$0xff]  ;;  %v8223_v58 = vld [vmem:[#allocation35_spill] sm:$0xff] }
 0x242   : > { %2874 = vmatpush.msrb.mxu3 %v1970_v35  ;;  %v6343_v30 = vpop.f32.mrf.mxu0  ;;  %v1936_v54 = vmax.f32 %v1836_v45, 0.0  ;;  %v2037_v35 = vld [vmem:[%s7998_s5 + $0x208] sm:$0xff]  ;;  %v1449_v61 = vadd.f32 %v6244_v33, %v6246_v34  ;;  %v1861_v8 = vadd.f32 %v8201_v11, %v1455_v60  ;;  %v1446_v31 = vadd.f32 %v6232_v32, %v6236_v38  ;;  %v1978_v32 = vld [vmem:[%s7998_s5 + $0x30] sm:$0xff]  ;;  %v8220_v37 = vld [vmem:[#allocation17_spill] sm:$0xff]  ;;  %v6449_v45 = vpop.permute.xlu2 %2164 }
 0x243   : > { %2738 = vmatpush.msrb.mxu2 %v1948_v16  ;;  %v1967_v36 = vmax.f32 %v1867_v43, 0.0  ;;  %v1965_v28 = vmax.f32 %v1865_v29, 0.0  ;;  %v1859_v10 = vadd.f32 %v8202_v3, %v1452_v7  ;;  %v1963_v33 = vmax.f32 %v1863_v53, 0.0  ;;  %v8213_v38 = vld [vmem:[#allocation32_spill] sm:$0xff]  ;;  %v8214_v3 = vld [vmem:[#allocation31_spill] sm:$0xff]  ;;  %8221 = vst [vmem:[#allocation33_spill] sm:$0xff] %v6449_v45 }
 0x244   : > { %2875 = vmatpush.msrb.mxu3 %v1968_v52  ;;  %v1443_v34 = vadd.f32 %v6218_v19, %v6222_v48  ;;  %v1857_v11 = vadd.f32 %v8203_v17, %v1449_v61  ;;  %v1961_v27 = vmax.f32 %v1861_v8, 0.0  ;;  %v2041_v52 = vld [vmem:[%s7998_s5 + $0x228] sm:$0xff]  ;;  %v1855_v19 = vadd.f32 %v8204_v4, %v1446_v31  ;;  %v8215_v17 = vld [vmem:[#allocation29_spill] sm:$0xff] }
 0x245   : > { %2531 = vmatmul.f32.gmra.mxu0 %v2036_v51  ;;  %2739 = vmatpush.msrb.mxu2 %v1946_v5  ;;  %v1440_v51 = vadd.f32 %v8214_v3, %v8213_v38  ;;  %v1959_v48 = vmax.f32 %v1859_v10, 0.0  ;;  %v1987_v4 = vld [vmem:[%s7998_s5 + $0x78] sm:$0xff]  ;;  %v8225_v29 = vld [vmem:[#allocation10_spill] sm:$0xff]  ;;  %v6485_v38 = vpop.permute.xlu1 %2174 }
 0x246   : > { %3398 = vmatpush.msra.mxu3 %v1971_v50  ;;  %v1437_v50 = vadd.f32 %v8216_v57, %v8215_v17  ;;  %v1957_v5 = vmax.f32 %v1857_v11, 0.0  ;;  %v1955_v21 = vmax.f32 %v1855_v19, 0.0  ;;  %v8224_v60 = vld [vmem:[#allocation9_spill] sm:$0xff]  ;;  %v8227_v61 = vld [vmem:[#allocation14_spill] sm:$0xff]  ;;  %8232 = vst [vmem:[#allocation46_spill] sm:$0xff] %v6485_v38 }
 0x247   : > { %4306 = vmatmul.msk.f32.vlgmr.msrb.gmra.mxu3 %vm2352_vm3, %v1975_v13  ;;  %2740 = vmatpush.msrb.mxu2 %v1944_v39  ;;  %v1853_v13 = vadd.f32 %v8205_v26, %v1443_v34  ;;  %v8219_v26 = vld [vmem:[#allocation20_spill] sm:$0xff]  ;;  %v2052_v53 = vld [vmem:[%s7998_s5 + $0x280] sm:$0xff]  ;;  %v2049_v11 = vld [vmem:[%s7998_s5 + $0x268] sm:$0xff] }
 0x248   : > { %3399 = vmatpush.msra.mxu3 %v1969_v25  ;;  %v8217_v25 = vld [vmem:[#allocation25_spill] sm:$0xff]  ;;  %v1849_v47 = vadd.f32 %v8207_v42, %v1437_v50 }
 0x249   : > { %2659 = vmatmul.f32.gmra.mxu1 %v2033_v14  ;;  %2741 = vmatpush.msrb.mxu2 %v1942_v9  ;;  %v1434_v39 = vadd.f32 %v8218_v59, %v8217_v25  ;;  %v1851_v14 = vadd.f32 %v8206_v62, %v1440_v51  ;;  %v1431_v9 = vadd.f32 %v8220_v37, %v8219_v26  ;;  %v1982_v62 = vld [vmem:[%s7998_s5 + $0x50] sm:$0xff]  ;;  %v1999_v59 = vld [vmem:[%s7998_s5 + $0xd8] sm:$0xff] }
 0x24a   : > { %v6367_v12 = vpop.f32.mrf.mxu0  ;;  %v1949_v7 = vmax.f32 %v1849_v47, 0.0  ;;  %v1994_v26 = vld [vmem:[%s7998_s5 + $0xb0] sm:$0xff]  ;;  %v2003_v47 = vld [vmem:[%s7998_s5 + $0xf8] sm:$0xff] }
 0x24b   : > { %2742 = vmatpush.msrb.mxu2 %v1940_v46  ;;  %v1953_v46 = vmax.f32 %v1853_v13, 0.0  ;;  %v1847_v42 = vadd.f32 %v8208_v2, %v1434_v39  ;;  %v1991_v2 = vld [vmem:[%s7998_s5 + $0x98] sm:$0xff]  ;;  %v1990_v13 = vld [vmem:[%s7998_s5 + $0x90] sm:$0xff] }
 0x24d   : > { %2534 = vmatmul.f32.gmra.mxu0 %v2040_v55  ;;  %2743 = vmatpush.msrb.mxu2 %v1938_v41  ;;  %v2045_v55 = vld [vmem:[%s7998_s5 + $0x248] sm:$0xff]  ;;  %v1951_v41 = vmax.f32 %v1851_v14, 0.0  ;;  %v6517_v39 = vpop.permute.xlu1 %2189 }
 0x24e   : > { %v6382_v20 = vpop.f32.mrf.mxu1 }
 0x24f   : > { %4307 = vmatmul.msk.f32.gmra.mxu3 %vm2352_vm3, %v1979_v6  ;;  %2744 = vmatpush.msrb.mxu2 %v1936_v54  ;;  %v8222_v6 = vld [vmem:[#allocation13_spill] sm:$0xff]  ;;  %v1425_v54 = vadd.f32 %v8225_v29, %v8224_v60 }
 0x250   : > { %2745 = vmatmul.f32.vlgmr.msrb.gmra.mxu2 %v1974_v44  ;;  %v1428_v43 = vadd.f32 %v8223_v58, %v8222_v6  ;;  %v2061_v58 = vld [vmem:[%s7998_s5 + $0x2c8] sm:$0xff]  ;;  %v2007_v60 = vld [vmem:[%s7998_s5 + $0x118] sm:$0xff] }
 0x251   : > { %2662 = vmatmul.f32.gmra.mxu1 %v2037_v35  ;;  %3253 = vmatpush.msra.mxu2 %v1967_v36  ;;  %v1845_v35 = vadd.f32 %v8209_v49, %v1431_v9  ;;  %v8226_v36 = vld [vmem:[#allocation12_spill] sm:$0xff]  ;;  %v8228_v49 = vld [vmem:[#allocation15_spill] sm:$0xff]  ;;  %v1841_v10 = vadd.f32 %v8211_v40, %v1425_v54  ;;  %v2064_v9 = vld [vmem:[%s7998_s5 + $0x2e0] sm:$0xff] }
 0x252   : > { %v6397_v15 = vpop.f32.mrf.mxu0  ;;  %v1422_v8 = vadd.f32 %v8227_v61, %v8226_v36  ;;  %v2072_v61 = vld [vmem:[%s7998_s5 + $0x320] sm:$0xff] }
 0x253   : > { %3254 = vmatpush.msra.mxu2 %v1965_v28  ;;  %v1843_v28 = vadd.f32 %v8210_v1, %v1428_v43  ;;  %v1945_v34 = vmax.f32 %v1845_v35, 0.0  ;;  %v1986_v1 = vld [vmem:[%s7998_s5 + $0x70] sm:$0xff]  ;;  %v1941_v19 = vmax.f32 %v1841_v10, 0.0  ;;  %v2065_v35 = vld [vmem:[%s7998_s5 + $0x2e8] sm:$0xff] }
 0x254   : > { %v1998_v43 = vld [vmem:[%s7998_s5 + $0xd0] sm:$0xff] }
 0x255   : > { %2537 = vmatmul.f32.gmra.mxu0 %v2044_v24  ;;  %3255 = vmatpush.msra.mxu2 %v1963_v33  ;;  %v1947_v24 = vmax.f32 %v1847_v42, 0.0  ;;  %v1943_v40 = vmax.f32 %v1843_v28, 0.0 }
 0x256   : > { %v6411_v16 = vpop.f32.mrf.mxu1 }
 0x257   : > { %4308 = vmatmul.msk.f32.gmra.mxu3 %vm2352_vm3, %v1983_v18  ;;  %3256 = vmatpush.msra.mxu2 %v1961_v27  ;;  %v8229_v18 = vld [vmem:[#allocation16_spill] sm:$0xff]  ;;  %v6480_v27 = vpop.permute.xlu0 %2169 }
 0x258   : > { %2748 = vmatmul.f32.gmra.mxu2 %v1978_v32  ;;  %v1419_v31 = vadd.f32 %v8229_v18, %v8228_v49  ;;  %8230 = vst [vmem:[#allocation34_spill] sm:$0xff] %v6480_v27  ;;  %v6483_v32 = vpop.permute.xlu2 %2179  ;;  %v2006_v49 = vld [vmem:[%s7998_s5 + $0x110] sm:$0xff] }
 0x259   : > { %2665 = vmatmul.f32.gmra.mxu1 %v2041_v52  ;;  %3257 = vmatpush.msra.mxu2 %v1959_v48  ;;  %v1839_v52 = vadd.f32 %v6036_v63, %v1422_v8  ;;  %8231 = vst [vmem:[#allocation47_spill] sm:$0xff] %v6483_v32  ;;  %v2056_v48 = vld [vmem:[%s7998_s5 + $0x2a0] sm:$0xff]  ;;  %v1995_v63 = vld [vmem:[%s7998_s5 + $0xb8] sm:$0xff] }
 0x25a   : > { %v6426_v22 = vpop.f32.mrf.mxu0  ;;  %v1837_v3 = vadd.f32 %v8212_v0, %v1419_v31  ;;  %v2053_v0 = vld [vmem:[%s7998_s5 + $0x288] sm:$0xff]  ;;  %v2011_v8 = vld [vmem:[%s7998_s5 + $0x138] sm:$0xff] }
 0x25b   : > { %3258 = vmatpush.msra.mxu2 %v1957_v5  ;;  %v1939_v17 = vmax.f32 %v1839_v52, 0.0 }
 0x25c   : > { %v1937_v50 = vmax.f32 %v1837_v3, 0.0  ;;  %v2010_v3 = vld [vmem:[%s7998_s5 + $0x130] sm:$0xff] }
 0x25d   : > { %2540 = vmatmul.f32.gmra.mxu0 %v2048_v56  ;;  %3259 = vmatpush.msra.mxu2 %v1955_v21  ;;  %v2057_v21 = vld [vmem:[%s7998_s5 + $0x2a8] sm:$0xff] }
 0x25e   : > { %v6440_v23 = vpop.f32.mrf.mxu1 }
 0x25f   : > { %4309 = vmatmul.msk.f32.gmra.mxu3 %vm2352_vm3, %v1987_v4  ;;  %3260 = vmatpush.msra.mxu2 %v1953_v46  ;;  %v6505_v5 = vpop.permute.xlu0 %2184  ;;  %v2060_v4 = vld [vmem:[%s7998_s5 + $0x2c0] sm:$0xff] }
 0x260   : > { %2751 = vmatmul.f32.gmra.mxu2 %v1982_v62  ;;  %v6512_v25 = vpop.permute.xlu2 %2194  ;;  %v6540_v62 = vpop.permute.xlu1 %2204 }
 0x261   : > { %2668 = vmatmul.f32.gmra.mxu1 %v2045_v55  ;;  %3261 = vmatpush.msra.mxu2 %v1951_v41  ;;  %8233 = vst [vmem:[#allocation45_spill] sm:$0xff] %v6512_v25  ;;  %v2068_v41 = vld [vmem:[%s7998_s5 + $0x300] sm:$0xff] }
 0x262   : > { %v6457_v44 = vpop.f32.mrf.mxu0  ;;  %8236 = vst [vmem:[#allocation39_spill] sm:$0xff] %v6540_v62 }
 0x263   : > { %3262 = vmatpush.msra.mxu2 %v1949_v7  ;;  %v2002_v7 = vld [vmem:[%s7998_s5 + $0xf0] sm:$0xff] }
 0x265   : > { %2543 = vmatmul.f32.gmra.mxu0 %v2052_v53  ;;  %3263 = vmatpush.msra.mxu2 %v1947_v24  ;;  %v2069_v24 = vld [vmem:[%s7998_s5 + $0x308] sm:$0xff] }
 0x266   : > { %v6471_v33 = vpop.f32.mrf.mxu1 }
 0x267   : > { %4310 = vmatmul.msk.f32.gmra.mxu3 %vm2352_vm3, %v1991_v2  ;;  %3264 = vmatpush.msra.mxu2 %v1945_v34  ;;  %v6536_v46 = vpop.permute.xlu0 %2199 }
 0x268   : > { %2754 = vmatmul.f32.gmra.mxu2 %v1986_v1  ;;  %8234 = vst [vmem:[#allocation43_spill] sm:$0xff] %v6536_v46  ;;  %v6538_v55 = vpop.permute.xlu2 %2209  ;;  %v6572_v2 = vpop.permute.xlu1 %2219  ;;  %v2015_v1 = vld [vmem:[%s7998_s5 + $0x158] sm:$0xff] }
 0x269   : > { %2671 = vmatmul.f32.gmra.mxu1 %v2049_v11  ;;  %3265 = vmatpush.msra.mxu2 %v1943_v40  ;;  %8235 = vst [vmem:[#allocation40_spill] sm:$0xff] %v6538_v55  ;;  %v2076_v11 = vld [vmem:[%s7998_s5 + $0x340] sm:$0xff]  ;;  %v2073_v40 = vld [vmem:[%s7998_s5 + $0x328] sm:$0xff] }
 0x26a   : > { %v6488_v51 = vpop.f32.mrf.mxu0  ;;  %8239 = vst [vmem:[#allocation42_spill] sm:$0xff] %v6572_v2 }
 0x26b   : > { %3266 = vmatpush.msra.mxu2 %v1941_v19 }
 0x26d   : > { %2546 = vmatmul.f32.gmra.mxu0 %v2056_v48  ;;  %3267 = vmatpush.msra.mxu2 %v1939_v17 }
 0x26e   : > { %v6496_v57 = vpop.f32.mrf.mxu1 }
 0x26f   : > { %4311 = vmatmul.msk.f32.gmra.mxu3 %vm2352_vm3, %v1995_v63  ;;  %3268 = vmatpush.msra.mxu2 %v1937_v50  ;;  %v6559_v29 = vpop.permute.xlu0 %2214  ;;  %v2080_v63 = vld [vmem:[%s7998_s5 + $0x360] sm:$0xff]  ;;  %v2019_v50 = vld [vmem:[%s7998_s5 + $0x178] sm:$0xff] }
 0x270   : > { %2757 = vmatmul.f32.gmra.mxu2 %v1990_v13  ;;  %8237 = vst [vmem:[#allocation37_spill] sm:$0xff] %v6559_v29  ;;  %v6570_v53 = vpop.permute.xlu2 %2224  ;;  %v6595_v10 = vpop.permute.xlu1 %2234 }
 0x271   : > { %2674 = vmatmul.f32.gmra.mxu1 %v2053_v0  ;;  %8238 = vst [vmem:[#allocation36_spill] sm:$0xff] %v6570_v53 }
 0x272   : > { %v6507_v56 = vpop.f32.mrf.mxu0 }
 0x275   : > { %2549 = vmatmul.f32.gmra.mxu0 %v2060_v4  ;;  %v2077_v4 = vld [vmem:[%s7998_s5 + $0x348] sm:$0xff] }
 0x276   : > { %v6519_v14 = vpop.f32.mrf.mxu1 }
 0x277   : > { %4312 = vmatmul.msk.f32.gmra.mxu3 %vm2352_vm3, %v1999_v59  ;;  %v6591_v18 = vpop.permute.xlu0 %2229  ;;  %v2014_v59 = vld [vmem:[%s7998_s5 + $0x150] sm:$0xff] }
 0x278   : > { %2760 = vmatmul.f32.gmra.mxu2 %v1994_v26  ;;  %8240 = vst [vmem:[#allocation7_spill] sm:$0xff] %v6591_v18  ;;  %v6593_v31 = vpop.permute.xlu2 %2239  ;;  %v6626_v0 = vpop.permute.xlu1 %2249  ;;  %v2084_v26 = vld [vmem:[%s7998_s5 + $0x380] sm:$0xff] }
 0x279   : > { %2677 = vmatmul.f32.gmra.mxu1 %v2057_v21 }
 0x27a   : > { %v6528_v37 = vpop.f32.mrf.mxu0 }
 0x27d   : > { %2552 = vmatmul.f32.gmra.mxu0 %v2064_v9  ;;  %v2023_v9 = vld [vmem:[%s7998_s5 + $0x198] sm:$0xff] }
 0x27e   : > { %v6542_v6 = vpop.f32.mrf.mxu1 }
 0x27f   : > { %4313 = vmatmul.msk.f32.gmra.mxu3 %vm2352_vm3, %v2003_v47  ;;  %v6614_v19 = vpop.permute.xlu0 %2244 }
 0x280   : > { %2763 = vmatmul.f32.gmra.mxu2 %v1998_v43  ;;  %v6621_v17 = vpop.permute.xlu2 %2254  ;;  %v6649_v43 = vpop.permute.xlu1 %2264 }
 0x281   : > { %2680 = vmatmul.f32.gmra.mxu1 %v2061_v58  ;;  %8241 = vst [vmem:[#allocation8_spill] sm:$0xff] %v6621_v17 }
 0x282   : > { %v6551_v42 = vpop.f32.mrf.mxu0  ;;  %8244 = vst [vmem:[#allocation44_spill] sm:$0xff] %v6649_v43 }
 0x285   : > { %2555 = vmatmul.f32.gmra.mxu0 %v2068_v41 }
 0x286   : > { %v6561_v54 = vpop.f32.mrf.mxu1 }
 0x287   : > { %4314 = vmatmul.msk.f32.gmra.mxu3 %vm2352_vm3, %v2007_v60  ;;  %v6645_v47 = vpop.permute.xlu0 %2259  ;;  %v2081_v60 = vld [vmem:[%s7998_s5 + $0x368] sm:$0xff] }
 0x288   : > { %2766 = vmatmul.f32.gmra.mxu2 %v2002_v7  ;;  %8242 = vst [vmem:[#allocation38_spill] sm:$0xff] %v6645_v47  ;;  %v6647_v58 = vpop.permute.xlu2 %2269  ;;  %v2047_v47 = vld [vmem:[%s7998_s5 + $0x258] sm:$0xff] }
 0x289   : > { %2683 = vmatmul.f32.gmra.mxu1 %v2065_v35  ;;  %8243 = vst [vmem:[#allocation41_spill] sm:$0xff] %v6647_v58  ;;  %v2018_v35 = vld [vmem:[%s7998_s5 + $0x170] sm:$0xff] }
 0x28a   : > { %v6574_v36 = vpop.f32.mrf.mxu0 }
 0x28d   : > { %2558 = vmatmul.f32.gmra.mxu0 %v2072_v61  ;;  %v2088_v61 = vld [vmem:[%s7998_s5 + $0x3a0] sm:$0xff] }
 0x28e   : > { %v6582_v28 = vpop.f32.mrf.mxu1 }
 0x28f   : > { %4315 = vmatmul.msk.f32.gmra.mxu3 %vm2352_vm3, %v2011_v8  ;;  %v2027_v8 = vld [vmem:[%s7998_s5 + $0x1b8] sm:$0xff] }
 0x290   : > { %2769 = vmatmul.f32.gmra.mxu2 %v2006_v49 }
 0x291   : > { %2686 = vmatmul.f32.gmra.mxu1 %v2069_v24  ;;  %v6668_v24 = vpop.permute.xlu0 %2274 }
 0x292   : > { %v6597_v34 = vpop.f32.mrf.mxu0  ;;  %8245 = vst [vmem:[#allocation48_spill] sm:$0xff] %v6668_v24 }
 0x295   : > { %2561 = vmatmul.f32.gmra.mxu0 %v2076_v11  ;;  %v2085_v11 = vld [vmem:[%s7998_s5 + $0x388] sm:$0xff] }
 0x296   : > { %v6605_v52 = vpop.f32.mrf.mxu1 }
 0x297   : > { %4316 = vmatmul.msk.f32.gmra.mxu3 %vm2352_vm3, %v2015_v1  ;;  %v2022_v1 = vld [vmem:[%s7998_s5 + $0x190] sm:$0xff] }
 0x298   : > { %2772 = vmatmul.f32.gmra.mxu2 %v2010_v3  ;;  %v6681_v3 = vpop.permute.xlu1 %2279 }
 0x299   : > { %2689 = vmatmul.f32.gmra.mxu1 %v2073_v40  ;;  %v6679_v40 = vpop.permute.xlu2 %2284  ;;  %8247 = vst [vmem:[#allocation22_spill] sm:$0xff] %v6681_v3 }
 0x29a   : > { %v6616_v48 = vpop.f32.mrf.mxu0  ;;  %8246 = vst [vmem:[#allocation23_spill] sm:$0xff] %v6679_v40 }
 0x29d   : > { %2564 = vmatmul.f32.gmra.mxu0 %v2080_v63 }
 0x29e   : > { %v6628_v13 = vpop.f32.mrf.mxu1 }
 0x29f   : > { %4317 = vmatmul.msk.f32.gmra.mxu3 %vm2352_vm3, %v2019_v50  ;;  %v2092_v50 = vld [vmem:[%s7998_s5 + $0x3c0] sm:$0xff] }
 0x2a0   : > { %2775 = vmatmul.f32.gmra.mxu2 %v2014_v59 }
 0x2a1   : > { %2692 = vmatmul.f32.gmra.mxu1 %v2077_v4  ;;  %v2031_v4 = vld [vmem:[%s7998_s5 + $0x1d8] sm:$0xff] }
 0x2a2   : > { %v6637_v21 = vpop.f32.mrf.mxu0 }
 0x2a5   : > { %2567 = vmatmul.f32.gmra.mxu0 %v2084_v26  ;;  %v2089_v26 = vld [vmem:[%s7998_s5 + $0x3a8] sm:$0xff] }
 0x2a6   : > { %v6651_v41 = vpop.f32.mrf.mxu1 }
 0x2a7   : > { %4318 = vmatmul.msk.f32.gmra.mxu3 %vm2352_vm3, %v2023_v9  ;;  %v2026_v9 = vld [vmem:[%s7998_s5 + $0x1b0] sm:$0xff] }
 0x2a8   : > { %2778 = vmatmul.f32.gmra.mxu2 %v2018_v35  ;;  %v6702_v35 = vpop.permute.xlu2 %2299 }
 0x2a9   : > { %2695 = vmatmul.f32.gmra.mxu1 %v2081_v60  ;;  %v6700_v60 = vpop.permute.xlu0 %2289  ;;  %8249 = vst [vmem:[#allocation21_spill] sm:$0xff] %v6702_v35 }
 0x2aa   : > { %v6660_v7 = vpop.f32.mrf.mxu0  ;;  %8248 = vst [vmem:[#allocation30_spill] sm:$0xff] %v6700_v60  ;;  %v2039_v60 = vld [vmem:[%s7998_s5 + $0x218] sm:$0xff] }
 0x2ad   : > { %2570 = vmatmul.f32.gmra.mxu0 %v2088_v61  ;;  %v6704_v61 = vpop.permute.xlu1 %2294 }
 0x2ae   : > { %v6670_v49 = vpop.f32.mrf.mxu1  ;;  %8250 = vst [vmem:[#allocation19_spill] sm:$0xff] %v6704_v61 }
 0x2af   : > { %4319 = vmatmul.msk.f32.gmra.mxu3 %vm2352_vm3, %v2027_v8 }
 0x2b0   : > { %2781 = vmatmul.f32.gmra.mxu2 %v2022_v1  ;;  %v2035_v1 = vld [vmem:[%s7998_s5 + $0x1f8] sm:$0xff]  ;;  %v6730_v61 = vpop.permute.xlu2 %2314 }
 0x2b1   : > { %2698 = vmatmul.f32.gmra.mxu1 %v2085_v11  ;;  %v2096_v11 = vld [vmem:[%s7998_s5 + $0x3e0] sm:$0xff]  ;;  %8252 = vst [vmem:[#allocation26_spill] sm:$0xff] %v6730_v61 }
 0x2b2   : > { %v6683_v63 = vpop.f32.mrf.mxu0 }
 0x2b5   : > { %2573 = vmatmul.f32.gmra.mxu0 %v2092_v50  ;;  %v6735_v40 = vpop.permute.xlu1 %2309 }
 0x2b6   : > { %v6691_v59 = vpop.f32.mrf.mxu1  ;;  %8253 = vst [vmem:[#allocation18_spill] sm:$0xff] %v6735_v40  ;;  %v2043_v40 = vld [vmem:[%s7998_s5 + $0x238] sm:$0xff] }
 0x2b7   : > { %4320 = vmatmul.msk.f32.gmra.mxu3 %vm2352_vm3, %v2031_v4  ;;  %v2093_v4 = vld [vmem:[%s7998_s5 + $0x3c8] sm:$0xff] }
 0x2b8   : > { %2784 = vmatmul.f32.gmra.mxu2 %v2026_v9  ;;  %v6723_v9 = vpop.permute.xlu0 %2304  ;;  %v6756_v24 = vpop.permute.xlu2 %2329 }
 0x2b9   : > { %2701 = vmatmul.f32.gmra.mxu1 %v2089_v26  ;;  %v2030_v26 = vld [vmem:[%s7998_s5 + $0x1d0] sm:$0xff]  ;;  %8251 = vst [vmem:[#allocation28_spill] sm:$0xff] %v6723_v9 }
 0x2ba   : > { %v6706_v8 = vpop.f32.mrf.mxu0  ;;  %8256 = vst [vmem:[#allocation31_spill] sm:$0xff] %v6756_v24 }
 0x2bd   : > { %2576 = vmatmul.f32.gmra.mxu0 %v2096_v11  ;;  %v2100_v11 = vld [vmem:[%s7998_s5 + $0x400] sm:$0xff]  ;;  %v6758_v58 = vpop.permute.xlu1 %2324 }
 0x2be   : > { %v6714_v50 = vpop.f32.mrf.mxu1  ;;  %8257 = vst [vmem:[#allocation29_spill] sm:$0xff] %v6758_v58  ;;  %v2108_v58 = vld [vmem:[%s7998_s5 + $0x440] sm:$0xff] }
 0x2bf   : > { %4321 = vmatmul.msk.f32.gmra.mxu3 %vm2352_vm3, %v2035_v1 }
 0x2c0   : > { %2787 = vmatmul.f32.gmra.mxu2 %v2030_v26  ;;  %v2034_v26 = vld [vmem:[%s7998_s5 + $0x1f0] sm:$0xff]  ;;  %v6754_v3 = vpop.permute.xlu0 %2319 }
 0x2c1   : > { %2704 = vmatmul.f32.gmra.mxu1 %v2093_v4  ;;  %v2097_v4 = vld [vmem:[%s7998_s5 + $0x3e8] sm:$0xff]  ;;  %8255 = vst [vmem:[#allocation32_spill] sm:$0xff] %v6754_v3  ;;  %v2485_v3 = vadd.f32 %v6343_v30, %v6449_v45 }
 0x2c2   : > { %v6725_v35 = vpop.f32.mrf.mxu0 }
 0x2c3   : > { %v2616_v43 = vadd.f32 %v6382_v20, %v2485_v3  ;;  %v6791_v20 = vpop.permute.xlu2 %2344 }
 0x2c4   : > { %8260 = vst [vmem:[#allocation24_spill] sm:$0xff] %v6791_v20 }
 0x2c5   : > { %2579 = vmatmul.f32.gmra.mxu0 %v2100_v11  ;;  %v2104_v11 = vld [vmem:[%s7998_s5 + $0x420] sm:$0xff]  ;;  %v6793_v45 = vpop.permute.xlu1 %2339 }
 0x2c6   : > { %v6737_v1 = vpop.f32.mrf.mxu1  ;;  %8261 = vst [vmem:[#allocation20_spill] sm:$0xff] %v6793_v45 }
 0x2c7   : > { %4322 = vmatmul.msk.f32.gmra.mxu3 %vm2352_vm3, %v2039_v60 }
 0x2c8   : > { %2790 = vmatmul.f32.gmra.mxu2 %v2034_v26  ;;  %v2038_v26 = vld [vmem:[%s7998_s5 + $0x210] sm:$0xff] }
 0x2c9   : > { %2707 = vmatmul.f32.gmra.mxu1 %v2097_v4  ;;  %v2101_v4 = vld [vmem:[%s7998_s5 + $0x408] sm:$0xff] }
 0x2ca   : > { %v2877_v61 = vpop.f32.mrf.mxu3  ;;  %v6746_v9 = vpop.f32.mrf.mxu0 }
 0x2cb   : > { %8254 = vst [vmem:[#allocation11_spill] sm:$0xff] %v6746_v9  ;;  %v6780_v9 = vpop.permute.xlu0 %2334 }
 0x2cc   : > { %8259 = vst [vmem:[#allocation25_spill] sm:$0xff] %v6780_v9  ;;  %v2112_v9 = vld [vmem:[%s7998_s5 + $0x460] sm:$0xff] }
 0x2cd   : > { %2582 = vmatmul.f32.gmra.mxu0 %v2104_v11  ;;  %v6821_v45 = vpop.permute.xlu1 %3631 }
 0x2ce   : > { %v6760_v60 = vpop.f32.mrf.mxu1 }
 0x2cf   : > { %4323 = vmatmul.msk.f32.gmra.mxu3 %vm2352_vm3, %v2043_v40 }
 0x2d0   : > { %2793 = vmatmul.f32.gmra.mxu2 %v2038_v26  ;;  %v2042_v26 = vld [vmem:[%s7998_s5 + $0x230] sm:$0xff] }
 0x2d1   : > { %2710 = vmatmul.f32.gmra.mxu1 %v2101_v4  ;;  %v2105_v4 = vld [vmem:[%s7998_s5 + $0x428] sm:$0xff] }
 0x2d2   : > { %v2880_v11 = vpop.f32.mrf.mxu3  ;;  %v6771_v24 = vpop.f32.mrf.mxu0 }
 0x2d3   : > { %8258 = vst [vmem:[#allocation27_spill] sm:$0xff] %v6771_v24  ;;  %v2746_v17 = vpop.f32.mrf.mxu2 }
 0x2d4   : > { %v2747_v40 = vadd.f32 %v2746_v17, %v2616_v43  ;;  %v2488_v17 = vadd.f32 %v6367_v12, %v6480_v27  ;;  %v2109_v12 = vld [vmem:[%s7998_s5 + $0x448] sm:$0xff]  ;;  %v6817_v27 = vpop.permute.xlu2 %3636 }
 0x2d5   : > { %2585 = vmatmul.f32.gmra.mxu0 %v2108_v58 }
 0x2d6   : > { %v6782_v30 = vpop.f32.mrf.mxu1  ;;  %v2878_v3 = vadd.f32 %v2877_v61, %v2747_v40  ;;  %v2619_v24 = vadd.f32 %v6411_v16, %v2488_v17  ;;  %v6815_v17 = vpop.permute.xlu0 %2349 }
 0x2d7   : > { %4324 = vmatmul.msk.f32.gmra.mxu3 %vm2352_vm3, %v2047_v47  ;;  %v2051_v47 = vld [vmem:[%s7998_s5 + $0x278] sm:$0xff]  ;;  %8263 = vst [vmem:[#allocation13_spill] sm:$0xff] %v6815_v17  ;;  %v2113_v17 = vld [vmem:[%s7998_s5 + $0x468] sm:$0xff] }
 0x2d8   : > { %2796 = vmatmul.f32.gmra.mxu2 %v2042_v26  ;;  %v3515_v16 = vmax.f32 %v2878_v3, 0.0  ;;  %v2116_v3 = vld [vmem:[%s7998_s5 + $0x480] sm:$0xff] }
 0x2d9   : > { %2713 = vmatmul.f32.gmra.mxu1 %v2105_v4  ;;  %v2046_v4 = vld [vmem:[%s7998_s5 + $0x250] sm:$0xff] }
 0x2da   : > { %v2883_v58 = vpop.f32.mrf.mxu3  ;;  %v6797_v43 = vpop.f32.mrf.mxu0 }
 0x2db   : > { %8262 = vst [vmem:[#allocation17_spill] sm:$0xff] %v6797_v43  ;;  %v2749_v61 = vpop.f32.mrf.mxu2 }
 0x2dc   : > { %v2750_v40 = vadd.f32 %v2749_v61, %v2619_v24  ;;  %v2491_v24 = vadd.f32 %v6397_v15, %v6485_v38  ;;  %v2055_v15 = vld [vmem:[%s7998_s5 + $0x298] sm:$0xff] }
 0x2dd   : > { %2588 = vmatmul.f32.gmra.mxu0 %v2112_v9 }
 0x2de   : > { %v6806_v20 = vpop.f32.mrf.mxu1  ;;  %v2881_v26 = vadd.f32 %v2880_v11, %v2750_v40  ;;  %v2622_v11 = vadd.f32 %v6440_v23, %v2491_v24  ;;  %v2050_v23 = vld [vmem:[%s7998_s5 + $0x270] sm:$0xff]  ;;  %v2494_v24 = vadd.f32 %v6426_v22, %v6483_v32  ;;  %v2059_v22 = vld [vmem:[%s7998_s5 + $0x2b8] sm:$0xff] }
 0x2df   : > { %4325 = vmatmul.msk.f32.gmra.mxu3 %vm2352_vm3, %v2051_v47  ;;  %v3819_v47 = vmul.f32 %v6821_v45, %v3515_v16 }
 0x2e0   : > { %v3517_v9 = vmax.f32 %v2881_v26, 0.0  ;;  %2799 = vmatmul.f32.gmra.mxu2 %v2046_v4 }
 0x2e1   : > { %2716 = vmatmul.f32.gmra.mxu1 %v2109_v12 }
 0x2e2   : > { %v2886_v61 = vpop.f32.mrf.mxu3  ;;  %v6823_v43 = vpop.f32.mrf.mxu0  ;;  %v3821_v40 = vmul.f32 %v6817_v27, %v3517_v9 }
 0x2e3   : > { %v2752_v12 = vpop.f32.mrf.mxu2 }
 0x2e4   : > { %v3895_v4 = vadd.f32 %v3821_v40, %v3819_v47  ;;  %v2753_v26 = vadd.f32 %v2752_v12, %v2622_v11  ;;  %v6845_v11 = vpop.permute.xlu0 %3641  ;;  %v2120_v40 = vld [vmem:[%s7998_s5 + $0x4a0] sm:$0xf]  ;;  %v2625_v12 = vadd.f32 %v6471_v33, %v2494_v24  ;;  %v2054_v33 = vld [vmem:[%s7998_s5 + $0x290] sm:$0xff] }
 0x2e5   : > { %2591 = vmatmul.f32.gmra.mxu0 %v2116_v3  ;;  %8264 = vst [vmem:[#allocation35_spill] sm:$0xff] %v6845_v11 }
 0x2e6   : > { %v6834_v38 = vpop.f32.mrf.mxu1  ;;  %v2884_v16 = vadd.f32 %v2883_v58, %v2753_v26 }
 0x2e7   : > { %4326 = vmatmul.msk.f32.gmra.mxu3 %vm2352_vm3, %v2055_v15 }
 0x2e8   : > { %v3519_v9 = vmax.f32 %v2884_v16, 0.0  ;;  %2802 = vmatmul.f32.gmra.mxu2 %v2050_v23  ;;  %v2117_v16 = vld [vmem:[%s7998_s5 + $0x488] sm:$0xff] }
 0x2e9   : > { %2719 = vmatmul.f32.gmra.mxu1 %v2113_v17 }
 0x2ea   : > { %v2889_v3 = vpop.f32.mrf.mxu3  ;;  %v6847_v47 = vpop.f32.mrf.mxu0  ;;  %v3823_v15 = vmul.f32 %v6845_v11, %v3519_v9  ;;  %v2497_v9 = vadd.f32 %v6457_v44, %v6505_v5  ;;  %v4430_v44 = vld [vmem:[%s7998_s5] sm:$0xff] }
 0x2eb   : > { %v2755_v58 = vpop.f32.mrf.mxu2 }
 0x2ec   : > { %v3896_v17 = vadd.f32 %v3895_v4, %v3823_v15  ;;  %v2756_v26 = vadd.f32 %v2755_v58, %v2625_v12  ;;  %v2628_v15 = vadd.f32 %v6496_v57, %v2497_v9  ;;  %v2121_v57 = vld [vmem:[%s7998_s5 + $0x4a8] sm:$0xf] }
 0x2ed   : > { %2594 = vmatmul.f32.gmra.mxu0 %v2120_v40  ;;  %v6868_v40 = vpop.permute.xlu1 %3646 }
 0x2ee   : > { %v6857_v23 = vpop.f32.mrf.mxu1  ;;  %v2887_v24 = vadd.f32 %v2886_v61, %v2756_v26  ;;  %8265 = vst [vmem:[#allocation9_spill] sm:$0xff] %v6868_v40 }
 0x2ef   : > { %4327 = vmatmul.msk.f32.gmra.mxu3 %vm2352_vm3, %v2059_v22  ;;  %v2063_v22 = vld [vmem:[%s7998_s5 + $0x2d8] sm:$0xff] }
 0x2f0   : > { %v3521_v11 = vmax.f32 %v2887_v24, 0.0  ;;  %2805 = vmatmul.f32.gmra.mxu2 %v2054_v33 }
 0x2f1   : > { %2722 = vmatmul.f32.gmra.mxu1 %v2117_v16 }
 0x2f2   : > { %v2892_v4 = vpop.f32.mrf.mxu3  ;;  %v6870_v12 = vpop.f32.mrf.mxu0  ;;  %v3825_v58 = vmul.f32 %v6868_v40, %v3521_v11  ;;  %v2058_v11 = vld [vmem:[%s7998_s5 + $0x2b0] sm:$0xff] }
 0x2f3   : > { %v2758_v61 = vpop.f32.mrf.mxu2 }
 0x2f4   : > { %v3897_v26 = vadd.f32 %v3896_v17, %v3825_v58  ;;  %v2759_v32 = vadd.f32 %v2758_v61, %v2628_v15  ;;  %v2500_v17 = vadd.f32 %v6488_v51, %v6517_v39  ;;  %v6891_v15 = vpop.permute.xlu2 %3651  ;;  %v4431_v51 = vld [vmem:[%s7998_s5 + $0x20] sm:$0xff] }
 0x2f5   : > { %3007 = vmatmul.f32.vlgmr.msra.gmra.mxu0 %v4430_v44 }
 0x2f6   : > { %v6880_v16 = vpop.f32.mrf.mxu1  ;;  %v2890_v33 = vadd.f32 %v2889_v3, %v2759_v32  ;;  %v2631_v61 = vadd.f32 %v6519_v14, %v2500_v17  ;;  %v2062_v14 = vld [vmem:[%s7998_s5 + $0x2d0] sm:$0xff] }
 0x2f7   : > { %4328 = vmatmul.msk.f32.gmra.mxu3 %vm2352_vm3, %v2063_v22  ;;  %v2067_v22 = vld [vmem:[%s7998_s5 + $0x2f8] sm:$0xff] }
 0x2f8   : > { %v3523_v24 = vmax.f32 %v2890_v33, 0.0  ;;  %2808 = vmatmul.f32.gmra.mxu2 %v2058_v11  ;;  %v2503_v33 = vadd.f32 %v6507_v56, %v6512_v25  ;;  %v2071_v56 = vld [vmem:[%s7998_s5 + $0x318] sm:$0xff] }
 0x2f9   : > { %2725 = vmatmul.f32.gmra.mxu1 %v2121_v57 }
 0x2fa   : > { %v2895_v9 = vpop.f32.mrf.mxu3  ;;  %v6893_v58 = vpop.f32.mrf.mxu0  ;;  %v3827_v44 = vmul.f32 %v6891_v15, %v3523_v24 }
 0x2fb   : > { %v2761_v32 = vpop.f32.mrf.mxu2 }
 0x2fc   : > { %v3898_v3 = vadd.f32 %v3897_v26, %v3827_v44  ;;  %v2762_v40 = vadd.f32 %v2761_v32, %v2631_v61  ;;  %v4432_v26 = vld [vmem:[%s7998_s5 + $0x8] sm:$0xff]  ;;  %v6914_v61 = vpop.permute.xlu0 %3656  ;;  %v2634_v32 = vadd.f32 %v6542_v6, %v2503_v33  ;;  %v2066_v6 = vld [vmem:[%s7998_s5 + $0x2f0] sm:$0xff] }
 0x2fd   : > { %3010 = vmatmul.f32.gmra.mxu0 %v4431_v51  ;;  %8266 = vst [vmem:[#allocation10_spill] sm:$0xff] %v6914_v61 }
 0x2fe   : > { %v6903_v57 = vpop.f32.mrf.mxu1  ;;  %v2893_v11 = vadd.f32 %v2892_v4, %v2762_v40 }
 0x2ff   : > { %4329 = vmatmul.msk.f32.gmra.mxu3 %vm2352_vm3, %v2067_v22 }
 0x300   : > { %v3525_v17 = vmax.f32 %v2893_v11, 0.0  ;;  %2811 = vmatmul.f32.gmra.mxu2 %v2062_v14  ;;  %v4433_v14 = vld [vmem:[%s7998_s5 + $0x40] sm:$0xff] }
 0x301   : > { %3138 = vmatmul.f32.vlgmr.msra.gmra.mxu1 %v4432_v26 }
 0x302   : > { %v2898_v24 = vpop.f32.mrf.mxu3  ;;  %v6916_v44 = vpop.f32.mrf.mxu0  ;;  %v3829_v22 = vmul.f32 %v6914_v61, %v3525_v17  ;;  %v2506_v17 = vadd.f32 %v6528_v37, %v6536_v46  ;;  %v2075_v37 = vld [vmem:[%s7998_s5 + $0x338] sm:$0xff] }
 0x303   : > { %v2764_v4 = vpop.f32.mrf.mxu2 }
 0x304   : > { %v3899_v40 = vadd.f32 %v3898_v3, %v3829_v22  ;;  %v2765_v51 = vadd.f32 %v2764_v4, %v2634_v32  ;;  %v4434_v3 = vld [vmem:[%s7998_s5 + $0x28] sm:$0xff]  ;;  %v6937_v22 = vpop.permute.xlu1 %3661 }
 0x305   : > { %3013 = vmatmul.f32.gmra.mxu0 %v4433_v14  ;;  %8267 = vst [vmem:[#allocation12_spill] sm:$0xff] %v6937_v22  ;;  %v2637_v14 = vadd.f32 %v6561_v54, %v2506_v17  ;;  %v2070_v54 = vld [vmem:[%s7998_s5 + $0x310] sm:$0xff] }
 0x306   : > { %v6926_v11 = vpop.f32.mrf.mxu1  ;;  %v2896_v33 = vadd.f32 %v2895_v9, %v2765_v51 }
 0x307   : > { %4330 = vmatmul.msk.f32.gmra.mxu3 %vm2352_vm3, %v2071_v56 }
 0x308   : > { %v3527_v26 = vmax.f32 %v2896_v33, 0.0  ;;  %2814 = vmatmul.f32.gmra.mxu2 %v2066_v6  ;;  %v4435_v33 = vld [vmem:[%s7998_s5 + $0x60] sm:$0xff] }
 0x309   : > { %3141 = vmatmul.f32.gmra.mxu1 %v4434_v3 }
 0x30a   : > { %v2901_v32 = vpop.f32.mrf.mxu3  ;;  %v6939_v4 = vpop.f32.mrf.mxu0  ;;  %v3831_v56 = vmul.f32 %v6937_v22, %v3527_v26  ;;  %v2509_v26 = vadd.f32 %v6551_v42, %v6540_v62  ;;  %v2079_v42 = vld [vmem:[%s7998_s5 + $0x358] sm:$0xff] }
 0x30b   : > { %v2767_v9 = vpop.f32.mrf.mxu2 }
 0x30c   : > { %v3900_v51 = vadd.f32 %v3899_v40, %v3831_v56  ;;  %v2768_v6 = vadd.f32 %v2767_v9, %v2637_v14  ;;  %v4436_v40 = vld [vmem:[%s7998_s5 + $0x48] sm:$0xff]  ;;  %v6960_v56 = vpop.permute.xlu2 %3666 }
 0x30d   : > { %3016 = vmatmul.f32.gmra.mxu0 %v4435_v33  ;;  %8268 = vst [vmem:[#allocation14_spill] sm:$0xff] %v6960_v56  ;;  %v2640_v33 = vadd.f32 %v6582_v28, %v2509_v26  ;;  %v2074_v28 = vld [vmem:[%s7998_s5 + $0x330] sm:$0xff]  ;;  %v2512_v26 = vadd.f32 %v6574_v36, %v6538_v55  ;;  %v2083_v36 = vld [vmem:[%s7998_s5 + $0x378] sm:$0xff] }
 0x30e   : > { %v6949_v3 = vpop.f32.mrf.mxu1  ;;  %v2899_v17 = vadd.f32 %v2898_v24, %v2768_v6 }
 0x30f   : > { %4331 = vmatmul.msk.f32.gmra.mxu3 %vm2352_vm3, %v2075_v37 }
 0x310   : > { %v3529_v22 = vmax.f32 %v2899_v17, 0.0  ;;  %2817 = vmatmul.f32.gmra.mxu2 %v2070_v54  ;;  %v4437_v17 = vld [vmem:[%s7998_s5 + $0x80] sm:$0xff] }
 0x311   : > { %3144 = vmatmul.f32.gmra.mxu1 %v4436_v40 }
 0x312   : > { %v2904_v14 = vpop.f32.mrf.mxu3  ;;  %v6962_v9 = vpop.f32.mrf.mxu0  ;;  %v3833_v37 = vmul.f32 %v6960_v56, %v3529_v22 }
 0x313   : > { %v2770_v24 = vpop.f32.mrf.mxu2 }
 0x314   : > { %v3901_v6 = vadd.f32 %v3900_v51, %v3833_v37  ;;  %v2771_v54 = vadd.f32 %v2770_v24, %v2640_v33  ;;  %v4438_v51 = vld [vmem:[%s7998_s5 + $0x68] sm:$0xff]  ;;  %v6983_v37 = vpop.permute.xlu0 %3671 }
 0x315   : > { %3019 = vmatmul.f32.gmra.mxu0 %v4437_v17  ;;  %8269 = vst [vmem:[#allocation15_spill] sm:$0xff] %v6983_v37  ;;  %v2643_v17 = vadd.f32 %v6605_v52, %v2512_v26  ;;  %v2078_v52 = vld [vmem:[%s7998_s5 + $0x350] sm:$0xff]  ;;  %v2515_v26 = vadd.f32 %v6597_v34, %v6559_v29  ;;  %v2087_v34 = vld [vmem:[%s7998_s5 + $0x398] sm:$0xff] }
 0x316   : > { %v6972_v40 = vpop.f32.mrf.mxu1  ;;  %v2902_v22 = vadd.f32 %v2901_v32, %v2771_v54 }
 0x317   : > { %4332 = vmatmul.msk.f32.gmra.mxu3 %vm2352_vm3, %v2079_v42 }
 0x318   : > { %v3531_v56 = vmax.f32 %v2902_v22, 0.0  ;;  %2820 = vmatmul.f32.gmra.mxu2 %v2074_v28  ;;  %v4439_v22 = vld [vmem:[%s7998_s5 + $0xa0] sm:$0xff] }
 0x319   : > { %3147 = vmatmul.f32.gmra.mxu1 %v4438_v51 }
 0x31a   : > { %v2907_v33 = vpop.f32.mrf.mxu3  ;;  %v6985_v24 = vpop.f32.mrf.mxu0  ;;  %v3835_v42 = vmul.f32 %v6983_v37, %v3531_v56 }
 0x31b   : > { %v2773_v32 = vpop.f32.mrf.mxu2 }
 0x31c   : > { %v3902_v54 = vadd.f32 %v3901_v6, %v3835_v42  ;;  %v2774_v28 = vadd.f32 %v2773_v32, %v2643_v17  ;;  %v4440_v6 = vld [vmem:[%s7998_s5 + $0x88] sm:$0xff]  ;;  %v7006_v42 = vpop.permute.xlu1 %3676 }
 0x31d   : > { %3022 = vmatmul.f32.gmra.mxu0 %v4439_v22  ;;  %8270 = vst [vmem:[#allocation16_spill] sm:$0xff] %v7006_v42  ;;  %v2646_v22 = vadd.f32 %v6628_v13, %v2515_v26  ;;  %v2082_v13 = vld [vmem:[%s7998_s5 + $0x370] sm:$0xff]  ;;  %v2518_v26 = vadd.f32 %v6616_v48, %v6572_v2  ;;  %v2091_v48 = vld [vmem:[%s7998_s5 + $0x3b8] sm:$0xff] }
 0x31e   : > { %v6995_v51 = vpop.f32.mrf.mxu1  ;;  %v2905_v56 = vadd.f32 %v2904_v14, %v2774_v28 }
 0x31f   : > { %4333 = vmatmul.msk.f32.gmra.mxu3 %vm2352_vm3, %v2083_v36 }
 0x320   : > { %v3533_v37 = vmax.f32 %v2905_v56, 0.0  ;;  %2823 = vmatmul.f32.gmra.mxu2 %v2078_v52  ;;  %v4441_v56 = vld [vmem:[%s7998_s5 + $0xc0] sm:$0xff] }
 0x321   : > { %3150 = vmatmul.f32.gmra.mxu1 %v4440_v6 }
 0x322   : > { %v2910_v17 = vpop.f32.mrf.mxu3  ;;  %v7008_v32 = vpop.f32.mrf.mxu0  ;;  %v3837_v36 = vmul.f32 %v7006_v42, %v3533_v37 }
 0x323   : > { %v2776_v14 = vpop.f32.mrf.mxu2 }
 0x324   : > { %v3903_v28 = vadd.f32 %v3902_v54, %v3837_v36  ;;  %v2777_v52 = vadd.f32 %v2776_v14, %v2646_v22  ;;  %v4442_v54 = vld [vmem:[%s7998_s5 + $0xa8] sm:$0xff]  ;;  %v7029_v36 = vpop.permute.xlu2 %3681 }
 0x325   : > { %3025 = vmatmul.f32.gmra.mxu0 %v4441_v56  ;;  %8271 = vst [vmem:[#allocation49_spill] sm:$0xff] %v7029_v36  ;;  %v2649_v56 = vadd.f32 %v6651_v41, %v2518_v26  ;;  %v2086_v41 = vld [vmem:[%s7998_s5 + $0x390] sm:$0xff]  ;;  %v2521_v26 = vadd.f32 %v6637_v21, %v6570_v53  ;;  %v2095_v21 = vld [vmem:[%s7998_s5 + $0x3d8] sm:$0xff] }
 0x326   : > { %v7018_v6 = vpop.f32.mrf.mxu1  ;;  %v2908_v37 = vadd.f32 %v2907_v33, %v2777_v52 }
 0x327   : > { %4334 = vmatmul.msk.f32.gmra.mxu3 %vm2352_vm3, %v2087_v34 }
 0x328   : > { %v3535_v42 = vmax.f32 %v2908_v37, 0.0  ;;  %2826 = vmatmul.f32.gmra.mxu2 %v2082_v13  ;;  %v4443_v37 = vld [vmem:[%s7998_s5 + $0xe0] sm:$0xff] }
 0x329   : > { %3153 = vmatmul.f32.gmra.mxu1 %v4442_v54 }
 0x32a   : > { %v2913_v22 = vpop.f32.mrf.mxu3  ;;  %v7031_v14 = vpop.f32.mrf.mxu0  ;;  %v3839_v34 = vmul.f32 %v7029_v36, %v3535_v42 }
 0x32b   : > { %v2779_v33 = vpop.f32.mrf.mxu2 }
 0x32c   : > { %v3904_v52 = vadd.f32 %v3903_v28, %v3839_v34  ;;  %v2780_v13 = vadd.f32 %v2779_v33, %v2649_v56  ;;  %v4444_v28 = vld [vmem:[%s7998_s5 + $0xc8] sm:$0xff]  ;;  %v7052_v34 = vpop.permute.xlu0 %3686 }
 0x32d   : > { %3028 = vmatmul.f32.gmra.mxu0 %v4443_v37  ;;  %8272 = vst [vmem:[#allocation50_spill] sm:$0xff] %v7052_v34  ;;  %v2652_v37 = vadd.f32 %v6670_v49, %v2521_v26  ;;  %v2090_v49 = vld [vmem:[%s7998_s5 + $0x3b0] sm:$0xff]  ;;  %v2524_v26 = vadd.f32 %v6660_v7, %v6591_v18  ;;  %v2099_v7 = vld [vmem:[%s7998_s5 + $0x3f8] sm:$0xff] }
 0x32e   : > { %v7041_v54 = vpop.f32.mrf.mxu1  ;;  %v2911_v42 = vadd.f32 %v2910_v17, %v2780_v13 }
 0x32f   : > { %4335 = vmatmul.msk.f32.gmra.mxu3 %vm2352_vm3, %v2091_v48 }
 0x330   : > { %v3537_v36 = vmax.f32 %v2911_v42, 0.0  ;;  %2829 = vmatmul.f32.gmra.mxu2 %v2086_v41  ;;  %v4445_v42 = vld [vmem:[%s7998_s5 + $0x100] sm:$0xff] }
 0x331   : > { %3156 = vmatmul.f32.gmra.mxu1 %v4444_v28 }
 0x332   : > { %v2916_v56 = vpop.f32.mrf.mxu3  ;;  %v7054_v33 = vpop.f32.mrf.mxu0  ;;  %v3841_v48 = vmul.f32 %v7052_v34, %v3537_v36 }
 0x333   : > { %v2782_v17 = vpop.f32.mrf.mxu2 }
 0x334   : > { %v3905_v13 = vadd.f32 %v3904_v52, %v3841_v48  ;;  %v2783_v41 = vadd.f32 %v2782_v17, %v2652_v37  ;;  %v4446_v52 = vld [vmem:[%s7998_s5 + $0xe8] sm:$0xff]  ;;  %v7075_v48 = vpop.permute.xlu1 %3691 }
 0x335   : > { %3031 = vmatmul.f32.gmra.mxu0 %v4445_v42  ;;  %8273 = vst [vmem:[#allocation51_spill] sm:$0xff] %v7075_v48  ;;  %v2655_v42 = vadd.f32 %v6691_v59, %v2524_v26  ;;  %v2094_v59 = vld [vmem:[%s7998_s5 + $0x3d0] sm:$0xff]  ;;  %v2527_v26 = vadd.f32 %v6683_v63, %v6595_v10  ;;  %v2103_v63 = vld [vmem:[%s7998_s5 + $0x418] sm:$0xff] }
 0x336   : > { %v7064_v28 = vpop.f32.mrf.mxu1  ;;  %v2914_v36 = vadd.f32 %v2913_v22, %v2783_v41 }
 0x337   : > { %4336 = vmatmul.msk.f32.gmra.mxu3 %vm2352_vm3, %v2095_v21 }
 0x338   : > { %v3539_v34 = vmax.f32 %v2914_v36, 0.0  ;;  %2832 = vmatmul.f32.gmra.mxu2 %v2090_v49  ;;  %v4447_v36 = vld [vmem:[%s7998_s5 + $0x120] sm:$0xff] }
 0x339   : > { %3159 = vmatmul.f32.gmra.mxu1 %v4446_v52 }
 0x33a   : > { %v2919_v37 = vpop.f32.mrf.mxu3  ;;  %v7077_v17 = vpop.f32.mrf.mxu0  ;;  %v3843_v21 = vmul.f32 %v7075_v48, %v3539_v34 }
 0x33b   : > { %v2785_v22 = vpop.f32.mrf.mxu2 }
 0x33c   : > { %v3906_v41 = vadd.f32 %v3905_v13, %v3843_v21  ;;  %v2786_v49 = vadd.f32 %v2785_v22, %v2655_v42  ;;  %v4448_v13 = vld [vmem:[%s7998_s5 + $0x108] sm:$0xff]  ;;  %v7098_v21 = vpop.permute.xlu2 %3696 }
 0x33d   : > { %3034 = vmatmul.f32.gmra.mxu0 %v4447_v36  ;;  %8274 = vst [vmem:[#allocation52_spill] sm:$0xff] %v7098_v21  ;;  %v2658_v36 = vadd.f32 %v6714_v50, %v2527_v26  ;;  %v2098_v50 = vld [vmem:[%s7998_s5 + $0x3f0] sm:$0xff]  ;;  %v2530_v26 = vadd.f32 %v6706_v8, %v6593_v31  ;;  %v2107_v8 = vld [vmem:[%s7998_s5 + $0x438] sm:$0xff] }
 0x33e   : > { %v7087_v52 = vpop.f32.mrf.mxu1  ;;  %v2917_v34 = vadd.f32 %v2916_v56, %v2786_v49 }
 0x33f   : > { %4337 = vmatmul.msk.f32.gmra.mxu3 %vm2352_vm3, %v2099_v7 }
 0x340   : > { %v3541_v48 = vmax.f32 %v2917_v34, 0.0  ;;  %2835 = vmatmul.f32.gmra.mxu2 %v2094_v59  ;;  %v4449_v34 = vld [vmem:[%s7998_s5 + $0x140] sm:$0xff] }
 0x341   : > { %3162 = vmatmul.f32.gmra.mxu1 %v4448_v13 }
 0x342   : > { %v2922_v42 = vpop.f32.mrf.mxu3  ;;  %v7100_v22 = vpop.f32.mrf.mxu0  ;;  %v3845_v7 = vmul.f32 %v7098_v21, %v3541_v48 }
 0x343   : > { %v2788_v56 = vpop.f32.mrf.mxu2 }
 0x344   : > { %v3907_v49 = vadd.f32 %v3906_v41, %v3845_v7  ;;  %v2789_v59 = vadd.f32 %v2788_v56, %v2658_v36  ;;  %v4450_v41 = vld [vmem:[%s7998_s5 + $0x128] sm:$0xff]  ;;  %v7121_v7 = vpop.permute.xlu0 %3701 }
 0x345   : > { %3037 = vmatmul.f32.gmra.mxu0 %v4449_v34  ;;  %8275 = vst [vmem:[#allocation53_spill] sm:$0xff] %v7121_v7  ;;  %v2661_v34 = vadd.f32 %v6737_v1, %v2530_v26  ;;  %v2102_v1 = vld [vmem:[%s7998_s5 + $0x410] sm:$0xff]  ;;  %v2533_v26 = vadd.f32 %v6725_v35, %v6614_v19  ;;  %v2111_v35 = vld [vmem:[%s7998_s5 + $0x458] sm:$0xff] }
 0x346   : > { %v7110_v13 = vpop.f32.mrf.mxu1  ;;  %v2920_v48 = vadd.f32 %v2919_v37, %v2789_v59 }
 0x347   : > { %4338 = vmatmul.msk.f32.gmra.mxu3 %vm2352_vm3, %v2103_v63 }
 0x348   : > { %v3543_v21 = vmax.f32 %v2920_v48, 0.0  ;;  %2838 = vmatmul.f32.gmra.mxu2 %v2098_v50  ;;  %v4451_v48 = vld [vmem:[%s7998_s5 + $0x160] sm:$0xff] }
 0x349   : > { %3165 = vmatmul.f32.gmra.mxu1 %v4450_v41 }
 0x34a   : > { %v2925_v36 = vpop.f32.mrf.mxu3  ;;  %v7123_v56 = vpop.f32.mrf.mxu0  ;;  %v3847_v63 = vmul.f32 %v7121_v7, %v3543_v21 }
 0x34b   : > { %v2791_v37 = vpop.f32.mrf.mxu2 }
 0x34c   : > { %v3908_v59 = vadd.f32 %v3907_v49, %v3847_v63  ;;  %v2792_v50 = vadd.f32 %v2791_v37, %v2661_v34  ;;  %v4452_v49 = vld [vmem:[%s7998_s5 + $0x148] sm:$0xff]  ;;  %v7144_v63 = vpop.permute.xlu1 %3706 }
 0x34d   : > { %3040 = vmatmul.f32.gmra.mxu0 %v4451_v48  ;;  %8276 = vst [vmem:[#allocation54_spill] sm:$0xff] %v7144_v63  ;;  %v2664_v48 = vadd.f32 %v6760_v60, %v2533_v26  ;;  %v2106_v60 = vld [vmem:[%s7998_s5 + $0x430] sm:$0xff] }
 0x34e   : > { %v7133_v41 = vpop.f32.mrf.mxu1  ;;  %v2923_v21 = vadd.f32 %v2922_v42, %v2792_v50  ;;  %v8277_v26 = vld [vmem:[#allocation11_spill] sm:$0xff] }
 0x34f   : > { %4339 = vmatmul.msk.f32.gmra.mxu3 %vm2352_vm3, %v2107_v8 }
 0x350   : > { %v3545_v7 = vmax.f32 %v2923_v21, 0.0  ;;  %2841 = vmatmul.f32.gmra.mxu2 %v2102_v1  ;;  %v4453_v21 = vld [vmem:[%s7998_s5 + $0x180] sm:$0xff] }
 0x351   : > { %3168 = vmatmul.f32.gmra.mxu1 %v4452_v49 }
 0x352   : > { %v2928_v34 = vpop.f32.mrf.mxu3  ;;  %v7146_v37 = vpop.f32.mrf.mxu0  ;;  %v3849_v8 = vmul.f32 %v7144_v63, %v3545_v7  ;;  %v2536_v63 = vadd.f32 %v8277_v26, %v6626_v0  ;;  %v4455_v26 = vld [vmem:[%s7998_s5 + $0x1a0] sm:$0xff] }
 0x353   : > { %v2794_v42 = vpop.f32.mrf.mxu2 }
 0x354   : > { %v3909_v50 = vadd.f32 %v3908_v59, %v3849_v8  ;;  %v2795_v1 = vadd.f32 %v2794_v42, %v2664_v48  ;;  %v4454_v59 = vld [vmem:[%s7998_s5 + $0x168] sm:$0xff]  ;;  %v7167_v8 = vpop.permute.xlu2 %3711 }
 0x355   : > { %3043 = vmatmul.f32.gmra.mxu0 %v4453_v21  ;;  %8278 = vst [vmem:[#allocation11_spill] sm:$0xff] %v7167_v8  ;;  %v2667_v21 = vadd.f32 %v6782_v30, %v2536_v63  ;;  %v2110_v30 = vld [vmem:[%s7998_s5 + $0x450] sm:$0xff] }
 0x356   : > { %v7156_v49 = vpop.f32.mrf.mxu1  ;;  %v2926_v7 = vadd.f32 %v2925_v36, %v2795_v1  ;;  %v2115_v36 = vld [vmem:[%s7998_s5 + $0x478] sm:$0xff] }
 0x357   : > { %4340 = vmatmul.msk.f32.gmra.mxu3 %vm2352_vm3, %v2111_v35  ;;  %v8279_v63 = vld [vmem:[#allocation8_spill] sm:$0xff] }
 0x358   : > { %v3547_v18 = vmax.f32 %v2926_v7, 0.0  ;;  %2844 = vmatmul.f32.gmra.mxu2 %v2106_v60 }
 0x359   : > { %3171 = vmatmul.f32.gmra.mxu1 %v4454_v59 }
 0x35a   : > { %v2931_v48 = vpop.f32.mrf.mxu3  ;;  %v7169_v42 = vpop.f32.mrf.mxu0  ;;  %v3851_v35 = vmul.f32 %v7167_v8, %v3547_v18  ;;  %v8280_v8 = vld [vmem:[#allocation27_spill] sm:$0xff] }
 0x35b   : > { %v2797_v1 = vpop.f32.mrf.mxu2  ;;  %v2539_v53 = vadd.f32 %v8280_v8, %v8279_v63 }
 0x35c   : > { %v3910_v60 = vadd.f32 %v3909_v50, %v3851_v35  ;;  %v2798_v7 = vadd.f32 %v2797_v1, %v2667_v21  ;;  %v4456_v50 = vld [vmem:[%s7998_s5 + $0x188] sm:$0xff]  ;;  %v7190_v35 = vpop.permute.xlu0 %3716 }
 0x35d   : > { %3046 = vmatmul.f32.gmra.mxu0 %v4455_v26  ;;  %8281 = vst [vmem:[#allocation8_spill] sm:$0xff] %v7190_v35  ;;  %v2670_v26 = vadd.f32 %v6806_v20, %v2539_v53  ;;  %v2114_v53 = vld [vmem:[%s7998_s5 + $0x470] sm:$0xff]  ;;  %v8282_v20 = vld [vmem:[#allocation38_spill] sm:$0xff] }
 0x35e   : > { %v7179_v59 = vpop.f32.mrf.mxu1  ;;  %v2929_v18 = vadd.f32 %v2928_v34, %v2798_v7  ;;  %v2119_v34 = vld [vmem:[%s7998_s5 + $0x498] sm:$0xff] }
 0x35f   : > { %4341 = vmatmul.msk.f32.gmra.mxu3 %vm2352_vm3, %v2115_v36 }
 0x360   : > { %v3549_v2 = vmax.f32 %v2929_v18, 0.0  ;;  %2847 = vmatmul.f32.gmra.mxu2 %v2110_v30  ;;  %v4457_v18 = vld [vmem:[%s7998_s5 + $0x1c0] sm:$0xff] }
 0x361   : > { %3174 = vmatmul.f32.gmra.mxu1 %v4456_v50 }
 0x362   : > { %v2934_v21 = vpop.f32.mrf.mxu3  ;;  %v7192_v1 = vpop.f32.mrf.mxu0  ;;  %v3853_v36 = vmul.f32 %v7190_v35, %v3549_v2  ;;  %v8283_v35 = vld [vmem:[#allocation17_spill] sm:$0xff] }
 0x363   : > { %v2800_v8 = vpop.f32.mrf.mxu2  ;;  %v2542_v29 = vadd.f32 %v8283_v35, %v8282_v20 }
 0x364   : > { %v3911_v7 = vadd.f32 %v3910_v60, %v3853_v36  ;;  %v2801_v30 = vadd.f32 %v2800_v8, %v2670_v26  ;;  %v4458_v60 = vld [vmem:[%s7998_s5 + $0x1a8] sm:$0xff]  ;;  %v7213_v36 = vpop.permute.xlu1 %3721 }
 0x365   : > { %3049 = vmatmul.f32.gmra.mxu0 %v4457_v18  ;;  %8284 = vst [vmem:[#allocation27_spill] sm:$0xff] %v7213_v36  ;;  %v2673_v18 = vadd.f32 %v6834_v38, %v2542_v29  ;;  %v2118_v38 = vld [vmem:[%s7998_s5 + $0x490] sm:$0xff] }
 0x366   : > { %v7202_v50 = vpop.f32.mrf.mxu1  ;;  %v2932_v2 = vadd.f32 %v2931_v48, %v2801_v30  ;;  %v2123_v48 = vld [vmem:[%s7998_s5 + $0x4b8] sm:$0xf] }
 0x367   : > { %4342 = vmatmul.msk.f32.gmra.mxu3 %vm2352_vm3, %v2119_v34  ;;  %v8285_v29 = vld [vmem:[#allocation44_spill] sm:$0xff] }
 0x368   : > { %v3551_v55 = vmax.f32 %v2932_v2, 0.0  ;;  %2850 = vmatmul.f32.gmra.mxu2 %v2114_v53  ;;  %v4459_v2 = vld [vmem:[%s7998_s5 + $0x1e0] sm:$0xff] }
 0x369   : > { %3177 = vmatmul.f32.gmra.mxu1 %v4458_v60 }
 0x36a   : > { %v2937_v26 = vpop.f32.mrf.mxu3  ;;  %v7215_v8 = vpop.f32.mrf.mxu0  ;;  %v3855_v34 = vmul.f32 %v7213_v36, %v3551_v55  ;;  %v2545_v36 = vadd.f32 %v6823_v43, %v8285_v29  ;;  %v4461_v43 = vld [vmem:[%s7998_s5 + $0x200] sm:$0xff] }
 0x36b   : > { %v2803_v35 = vpop.f32.mrf.mxu2 }
 0x36c   : > { %v3912_v30 = vadd.f32 %v3911_v7, %v3855_v34  ;;  %v2804_v53 = vadd.f32 %v2803_v35, %v2673_v18  ;;  %v4460_v7 = vld [vmem:[%s7998_s5 + $0x1c8] sm:$0xff]  ;;  %v7236_v34 = vpop.permute.xlu2 %3726 }
 0x36d   : > { %3052 = vmatmul.f32.gmra.mxu0 %v4459_v2  ;;  %8286 = vst [vmem:[#allocation38_spill] sm:$0xff] %v7236_v34  ;;  %v2676_v2 = vadd.f32 %v6857_v23, %v2545_v36  ;;  %v4462_v23 = vld [vmem:[%s7998_s5 + $0x18] sm:$0xff] }
 0x36e   : > { %v7225_v60 = vpop.f32.mrf.mxu1  ;;  %v2935_v55 = vadd.f32 %v2934_v21, %v2804_v53  ;;  %v8287_v36 = vld [vmem:[#allocation41_spill] sm:$0xff] }
 0x36f   : > { %4343 = vmatmul.msk.f32.gmra.mxu3 %vm2352_vm3, %v2123_v48 }
 0x370   : > { %v3553_v62 = vmax.f32 %v2935_v55, 0.0  ;;  %2853 = vmatmul.f32.gmra.mxu2 %v2118_v38  ;;  %v2122_v55 = vld [vmem:[%s7998_s5 + $0x4b0] sm:$0xf] }
 0x371   : > { %3180 = vmatmul.f32.gmra.mxu1 %v4460_v7 }
 0x372   : > { %v2940_v18 = vpop.f32.mrf.mxu3  ;;  %v7238_v35 = vpop.f32.mrf.mxu0  ;;  %v3857_v48 = vmul.f32 %v7236_v34, %v3553_v62 }
 0x373   : > { %v2806_v21 = vpop.f32.mrf.mxu2 }
 0x374   : > { %v3913_v53 = vadd.f32 %v3912_v30, %v3857_v48  ;;  %v2807_v46 = vadd.f32 %v2806_v21, %v2676_v2  ;;  %v2548_v30 = vadd.f32 %v6847_v47, %v8287_v36  ;;  %v4463_v2 = vld [vmem:[%s7998_s5 + $0x1e8] sm:$0xff]  ;;  %v7259_v21 = vpop.permute.xlu0 %3731  ;;  %v4464_v47 = vld [vmem:[%s7998_s5 + $0x220] sm:$0xff] }
 0x375   : > { %3055 = vmatmul.f32.gmra.mxu0 %v4461_v43  ;;  %8288 = vst [vmem:[#allocation17_spill] sm:$0xff] %v7259_v21 }
 0x376   : > { %v7245_v38 = vpop.f32.mrf.mxu1  ;;  %v2938_v62 = vadd.f32 %v2937_v26, %v2807_v46  ;;  %v2679_v34 = vadd.f32 %v6880_v16, %v2548_v30  ;;  %v8289_v16 = vld [vmem:[#allocation48_spill] sm:$0xff] }
 0x377   : > { %4344 = vmatmul.msk.f32.vlgmr.msra.gmra.mxu3 %vm2352_vm3, %v4462_v23  ;;  %v2551_v30 = vadd.f32 %v6870_v12, %v8289_v16 }
 0x378   : > { %v3555_v7 = vmax.f32 %v2938_v62, 0.0  ;;  %2856 = vmatmul.f32.gmra.mxu2 %v2122_v55  ;;  %v4465_v62 = vld [vmem:[%s7998_s5 + $0x38] sm:$0xff] }
 0x379   : > { %3183 = vmatmul.f32.gmra.mxu1 %v4463_v2 }
 0x37a   : > { %v2943_v48 = vpop.f32.mrf.mxu3  ;;  %v7261_v43 = vpop.f32.mrf.mxu0  ;;  %v3859_v23 = vmul.f32 %v7259_v21, %v3555_v7 }
 0x37b   : > { %v2809_v46 = vpop.f32.mrf.mxu2 }
 0x37c   : > { %v3914_v26 = vadd.f32 %v3913_v53, %v3859_v23  ;;  %v2810_v61 = vadd.f32 %v2809_v46, %v2679_v34  ;;  %v4466_v34 = vld [vmem:[%s7998_s5 + $0x208] sm:$0xff]  ;;  %v4467_v53 = vld [vmem:[%s7998_s5 + $0x10] sm:$0xff]  ;;  %v7282_v46 = vpop.permute.xlu1 %3736 }
 0x37d   : > { %3058 = vmatmul.f32.gmra.mxu0 %v4464_v47  ;;  %8290 = vst [vmem:[#allocation44_spill] sm:$0xff] %v7282_v46 }
 0x37e   : > { %v7268_v55 = vpop.f32.mrf.mxu1  ;;  %v2941_v2 = vadd.f32 %v2940_v18, %v2810_v61  ;;  %v2682_v61 = vadd.f32 %v6903_v57, %v2551_v30  ;;  %v8291_v57 = vld [vmem:[#allocation22_spill] sm:$0xff] }
 0x37f   : > { %4345 = vmatmul.msk.f32.gmra.mxu3 %vm2352_vm3, %v4465_v62  ;;  %v2554_v30 = vadd.f32 %v6893_v58, %v8291_v57 }
 0x380   : > { %v3557_v7 = vmax.f32 %v2941_v2, 0.0  ;;  %3269 = vmatmul.f32.vlgmr.msra.gmra.mxu2 %v4467_v53  ;;  %v4469_v53 = vld [vmem:[%s7998_s5 + $0x58] sm:$0xff] }
 0x381   : > { %3186 = vmatmul.f32.gmra.mxu1 %v4466_v34  ;;  %v4468_v34 = vld [vmem:[%s7998_s5 + $0x240] sm:$0xff] }
 0x382   : > { %v2946_v23 = vpop.f32.mrf.mxu3  ;;  %v7284_v47 = vpop.f32.mrf.mxu0  ;;  %v3861_v12 = vmul.f32 %v7282_v46, %v3557_v7 }
 0x383   : > { %v2812_v18 = vpop.f32.mrf.mxu2 }
 0x384   : > { %v3915_v62 = vadd.f32 %v3914_v26, %v3861_v12  ;;  %v2813_v2 = vadd.f32 %v2812_v18, %v2682_v61  ;;  %v4470_v26 = vld [vmem:[%s7998_s5 + $0x228] sm:$0xff]  ;;  %v4471_v61 = vld [vmem:[%s7998_s5 + $0x30] sm:$0xff]  ;;  %v7305_v18 = vpop.permute.xlu2 %3741 }
 0x385   : > { %3061 = vmatmul.f32.gmra.mxu0 %v4468_v34  ;;  %8292 = vst [vmem:[#allocation41_spill] sm:$0xff] %v7305_v18 }
 0x386   : > { %v7291_v21 = vpop.f32.mrf.mxu1  ;;  %v2944_v25 = vadd.f32 %v2943_v48, %v2813_v2  ;;  %v2685_v48 = vadd.f32 %v6926_v11, %v2554_v30  ;;  %v8293_v11 = vld [vmem:[#allocation23_spill] sm:$0xff] }
 0x387   : > { %4346 = vmatmul.msk.f32.gmra.mxu3 %vm2352_vm3, %v4469_v53  ;;  %v2557_v30 = vadd.f32 %v6916_v44, %v8293_v11 }
 0x388   : > { %v3559_v7 = vmax.f32 %v2944_v25, 0.0  ;;  %3272 = vmatmul.f32.gmra.mxu2 %v4471_v61  ;;  %v4473_v61 = vld [vmem:[%s7998_s5 + $0x78] sm:$0xff] }
 0x389   : > { %3189 = vmatmul.f32.gmra.mxu1 %v4470_v26  ;;  %v4472_v26 = vld [vmem:[%s7998_s5 + $0x260] sm:$0xff] }
 0x38a   : > { %v2949_v12 = vpop.f32.mrf.mxu3  ;;  %v7307_v34 = vpop.f32.mrf.mxu0  ;;  %v3863_v58 = vmul.f32 %v7305_v18, %v3559_v7 }
 0x38b   : > { %v2815_v25 = vpop.f32.mrf.mxu2 }
 0x38c   : > { %v3916_v2 = vadd.f32 %v3915_v62, %v3863_v58  ;;  %v2816_v53 = vadd.f32 %v2815_v25, %v2685_v48  ;;  %v4474_v62 = vld [vmem:[%s7998_s5 + $0x248] sm:$0xff]  ;;  %v4475_v48 = vld [vmem:[%s7998_s5 + $0x50] sm:$0xff]  ;;  %v7328_v25 = vpop.permute.xlu0 %3746 }
 0x38d   : > { %3064 = vmatmul.f32.gmra.mxu0 %v4472_v26  ;;  %8294 = vst [vmem:[#allocation48_spill] sm:$0xff] %v7328_v25 }
 0x38e   : > { %v7314_v46 = vpop.f32.mrf.mxu1  ;;  %v2947_v57 = vadd.f32 %v2946_v23, %v2816_v53  ;;  %v2688_v23 = vadd.f32 %v6949_v3, %v2557_v30  ;;  %v8295_v3 = vld [vmem:[#allocation30_spill] sm:$0xff] }
 0x38f   : > { %4347 = vmatmul.msk.f32.gmra.mxu3 %vm2352_vm3, %v4473_v61  ;;  %v2560_v30 = vadd.f32 %v6939_v4, %v8295_v3 }
 0x390   : > { %v3561_v7 = vmax.f32 %v2947_v57, 0.0  ;;  %3275 = vmatmul.f32.gmra.mxu2 %v4475_v48  ;;  %v4477_v48 = vld [vmem:[%s7998_s5 + $0x98] sm:$0xff] }
 0x391   : > { %3192 = vmatmul.f32.gmra.mxu1 %v4474_v62  ;;  %v4476_v62 = vld [vmem:[%s7998_s5 + $0x280] sm:$0xff] }
 0x392   : > { %v2952_v58 = vpop.f32.mrf.mxu3  ;;  %v7330_v26 = vpop.f32.mrf.mxu0  ;;  %v3865_v44 = vmul.f32 %v7328_v25, %v3561_v7 }
 0x393   : > { %v2818_v57 = vpop.f32.mrf.mxu2 }
 0x394   : > { %v3917_v53 = vadd.f32 %v3916_v2, %v3865_v44  ;;  %v2819_v61 = vadd.f32 %v2818_v57, %v2688_v23  ;;  %v4478_v2 = vld [vmem:[%s7998_s5 + $0x268] sm:$0xff]  ;;  %v4479_v23 = vld [vmem:[%s7998_s5 + $0x70] sm:$0xff]  ;;  %v7351_v57 = vpop.permute.xlu1 %3751 }
 0x395   : > { %3067 = vmatmul.f32.gmra.mxu0 %v4476_v62  ;;  %8296 = vst [vmem:[#allocation55_spill] sm:$0xff] %v7351_v57 }
 0x396   : > { %v7337_v18 = vpop.f32.mrf.mxu1  ;;  %v2950_v11 = vadd.f32 %v2949_v12, %v2819_v61  ;;  %v2691_v12 = vadd.f32 %v6972_v40, %v2560_v30  ;;  %v8297_v40 = vld [vmem:[#allocation19_spill] sm:$0xff] }
 0x397   : > { %4348 = vmatmul.msk.f32.gmra.mxu3 %vm2352_vm3, %v4477_v48  ;;  %v2563_v30 = vadd.f32 %v6962_v9, %v8297_v40 }
 0x398   : > { %v3563_v7 = vmax.f32 %v2950_v11, 0.0  ;;  %3278 = vmatmul.f32.gmra.mxu2 %v4479_v23  ;;  %v4481_v23 = vld [vmem:[%s7998_s5 + $0xb8] sm:$0xff] }
 0x399   : > { %3195 = vmatmul.f32.gmra.mxu1 %v4478_v2  ;;  %v4480_v2 = vld [vmem:[%s7998_s5 + $0x2a0] sm:$0xff] }
 0x39a   : > { %v2955_v44 = vpop.f32.mrf.mxu3  ;;  %v7353_v62 = vpop.f32.mrf.mxu0  ;;  %v3867_v4 = vmul.f32 %v7351_v57, %v3563_v7 }
 0x39b   : > { %v2821_v11 = vpop.f32.mrf.mxu2 }
 0x39c   : > { %v3918_v61 = vadd.f32 %v3917_v53, %v3867_v4  ;;  %v2822_v48 = vadd.f32 %v2821_v11, %v2691_v12  ;;  %v4482_v53 = vld [vmem:[%s7998_s5 + $0x288] sm:$0xff]  ;;  %v4483_v12 = vld [vmem:[%s7998_s5 + $0x90] sm:$0xff]  ;;  %v7374_v11 = vpop.permute.xlu2 %3756 }
 0x39d   : > { %3070 = vmatmul.f32.gmra.mxu0 %v4480_v2  ;;  %8298 = vst [vmem:[#allocation56_spill] sm:$0xff] %v7374_v11 }
 0x39e   : > { %v7360_v25 = vpop.f32.mrf.mxu1  ;;  %v2953_v3 = vadd.f32 %v2952_v58, %v2822_v48  ;;  %v2694_v58 = vadd.f32 %v6995_v51, %v2563_v30  ;;  %v8299_v51 = vld [vmem:[#allocation21_spill] sm:$0xff] }
 0x39f   : > { %4349 = vmatmul.msk.f32.gmra.mxu3 %vm2352_vm3, %v4481_v23  ;;  %v2566_v30 = vadd.f32 %v6985_v24, %v8299_v51 }
 0x3a0   : > { %v3565_v7 = vmax.f32 %v2953_v3, 0.0  ;;  %3281 = vmatmul.f32.gmra.mxu2 %v4483_v12  ;;  %v4485_v12 = vld [vmem:[%s7998_s5 + $0xd8] sm:$0xff] }
 0x3a1   : > { %3198 = vmatmul.f32.gmra.mxu1 %v4482_v53  ;;  %v4484_v53 = vld [vmem:[%s7998_s5 + $0x2c0] sm:$0xff] }
 0x3a2   : > { %v2958_v4 = vpop.f32.mrf.mxu3  ;;  %v7376_v2 = vpop.f32.mrf.mxu0  ;;  %v3869_v9 = vmul.f32 %v7374_v11, %v3565_v7 }
 0x3a3   : > { %v2824_v3 = vpop.f32.mrf.mxu2 }
 0x3a4   : > { %v3919_v48 = vadd.f32 %v3918_v61, %v3869_v9  ;;  %v2825_v23 = vadd.f32 %v2824_v3, %v2694_v58  ;;  %v4486_v61 = vld [vmem:[%s7998_s5 + $0x2a8] sm:$0xff]  ;;  %v4487_v58 = vld [vmem:[%s7998_s5 + $0xb0] sm:$0xff]  ;;  %v7397_v3 = vpop.permute.xlu0 %3761 }
 0x3a5   : > { %3073 = vmatmul.f32.gmra.mxu0 %v4484_v53  ;;  %8300 = vst [vmem:[#allocation57_spill] sm:$0xff] %v7397_v3 }
 0x3a6   : > { %v7383_v57 = vpop.f32.mrf.mxu1  ;;  %v2956_v40 = vadd.f32 %v2955_v44, %v2825_v23  ;;  %v2697_v44 = vadd.f32 %v7018_v6, %v2566_v30  ;;  %v8301_v6 = vld [vmem:[#allocation28_spill] sm:$0xff] }
 0x3a7   : > { %4350 = vmatmul.msk.f32.gmra.mxu3 %vm2352_vm3, %v4485_v12  ;;  %v2569_v30 = vadd.f32 %v7008_v32, %v8301_v6 }
 0x3a8   : > { %v3567_v7 = vmax.f32 %v2956_v40, 0.0  ;;  %3284 = vmatmul.f32.gmra.mxu2 %v4487_v58  ;;  %v4489_v58 = vld [vmem:[%s7998_s5 + $0xf8] sm:$0xff] }
 0x3a9   : > { %3201 = vmatmul.f32.gmra.mxu1 %v4486_v61  ;;  %v4488_v61 = vld [vmem:[%s7998_s5 + $0x2e0] sm:$0xff] }
 0x3aa   : > { %v2961_v9 = vpop.f32.mrf.mxu3  ;;  %v7399_v53 = vpop.f32.mrf.mxu0  ;;  %v3871_v24 = vmul.f32 %v7397_v3, %v3567_v7 }
 0x3ab   : > { %v2827_v40 = vpop.f32.mrf.mxu2 }
 0x3ac   : > { %v3920_v23 = vadd.f32 %v3919_v48, %v3871_v24  ;;  %v2828_v12 = vadd.f32 %v2827_v40, %v2697_v44  ;;  %v4490_v48 = vld [vmem:[%s7998_s5 + $0x2c8] sm:$0xff]  ;;  %v4491_v44 = vld [vmem:[%s7998_s5 + $0xd0] sm:$0xff]  ;;  %v7420_v40 = vpop.permute.xlu1 %3766 }
 0x3ad   : > { %3076 = vmatmul.f32.gmra.mxu0 %v4488_v61  ;;  %8302 = vst [vmem:[#allocation58_spill] sm:$0xff] %v7420_v40 }
 0x3ae   : > { %v7406_v51 = vpop.f32.mrf.mxu1  ;;  %v2959_v11 = vadd.f32 %v2958_v4, %v2828_v12  ;;  %v2700_v4 = vadd.f32 %v7041_v54, %v2569_v30  ;;  %v8303_v54 = vld [vmem:[#allocation18_spill] sm:$0xff] }
 0x3af   : > { %4351 = vmatmul.msk.f32.gmra.mxu3 %vm2352_vm3, %v4489_v58  ;;  %v2572_v30 = vadd.f32 %v7031_v14, %v8303_v54 }
 0x3b0   : > { %v3569_v7 = vmax.f32 %v2959_v11, 0.0  ;;  %3287 = vmatmul.f32.gmra.mxu2 %v4491_v44  ;;  %v4493_v44 = vld [vmem:[%s7998_s5 + $0x118] sm:$0xff] }
 0x3b1   : > { %3204 = vmatmul.f32.gmra.mxu1 %v4490_v48  ;;  %v4492_v48 = vld [vmem:[%s7998_s5 + $0x300] sm:$0xff] }
 0x3b2   : > { %v2964_v24 = vpop.f32.mrf.mxu3  ;;  %v7422_v61 = vpop.f32.mrf.mxu0  ;;  %v3873_v32 = vmul.f32 %v7420_v40, %v3569_v7 }
 0x3b3   : > { %v2830_v11 = vpop.f32.mrf.mxu2 }
 0x3b4   : > { %v3921_v12 = vadd.f32 %v3920_v23, %v3873_v32  ;;  %v2831_v58 = vadd.f32 %v2830_v11, %v2700_v4  ;;  %v4494_v23 = vld [vmem:[%s7998_s5 + $0x2e8] sm:$0xff]  ;;  %v4495_v4 = vld [vmem:[%s7998_s5 + $0xf0] sm:$0xff]  ;;  %v7443_v11 = vpop.permute.xlu2 %3771 }
 0x3b5   : > { %3079 = vmatmul.f32.gmra.mxu0 %v4492_v48  ;;  %8304 = vst [vmem:[#allocation59_spill] sm:$0xff] %v7443_v11 }
 0x3b6   : > { %v7429_v6 = vpop.f32.mrf.mxu1  ;;  %v2962_v3 = vadd.f32 %v2961_v9, %v2831_v58  ;;  %v2703_v9 = vadd.f32 %v7064_v28, %v2572_v30  ;;  %v8305_v28 = vld [vmem:[#allocation26_spill] sm:$0xff] }
 0x3b7   : > { %4352 = vmatmul.msk.f32.gmra.mxu3 %vm2352_vm3, %v4493_v44  ;;  %v2575_v30 = vadd.f32 %v7054_v33, %v8305_v28 }
 0x3b8   : > { %v3571_v7 = vmax.f32 %v2962_v3, 0.0  ;;  %3290 = vmatmul.f32.gmra.mxu2 %v4495_v4  ;;  %v4497_v4 = vld [vmem:[%s7998_s5 + $0x138] sm:$0xff] }
 0x3b9   : > { %3207 = vmatmul.f32.gmra.mxu1 %v4494_v23  ;;  %v4496_v23 = vld [vmem:[%s7998_s5 + $0x320] sm:$0xff] }
 0x3ba   : > { %v2967_v32 = vpop.f32.mrf.mxu3  ;;  %v7445_v48 = vpop.f32.mrf.mxu0  ;;  %v3875_v14 = vmul.f32 %v7443_v11, %v3571_v7 }
 0x3bb   : > { %v2833_v3 = vpop.f32.mrf.mxu2 }
 0x3bc   : > { %v3922_v58 = vadd.f32 %v3921_v12, %v3875_v14  ;;  %v2834_v44 = vadd.f32 %v2833_v3, %v2703_v9  ;;  %v4498_v12 = vld [vmem:[%s7998_s5 + $0x308] sm:$0xff]  ;;  %v4499_v9 = vld [vmem:[%s7998_s5 + $0x110] sm:$0xff]  ;;  %v7466_v3 = vpop.permute.xlu0 %3776 }
 0x3bd   : > { %3082 = vmatmul.f32.gmra.mxu0 %v4496_v23  ;;  %8306 = vst [vmem:[#allocation60_spill] sm:$0xff] %v7466_v3 }
 0x3be   : > { %v7452_v40 = vpop.f32.mrf.mxu1  ;;  %v2965_v54 = vadd.f32 %v2964_v24, %v2834_v44  ;;  %v2706_v24 = vadd.f32 %v7087_v52, %v2575_v30  ;;  %v8307_v52 = vld [vmem:[#allocation32_spill] sm:$0xff] }
 0x3bf   : > { %4353 = vmatmul.msk.f32.gmra.mxu3 %vm2352_vm3, %v4497_v4  ;;  %v2578_v30 = vadd.f32 %v7077_v17, %v8307_v52 }
 0x3c0   : > { %v3573_v7 = vmax.f32 %v2965_v54, 0.0  ;;  %3293 = vmatmul.f32.gmra.mxu2 %v4499_v9  ;;  %v4501_v9 = vld [vmem:[%s7998_s5 + $0x158] sm:$0xff] }
 0x3c1   : > { %3210 = vmatmul.f32.gmra.mxu1 %v4498_v12  ;;  %v4500_v12 = vld [vmem:[%s7998_s5 + $0x340] sm:$0xff] }
 0x3c2   : > { %v2970_v14 = vpop.f32.mrf.mxu3  ;;  %v7468_v23 = vpop.f32.mrf.mxu0  ;;  %v3877_v33 = vmul.f32 %v7466_v3, %v3573_v7 }
 0x3c3   : > { %v2836_v54 = vpop.f32.mrf.mxu2 }
 0x3c4   : > { %v3923_v44 = vadd.f32 %v3922_v58, %v3877_v33  ;;  %v2837_v4 = vadd.f32 %v2836_v54, %v2706_v24  ;;  %v4502_v58 = vld [vmem:[%s7998_s5 + $0x328] sm:$0xff]  ;;  %v4503_v24 = vld [vmem:[%s7998_s5 + $0x130] sm:$0xff]  ;;  %v7489_v54 = vpop.permute.xlu1 %3781 }
 0x3c5   : > { %3085 = vmatmul.f32.gmra.mxu0 %v4500_v12  ;;  %8308 = vst [vmem:[#allocation61_spill] sm:$0xff] %v7489_v54 }
 0x3c6   : > { %v7475_v11 = vpop.f32.mrf.mxu1  ;;  %v2968_v28 = vadd.f32 %v2967_v32, %v2837_v4  ;;  %v2709_v32 = vadd.f32 %v7110_v13, %v2578_v30  ;;  %v8309_v13 = vld [vmem:[#allocation29_spill] sm:$0xff] }
 0x3c7   : > { %4354 = vmatmul.msk.f32.gmra.mxu3 %vm2352_vm3, %v4501_v9  ;;  %v2581_v30 = vadd.f32 %v7100_v22, %v8309_v13 }
 0x3c8   : > { %v3575_v7 = vmax.f32 %v2968_v28, 0.0  ;;  %3296 = vmatmul.f32.gmra.mxu2 %v4503_v24  ;;  %v4505_v24 = vld [vmem:[%s7998_s5 + $0x178] sm:$0xff] }
 0x3c9   : > { %3213 = vmatmul.f32.gmra.mxu1 %v4502_v58  ;;  %v4504_v58 = vld [vmem:[%s7998_s5 + $0x360] sm:$0xff] }
 0x3ca   : > { %v2973_v33 = vpop.f32.mrf.mxu3  ;;  %v7491_v12 = vpop.f32.mrf.mxu0  ;;  %v3879_v17 = vmul.f32 %v7489_v54, %v3575_v7 }
 0x3cb   : > { %v2839_v28 = vpop.f32.mrf.mxu2 }
 0x3cc   : > { %v3924_v4 = vadd.f32 %v3923_v44, %v3879_v17  ;;  %v2840_v9 = vadd.f32 %v2839_v28, %v2709_v32  ;;  %v4506_v44 = vld [vmem:[%s7998_s5 + $0x348] sm:$0xff]  ;;  %v4507_v32 = vld [vmem:[%s7998_s5 + $0x150] sm:$0xff]  ;;  %v7512_v28 = vpop.permute.xlu2 %3786 }
 0x3cd   : > { %3088 = vmatmul.f32.gmra.mxu0 %v4504_v58  ;;  %8310 = vst [vmem:[#allocation62_spill] sm:$0xff] %v7512_v28 }
 0x3ce   : > { %v7498_v3 = vpop.f32.mrf.mxu1  ;;  %v2971_v52 = vadd.f32 %v2970_v14, %v2840_v9  ;;  %v2712_v14 = vadd.f32 %v7133_v41, %v2581_v30  ;;  %v8311_v41 = vld [vmem:[#allocation31_spill] sm:$0xff] }
 0x3cf   : > { %4355 = vmatmul.msk.f32.gmra.mxu3 %vm2352_vm3, %v4505_v24  ;;  %v2584_v30 = vadd.f32 %v7123_v56, %v8311_v41 }
 0x3d0   : > { %v3577_v7 = vmax.f32 %v2971_v52, 0.0  ;;  %3299 = vmatmul.f32.gmra.mxu2 %v4507_v32  ;;  %v4509_v32 = vld [vmem:[%s7998_s5 + $0x198] sm:$0xff] }
 0x3d1   : > { %3216 = vmatmul.f32.gmra.mxu1 %v4506_v44  ;;  %v4508_v44 = vld [vmem:[%s7998_s5 + $0x380] sm:$0xff] }
 0x3d2   : > { %v2976_v17 = vpop.f32.mrf.mxu3  ;;  %v7514_v58 = vpop.f32.mrf.mxu0  ;;  %v3881_v22 = vmul.f32 %v7512_v28, %v3577_v7 }
 0x3d3   : > { %v2842_v52 = vpop.f32.mrf.mxu2 }
 0x3d4   : > { %v3925_v9 = vadd.f32 %v3924_v4, %v3881_v22  ;;  %v2843_v24 = vadd.f32 %v2842_v52, %v2712_v14  ;;  %v4510_v4 = vld [vmem:[%s7998_s5 + $0x368] sm:$0xff]  ;;  %v4511_v14 = vld [vmem:[%s7998_s5 + $0x170] sm:$0xff]  ;;  %v7535_v52 = vpop.permute.xlu0 %3791 }
 0x3d5   : > { %3091 = vmatmul.f32.gmra.mxu0 %v4508_v44  ;;  %8312 = vst [vmem:[#allocation63_spill] sm:$0xff] %v7535_v52 }
 0x3d6   : > { %v7521_v54 = vpop.f32.mrf.mxu1  ;;  %v2974_v13 = vadd.f32 %v2973_v33, %v2843_v24  ;;  %v2715_v33 = vadd.f32 %v7156_v49, %v2584_v30  ;;  %v8313_v49 = vld [vmem:[#allocation25_spill] sm:$0xff] }
 0x3d7   : > { %4356 = vmatmul.msk.f32.gmra.mxu3 %vm2352_vm3, %v4509_v32  ;;  %v2587_v30 = vadd.f32 %v7146_v37, %v8313_v49 }
 0x3d8   : > { %v3579_v7 = vmax.f32 %v2974_v13, 0.0  ;;  %3302 = vmatmul.f32.gmra.mxu2 %v4511_v14  ;;  %v4513_v14 = vld [vmem:[%s7998_s5 + $0x1b8] sm:$0xff] }
 0x3d9   : > { %3219 = vmatmul.f32.gmra.mxu1 %v4510_v4  ;;  %v4512_v4 = vld [vmem:[%s7998_s5 + $0x3a0] sm:$0xff] }
 0x3da   : > { %v2979_v22 = vpop.f32.mrf.mxu3  ;;  %v7537_v44 = vpop.f32.mrf.mxu0  ;;  %v3883_v56 = vmul.f32 %v7535_v52, %v3579_v7 }
 0x3db   : > { %v2845_v13 = vpop.f32.mrf.mxu2 }
 0x3dc   : > { %v3926_v24 = vadd.f32 %v3925_v9, %v3883_v56  ;;  %v2846_v32 = vadd.f32 %v2845_v13, %v2715_v33  ;;  %v4514_v9 = vld [vmem:[%s7998_s5 + $0x388] sm:$0xff]  ;;  %v4515_v33 = vld [vmem:[%s7998_s5 + $0x190] sm:$0xff]  ;;  %v7558_v13 = vpop.permute.xlu1 %3796 }
 0x3dd   : > { %3094 = vmatmul.f32.gmra.mxu0 %v4512_v4  ;;  %8314 = vst [vmem:[#allocation64_spill] sm:$0xff] %v7558_v13 }
 0x3de   : > { %v7544_v28 = vpop.f32.mrf.mxu1  ;;  %v2977_v41 = vadd.f32 %v2976_v17, %v2846_v32  ;;  %v2718_v17 = vadd.f32 %v7179_v59, %v2587_v30  ;;  %v8315_v59 = vld [vmem:[#allocation20_spill] sm:$0xff] }
 0x3df   : > { %4357 = vmatmul.msk.f32.gmra.mxu3 %vm2352_vm3, %v4513_v14  ;;  %v2590_v30 = vadd.f32 %v7169_v42, %v8315_v59 }
 0x3e0   : > { %v3581_v7 = vmax.f32 %v2977_v41, 0.0  ;;  %3305 = vmatmul.f32.gmra.mxu2 %v4515_v33  ;;  %v4517_v33 = vld [vmem:[%s7998_s5 + $0x1d8] sm:$0xff] }
 0x3e1   : > { %3222 = vmatmul.f32.gmra.mxu1 %v4514_v9  ;;  %v4516_v9 = vld [vmem:[%s7998_s5 + $0x3c0] sm:$0xff] }
 0x3e2   : > { %v2982_v56 = vpop.f32.mrf.mxu3  ;;  %v3050_v4 = vpop.f32.mrf.mxu0  ;;  %v3885_v32 = vmul.f32 %v7558_v13, %v3581_v7 }
 0x3e3   : > { %v2848_v37 = vpop.f32.mrf.mxu2 }
 0x3e4   : > { %v3927_v41 = vadd.f32 %v3926_v24, %v3885_v32  ;;  %v2849_v14 = vadd.f32 %v2848_v37, %v2718_v17  ;;  %v4518_v24 = vld [vmem:[%s7998_s5 + $0x3a8] sm:$0xff]  ;;  %v4519_v17 = vld [vmem:[%s7998_s5 + $0x1b0] sm:$0xff]  ;;  %v7579_v37 = vpop.permute.xlu2 %3801 }
 0x3e5   : > { %3097 = vmatmul.f32.gmra.mxu0 %v4516_v9 }
 0x3e6   : > { %v7565_v52 = vpop.f32.mrf.mxu1  ;;  %v2980_v49 = vadd.f32 %v2979_v22, %v2849_v14  ;;  %v2721_v22 = vadd.f32 %v7202_v50, %v2590_v30 }
 0x3e7   : > { %4358 = vmatmul.msk.f32.gmra.mxu3 %vm2352_vm3, %v4517_v33 }
 0x3e8   : > { %v3583_v7 = vmax.f32 %v2980_v49, 0.0  ;;  %3308 = vmatmul.f32.gmra.mxu2 %v4519_v17  ;;  %v3051_v49 = vadd.f32 %v3050_v4, %v6595_v10  ;;  %v4521_v17 = vld [vmem:[%s7998_s5 + $0x1f8] sm:$0xff] }
 0x3e9   : > { %3225 = vmatmul.f32.gmra.mxu1 %v4518_v24  ;;  %v4520_v24 = vld [vmem:[%s7998_s5 + $0x3e0] sm:$0xff] }
 0x3ea   : > { %v2985_v32 = vpop.f32.mrf.mxu3  ;;  %v3053_v9 = vpop.f32.mrf.mxu0  ;;  %v3887_v14 = vmul.f32 %v7579_v37, %v3583_v7  ;;  %v8316_v7 = vld [vmem:[#allocation24_spill] sm:$0xff] }
 0x3eb   : > { %v2851_v42 = vpop.f32.mrf.mxu2  ;;  %v2593_v10 = vadd.f32 %v7192_v1, %v8316_v7 }
 0x3ec   : > { %v3928_v33 = vadd.f32 %v3927_v41, %v3887_v14  ;;  %v2852_v13 = vadd.f32 %v2851_v42, %v2721_v22  ;;  %v4522_v41 = vld [vmem:[%s7998_s5 + $0x3c8] sm:$0xff]  ;;  %v4523_v22 = vld [vmem:[%s7998_s5 + $0x1d0] sm:$0xff]  ;;  %v7601_v42 = vpop.permute.xlu0 %3806 }
 0x3ed   : > { %3100 = vmatmul.f32.gmra.mxu0 %v4520_v24 }
 0x3ee   : > { %v3181_v59 = vpop.f32.mrf.mxu1  ;;  %v2983_v50 = vadd.f32 %v2982_v56, %v2852_v13  ;;  %v2724_v13 = vadd.f32 %v7225_v60, %v2593_v10 }
 0x3ef   : > { %4359 = vmatmul.msk.f32.gmra.mxu3 %vm2352_vm3, %v4521_v17  ;;  %v7591_v30 = vadd.f32 %v3181_v59, %v3051_v49  ;;  %v3054_v49 = vadd.f32 %v3053_v9, %v6593_v31 }
 0x3f0   : > { %v3585_v4 = vmax.f32 %v2983_v50, 0.0  ;;  %3311 = vmatmul.f32.gmra.mxu2 %v4523_v22  ;;  %v4524_v50 = vld [vmem:[%s7998_s5 + $0x400] sm:$0xff]  ;;  %v4525_v22 = vld [vmem:[%s7998_s5 + $0x218] sm:$0xff] }
 0x3f1   : > { %3228 = vmatmul.f32.gmra.mxu1 %v4522_v41 }
 0x3f2   : > { %v2988_v14 = vpop.f32.mrf.mxu3  ;;  %v3056_v56 = vpop.f32.mrf.mxu0  ;;  %v3889_v59 = vmul.f32 %v7601_v42, %v3585_v4  ;;  %v8317_v4 = vld [vmem:[#allocation13_spill] sm:$0xff] }
 0x3f3   : > { %v2854_v1 = vpop.f32.mrf.mxu2  ;;  %v2596_v31 = vadd.f32 %v7215_v8, %v8317_v4 }
 0x3f4   : > { %v3929_v24 = vadd.f32 %v3928_v33, %v3889_v59  ;;  %v2855_v17 = vadd.f32 %v2854_v1, %v2724_v13  ;;  %v4526_v33 = vld [vmem:[%s7998_s5 + $0x3e8] sm:$0xff]  ;;  %v4527_v13 = vld [vmem:[%s7998_s5 + $0x1f0] sm:$0xff]  ;;  %v7623_v1 = vpop.permute.xlu1 %3811 }
 0x3f5   : > { %3103 = vmatmul.f32.gmra.mxu0 %v4524_v50  ;;  %v3057_v50 = vadd.f32 %v3056_v56, %v6614_v19 }
 0x3f6   : > { %v3184_v41 = vpop.f32.mrf.mxu1  ;;  %v2986_v60 = vadd.f32 %v2985_v32, %v2855_v17 }
 0x3f7   : > { %4360 = vmatmul.msk.f32.gmra.mxu3 %vm2352_vm3, %v4525_v22  ;;  %v7613_v10 = vadd.f32 %v3184_v41, %v3054_v49  ;;  %v2727_v49 = vadd.f32 %v7245_v38, %v2596_v31 }
 0x3f8   : > { %v3587_v9 = vmax.f32 %v2986_v60, 0.0  ;;  %3314 = vmatmul.f32.gmra.mxu2 %v4527_v13  ;;  %v4528_v60 = vld [vmem:[%s7998_s5 + $0x420] sm:$0xff]  ;;  %v4529_v13 = vld [vmem:[%s7998_s5 + $0x238] sm:$0xff] }
 0x3f9   : > { %3231 = vmatmul.f32.gmra.mxu1 %v4526_v33 }
 0x3fa   : > { %v3401_v59 = vpop.f32.mrf.mxu3  ;;  %v3059_v32 = vpop.f32.mrf.mxu0  ;;  %v3891_v17 = vmul.f32 %v7623_v1, %v3587_v9  ;;  %v8318_v9 = vld [vmem:[#allocation33_spill] sm:$0xff] }
 0x3fb   : > { %v2857_v8 = vpop.f32.mrf.mxu2  ;;  %v3009_v19 = vadd.f32 %v7238_v35, %v8318_v9 }
 0x3fc   : > { %v3930_v41 = vadd.f32 %v3929_v24, %v3891_v17  ;;  %v2858_v22 = vadd.f32 %v2857_v8, %v2727_v49  ;;  %v4530_v24 = vld [vmem:[%s7998_s5 + $0x408] sm:$0xff]  ;;  %v4531_v49 = vld [vmem:[%s7998_s5 + $0x210] sm:$0xff]  ;;  %v7645_v8 = vpop.permute.xlu2 %3816 }
 0x3fd   : > { %3106 = vmatmul.f32.gmra.mxu0 %v4528_v60  ;;  %v3060_v60 = vadd.f32 %v3059_v32, %v6626_v0  ;;  %v8319_v32 = vld [vmem:[#allocation34_spill] sm:$0xff] }
 0x3fe   : > { %v3187_v33 = vpop.f32.mrf.mxu1  ;;  %v2989_v38 = vadd.f32 %v2988_v14, %v2858_v22 }
 0x3ff   : > { %4361 = vmatmul.msk.f32.gmra.mxu3 %vm2352_vm3, %v4529_v13  ;;  %v7635_v31 = vadd.f32 %v3187_v33, %v3057_v50  ;;  %v3140_v50 = vadd.f32 %v7268_v55, %v3009_v19  ;;  %v4533_v55 = vld [vmem:[%s7998_s5 + $0x258] sm:$0xff] }
 0x400   : > { %v3589_v56 = vmax.f32 %v2989_v38, 0.0  ;;  %3317 = vmatmul.f32.gmra.mxu2 %v4531_v49  ;;  %v4532_v38 = vld [vmem:[%s7998_s5 + $0x440] sm:$0xff]  ;;  %v4534_v49 = vld [vmem:[%s7998_s5 + $0x428] sm:$0xff] }
 0x401   : > { %3234 = vmatmul.f32.gmra.mxu1 %v4530_v24 }
 0x402   : > { %v3404_v17 = vpop.f32.mrf.mxu3  ;;  %v3062_v14 = vpop.f32.mrf.mxu0  ;;  %v3893_v22 = vmul.f32 %v7645_v8, %v3589_v56  ;;  %v3012_v56 = vadd.f32 %v7261_v43, %v8319_v32  ;;  %v4536_v43 = vld [vmem:[%s7998_s5 + $0x460] sm:$0xff] }
 0x403   : > { %v3270_v35 = vpop.f32.mrf.mxu2  ;;  %v8320_v32 = vld [vmem:[#allocation46_spill] sm:$0xff] }
 0x404   : > { %v3931_v33 = vsel %vm642_vm0, %v3893_v22, 0.0  ;;  %v3271_v13 = vadd.f32 %v3270_v35, %v3140_v50  ;;  %v3143_v35 = vadd.f32 %v7291_v21, %v3012_v56  ;;  %v4538_v56 = vld [vmem:[%s7998_s5 + $0x448] sm:$0xff] }
 0x405   : > { %3109 = vmatmul.f32.gmra.mxu0 %v4532_v38  ;;  %v7654_v9 = vadd.f32 %v3931_v33, %v3930_v41  ;;  %v4535_v41 = vld [vmem:[%s7998_s5 + $0x230] sm:$0xff]  ;;  %v4537_v38 = vld [vmem:[%s7998_s5 + $0x278] sm:$0xff] }
 0x406   : > { %v3190_v24 = vpop.f32.mrf.mxu1  ;;  %v3402_v0 = vadd.f32 %v3401_v59, %v3271_v13  ;;  %v3063_v59 = vadd.f32 %v3062_v14, %v8279_v63  ;;  %v3015_v63 = vadd.f32 %v7284_v47, %v8320_v32  ;;  %v4543_v32 = vld [vmem:[%s7998_s5 + $0x270] sm:$0xff] }
 0x407   : > { %4362 = vmatmul.msk.f32.gmra.mxu3 %vm2352_vm3, %v4533_v55  ;;  %v7660_v19 = vadd.f32 %v3190_v24, %v3060_v60 }
 0x408   : > { %3320 = vmatmul.f32.gmra.mxu2 %v4535_v41  ;;  %v3516_v24 = vmax.f32 %v3402_v0, 0.0  ;;  %v3146_v0 = vadd.f32 %v7314_v46, %v3015_v63  ;;  %v8321_v46 = vld [vmem:[#allocation47_spill] sm:$0xff] }
 0x409   : > { %3237 = vmatmul.f32.gmra.mxu1 %v4534_v49  ;;  %v4539_v49 = vld [vmem:[%s7998_s5 + $0x250] sm:$0xff] }
 0x40a   : > { %v3407_v50 = vpop.f32.mrf.mxu3  ;;  %v3065_v22 = vpop.f32.mrf.mxu0 }
 0x40b   : > { %v3273_v60 = vpop.f32.mrf.mxu2 }
 0x40c   : > { %v3274_v33 = vadd.f32 %v3273_v60, %v3143_v35 }
 0x40d   : > { %3112 = vmatmul.f32.gmra.mxu0 %v4536_v43 }
 0x40e   : > { %v3193_v13 = vpop.f32.mrf.mxu1  ;;  %v3405_v21 = vadd.f32 %v3404_v17, %v3274_v33  ;;  %v3820_v17 = vmul.f32 %v6821_v45, %v3516_v24  ;;  %v4542_v24 = vld [vmem:[%s7998_s5 + $0x468] sm:$0xff] }
 0x40f   : > { %4363 = vmatmul.msk.f32.gmra.mxu3 %vm2352_vm3, %v4537_v38  ;;  %v7679_v55 = vadd.f32 %v3193_v13, %v3063_v59  ;;  %v3066_v59 = vadd.f32 %v3065_v22, %v8282_v20  ;;  %v4540_v13 = vld [vmem:[%s7998_s5 + $0x480] sm:$0xff]  ;;  %v3018_v20 = vadd.f32 %v7307_v34, %v8321_v46 }
 0x410   : > { %v3518_v14 = vmax.f32 %v3405_v21, 0.0  ;;  %3323 = vmatmul.f32.gmra.mxu2 %v4539_v49  ;;  %v4541_v21 = vld [vmem:[%s7998_s5 + $0x298] sm:$0xff]  ;;  %v8322_v49 = vld [vmem:[#allocation35_spill] sm:$0xff] }
 0x411   : > { %3240 = vmatmul.f32.gmra.mxu1 %v4538_v56  ;;  %v3149_v56 = vadd.f32 %v7337_v18, %v3018_v20  ;;  %v8323_v20 = vld [vmem:[#allocation9_spill] sm:$0xff] }
 0x412   : > { %v3410_v41 = vpop.f32.mrf.mxu3  ;;  %v3068_v35 = vpop.f32.mrf.mxu0  ;;  %v3822_v60 = vmul.f32 %v6817_v27, %v3518_v14 }
 0x413   : > { %v3276_v47 = vpop.f32.mrf.mxu2  ;;  %v3069_v34 = vadd.f32 %v3068_v35, %v8285_v29  ;;  %v3021_v29 = vadd.f32 %v7330_v26, %v6505_v5 }
 0x414   : > { %v3939_v33 = vadd.f32 %v3822_v60, %v3820_v17  ;;  %v3277_v43 = vadd.f32 %v3276_v47, %v3146_v0  ;;  %v4544_v47 = vld [vmem:[%s7998_s5 + $0x4a0] sm:$0xf] }
 0x415   : > { %3115 = vmatmul.f32.gmra.mxu0 %v4540_v13  ;;  %v3152_v46 = vadd.f32 %v7360_v25, %v3021_v29  ;;  %v3024_v25 = vadd.f32 %v7353_v62, %v6517_v39 }
 0x416   : > { %v3196_v38 = vpop.f32.mrf.mxu1  ;;  %v3408_v27 = vadd.f32 %v3407_v50, %v3277_v43  ;;  %v4545_v43 = vld [vmem:[%s7998_s5 + $0x2b8] sm:$0xff] }
 0x417   : > { %4364 = vmatmul.msk.f32.gmra.mxu3 %vm2352_vm3, %v4541_v21  ;;  %v7700_v45 = vadd.f32 %v3196_v38, %v3066_v59  ;;  %v4547_v38 = vld [vmem:[%s7998_s5 + $0x290] sm:$0xff] }
 0x418   : > { %v3520_v22 = vmax.f32 %v3408_v27, 0.0  ;;  %3326 = vmatmul.f32.gmra.mxu2 %v4543_v32 }
 0x419   : > { %3243 = vmatmul.f32.gmra.mxu1 %v4542_v24 }
 0x41a   : > { %v3413_v63 = vpop.f32.mrf.mxu3  ;;  %v3071_v14 = vpop.f32.mrf.mxu0  ;;  %v3824_v50 = vmul.f32 %v8322_v49, %v3520_v22 }
 0x41b   : > { %v3279_v0 = vpop.f32.mrf.mxu2  ;;  %v3072_v5 = vadd.f32 %v3071_v14, %v8287_v36  ;;  %v4549_v36 = vld [vmem:[%s7998_s5 + $0x4a8] sm:$0xf]  ;;  %v4550_v14 = vld [vmem:[%s7998_s5 + $0x2b0] sm:$0xff] }
 0x41c   : > { %v3940_v17 = vadd.f32 %v3939_v33, %v3824_v50  ;;  %v3280_v60 = vadd.f32 %v3279_v0, %v3149_v56  ;;  %v4546_v33 = vld [vmem:[%s7998_s5 + $0x488] sm:$0xff]  ;;  %v4548_v56 = vld [vmem:[%s7998_s5 + $0x2d8] sm:$0xff] }
 0x41d   : > { %3118 = vmatmul.f32.gmra.mxu0 %v4544_v47 }
 0x41e   : > { %v3199_v59 = vpop.f32.mrf.mxu1  ;;  %v3411_v13 = vadd.f32 %v3410_v41, %v3280_v60 }
 0x41f   : > { %4365 = vmatmul.msk.f32.gmra.mxu3 %vm2352_vm3, %v4545_v43  ;;  %v7720_v18 = vadd.f32 %v3199_v59, %v3069_v34 }
 0x420   : > { %v3522_v35 = vmax.f32 %v3411_v13, 0.0  ;;  %3329 = vmatmul.f32.gmra.mxu2 %v4547_v38  ;;  %v4551_v13 = vld [vmem:[%s7998_s5 + $0x2f8] sm:$0xff] }
 0x421   : > { %3246 = vmatmul.f32.gmra.mxu1 %v4546_v33  ;;  %v8324_v33 = vld [vmem:[#allocation45_spill] sm:$0xff] }
 0x422   : > { %v3416_v21 = vpop.f32.mrf.mxu3  ;;  %v3074_v27 = vpop.f32.mrf.mxu0  ;;  %v3826_v41 = vmul.f32 %v8323_v20, %v3522_v35 }
 0x423   : > { %v3282_v22 = vpop.f32.mrf.mxu2  ;;  %v3075_v39 = vadd.f32 %v3074_v27, %v8289_v16  ;;  %v4552_v16 = vld [vmem:[%s7998_s5 + $0x2d0] sm:$0xff] }
 0x424   : > { %v3941_v26 = vadd.f32 %v3940_v17, %v3826_v41  ;;  %v3283_v24 = vadd.f32 %v3282_v22, %v3152_v46  ;;  %v3155_v17 = vadd.f32 %v7383_v57, %v3024_v25  ;;  %v3027_v57 = vadd.f32 %v7376_v2, %v8324_v33  ;;  %v8325_v46 = vld [vmem:[#allocation10_spill] sm:$0xff]  ;;  %v4553_v2 = vld [vmem:[%s7998_s5 + $0x318] sm:$0xff]  ;;  %v8327_v25 = vld [vmem:[#allocation43_spill] sm:$0xff] }
 0x425   : > { %v8326_v22 = vld [vmem:[#allocation22_spill] sm:$0xff] }
 0x426   : > { %v3202_v32 = vpop.f32.mrf.mxu1  ;;  %v3414_v50 = vadd.f32 %v3413_v63, %v3283_v24  ;;  %v3158_v27 = vadd.f32 %v7406_v51, %v3027_v57  ;;  %v3030_v51 = vadd.f32 %v7399_v53, %v8327_v25  ;;  %v4555_v53 = vld [vmem:[%s7998_s5 + $0x338] sm:$0xff]  ;;  %v8330_v57 = vld [vmem:[#allocation39_spill] sm:$0xff] }
 0x427   : > { %4366 = vmatmul.msk.f32.gmra.mxu3 %vm2352_vm3, %v4548_v56  ;;  %v7737_v49 = vadd.f32 %v3202_v32, %v3072_v5 }
 0x428   : > { %v3524_v0 = vmax.f32 %v3414_v50, 0.0  ;;  %3332 = vmatmul.f32.gmra.mxu2 %v4550_v14 }
 0x429   : > { %3249 = vmatmul.f32.gmra.mxu1 %v4549_v36  ;;  %v4554_v36 = vld [vmem:[%s7998_s5 + $0x2f0] sm:$0xff] }
 0x42a   : > { %v3419_v34 = vpop.f32.mrf.mxu3  ;;  %v3828_v60 = vmul.f32 %v6891_v15, %v3524_v0  ;;  %v3077_v63 = vpop.f32.mrf.mxu0 }
 0x42b   : > { %v3285_v47 = vpop.f32.mrf.mxu2  ;;  %v3078_v5 = vadd.f32 %v3077_v63, %v8326_v22 }
 0x42c   : > { %v3942_v62 = vadd.f32 %v3941_v26, %v3828_v60  ;;  %v3286_v59 = vadd.f32 %v3285_v47, %v3155_v17  ;;  %v3161_v17 = vadd.f32 %v7429_v6, %v3030_v51  ;;  %v8328_v60 = vld [vmem:[#allocation12_spill] sm:$0xff]  ;;  %v3033_v6 = vadd.f32 %v7422_v61, %v8330_v57 }
 0x42d   : > { %v4557_v61 = vld [vmem:[%s7998_s5 + $0x358] sm:$0xff]  ;;  %v4558_v51 = vld [vmem:[%s7998_s5 + $0x330] sm:$0xff] }
 0x42e   : > { %v3205_v43 = vpop.f32.mrf.mxu1  ;;  %v3417_v35 = vadd.f32 %v3416_v21, %v3286_v59  ;;  %v4560_v57 = vld [vmem:[%s7998_s5 + $0x350] sm:$0xff] }
 0x42f   : > { %4367 = vmatmul.msk.f32.gmra.mxu3 %vm2352_vm3, %v4551_v13  ;;  %v7754_v29 = vadd.f32 %v3205_v43, %v3075_v39  ;;  %v8329_v39 = vld [vmem:[#allocation23_spill] sm:$0xff] }
 0x430   : > { %v3526_v15 = vmax.f32 %v3417_v35, 0.0  ;;  %3335 = vmatmul.f32.gmra.mxu2 %v4552_v16  ;;  %v4556_v16 = vld [vmem:[%s7998_s5 + $0x310] sm:$0xff] }
 0x432   : > { %v3422_v38 = vpop.f32.mrf.mxu3  ;;  %v3830_v20 = vmul.f32 %v8325_v46, %v3526_v15  ;;  %v3080_v21 = vpop.f32.mrf.mxu0  ;;  %v3164_v46 = vadd.f32 %v7452_v40, %v3033_v6 }
 0x433   : > { %v3288_v41 = vpop.f32.mrf.mxu2 }
 0x434   : > { %v3943_v26 = vadd.f32 %v3942_v62, %v3830_v20  ;;  %v3289_v24 = vadd.f32 %v3288_v41, %v3158_v27  ;;  %v3081_v62 = vadd.f32 %v3080_v21, %v8329_v39  ;;  %v8331_v20 = vld [vmem:[#allocation14_spill] sm:$0xff]  ;;  %v8335_v39 = vld [vmem:[#allocation19_spill] sm:$0xff] }
 0x436   : > { %v3208_v32 = vpop.f32.mrf.mxu1  ;;  %v3420_v50 = vadd.f32 %v3419_v34, %v3289_v24 }
 0x437   : > { %4368 = vmatmul.msk.f32.gmra.mxu3 %vm2352_vm3, %v4553_v2  ;;  %v7768_v56 = vadd.f32 %v3208_v32, %v3078_v5  ;;  %v8332_v5 = vld [vmem:[#allocation30_spill] sm:$0xff] }
 0x438   : > { %v3528_v0 = vmax.f32 %v3420_v50, 0.0  ;;  %3338 = vmatmul.f32.gmra.mxu2 %v4554_v36  ;;  %v8333_v50 = vld [vmem:[#allocation40_spill] sm:$0xff] }
 0x439   : > { %v3036_v40 = vadd.f32 %v7445_v48, %v8333_v50  ;;  %v4559_v48 = vld [vmem:[%s7998_s5 + $0x378] sm:$0xff] }
 0x43a   : > { %v3425_v14 = vpop.f32.mrf.mxu3  ;;  %v3832_v63 = vmul.f32 %v8328_v60, %v3528_v0  ;;  %v3083_v33 = vpop.f32.mrf.mxu0  ;;  %v8334_v60 = vld [vmem:[#allocation15_spill] sm:$0xff] }
 0x43b   : > { %v3291_v47 = vpop.f32.mrf.mxu2 }
 0x43c   : > { %v3944_v59 = vadd.f32 %v3943_v26, %v3832_v63  ;;  %v3292_v43 = vadd.f32 %v3291_v47, %v3161_v17  ;;  %v3084_v26 = vadd.f32 %v3083_v33, %v8332_v5  ;;  %v3167_v17 = vadd.f32 %v7475_v11, %v3036_v40  ;;  %v8338_v5 = vld [vmem:[#allocation42_spill] sm:$0xff] }
 0x43e   : > { %v3211_v34 = vpop.f32.mrf.mxu1  ;;  %v3423_v35 = vadd.f32 %v3422_v38, %v3292_v43 }
 0x43f   : > { %4369 = vmatmul.msk.f32.gmra.mxu3 %vm2352_vm3, %v4555_v53  ;;  %v7782_v13 = vadd.f32 %v3211_v34, %v3081_v62 }
 0x440   : > { %v3530_v15 = vmax.f32 %v3423_v35, 0.0  ;;  %3341 = vmatmul.f32.gmra.mxu2 %v4556_v16  ;;  %v8336_v35 = vld [vmem:[#allocation37_spill] sm:$0xff]  ;;  %v8337_v16 = vld [vmem:[#allocation16_spill] sm:$0xff] }
 0x441   : > { %v3039_v11 = vadd.f32 %v7468_v23, %v8336_v35 }
 0x442   : > { %v3428_v27 = vpop.f32.mrf.mxu3  ;;  %v3834_v41 = vmul.f32 %v8331_v20, %v3530_v15  ;;  %v3086_v36 = vpop.f32.mrf.mxu0 }
 0x443   : > { %v3294_v22 = vpop.f32.mrf.mxu2  ;;  %v3087_v62 = vadd.f32 %v3086_v36, %v8335_v39  ;;  %v3170_v15 = vadd.f32 %v7498_v3, %v3039_v11  ;;  %v4562_v3 = vld [vmem:[%s7998_s5 + $0x370] sm:$0xff] }
 0x444   : > { %v3945_v24 = vadd.f32 %v3944_v59, %v3834_v41  ;;  %v3295_v38 = vadd.f32 %v3294_v22, %v3164_v46 }
 0x446   : > { %v3214_v21 = vpop.f32.mrf.mxu1  ;;  %v3426_v2 = vadd.f32 %v3425_v14, %v3295_v38 }
 0x447   : > { %4370 = vmatmul.msk.f32.gmra.mxu3 %vm2352_vm3, %v4557_v61  ;;  %v7796_v32 = vadd.f32 %v3214_v21, %v3084_v26  ;;  %v3042_v26 = vadd.f32 %v7491_v12, %v8338_v5  ;;  %v8339_v61 = vld [vmem:[#allocation49_spill] sm:$0xff] }
 0x448   : > { %v3532_v25 = vmax.f32 %v3426_v2, 0.0  ;;  %3344 = vmatmul.f32.gmra.mxu2 %v4558_v51  ;;  %v4563_v51 = vld [vmem:[%s7998_s5 + $0x3b8] sm:$0xff] }
 0x449   : > { %v3173_v21 = vadd.f32 %v7521_v54, %v3042_v26  ;;  %v4564_v54 = vld [vmem:[%s7998_s5 + $0x390] sm:$0xff] }
 0x44a   : > { %v3431_v0 = vpop.f32.mrf.mxu3  ;;  %v3836_v63 = vmul.f32 %v8334_v60, %v3532_v25 }
 0x44b   : > { %v3297_v47 = vpop.f32.mrf.mxu2 }
 0x44c   : > { %v3946_v59 = vadd.f32 %v3945_v24, %v3836_v63  ;;  %v3298_v14 = vadd.f32 %v3297_v47, %v3167_v17  ;;  %v8341_v47 = vld [vmem:[#allocation50_spill] sm:$0xff] }
 0x44e   : > { %v3217_v43 = vpop.f32.mrf.mxu1  ;;  %v3429_v53 = vadd.f32 %v3428_v27, %v3298_v14  ;;  %v4561_v27 = vld [vmem:[%s7998_s5 + $0x398] sm:$0xff] }
 0x44f   : > { %4371 = vmatmul.msk.f32.gmra.mxu3 %vm2352_vm3, %v4559_v48  ;;  %v7810_v34 = vadd.f32 %v3217_v43, %v3087_v62  ;;  %v4565_v43 = vld [vmem:[%s7998_s5 + $0x3d8] sm:$0xff]  ;;  %v8342_v48 = vld [vmem:[#allocation7_spill] sm:$0xff] }
 0x450   : > { %v3534_v33 = vmax.f32 %v3429_v53, 0.0  ;;  %3347 = vmatmul.f32.gmra.mxu2 %v4560_v57  ;;  %v3048_v53 = vadd.f32 %v7537_v44, %v8342_v48  ;;  %v8343_v57 = vld [vmem:[#allocation51_spill] sm:$0xff] }
 0x451   : > { %v8347_v48 = vld [vmem:[#allocation11_spill] sm:$0xff] }
 0x452   : > { %v3434_v6 = vpop.f32.mrf.mxu3  ;;  %v3838_v46 = vmul.f32 %v8337_v16, %v3534_v33  ;;  %v3179_v33 = vadd.f32 %v7565_v52, %v3048_v53  ;;  %v8344_v52 = vld [vmem:[#allocation52_spill] sm:$0xff] }
 0x453   : > { %v3300_v20 = vpop.f32.mrf.mxu2 }
 0x454   : > { %v3947_v41 = vadd.f32 %v3946_v59, %v3838_v46  ;;  %v3301_v22 = vadd.f32 %v3300_v20, %v3170_v15  ;;  %v4567_v20 = vld [vmem:[%s7998_s5 + $0x3f8] sm:$0xff] }
 0x456   : > { %v3432_v23 = vadd.f32 %v3431_v0, %v3301_v22  ;;  %v8340_v0 = vld [vmem:[#allocation36_spill] sm:$0xff] }
 0x457   : > { %4372 = vmatmul.msk.f32.gmra.mxu3 %vm2352_vm3, %v4561_v27  ;;  %v3045_v36 = vadd.f32 %v7514_v58, %v8340_v0  ;;  %v4568_v22 = vld [vmem:[%s7998_s5 + $0x3d0] sm:$0xff] }
 0x458   : > { %v3536_v24 = vmax.f32 %v3432_v23, 0.0  ;;  %3350 = vmatmul.f32.gmra.mxu2 %v4562_v3  ;;  %v4569_v3 = vld [vmem:[%s7998_s5 + $0x418] sm:$0xff] }
 0x459   : > { %v3176_v63 = vadd.f32 %v7544_v28, %v3045_v36  ;;  %v4566_v28 = vld [vmem:[%s7998_s5 + $0x3b0] sm:$0xff] }
 0x45a   : > { %v3437_v38 = vpop.f32.mrf.mxu3  ;;  %v3840_v2 = vmul.f32 %v8339_v61, %v3536_v24  ;;  %v4570_v61 = vld [vmem:[%s7998_s5 + $0x3f0] sm:$0xff] }
 0x45b   : > { %v3303_v50 = vpop.f32.mrf.mxu2 }
 0x45c   : > { %v3948_v40 = vadd.f32 %v3947_v41, %v3840_v2  ;;  %v3304_v25 = vadd.f32 %v3303_v50, %v3173_v21  ;;  %v8345_v50 = vld [vmem:[#allocation53_spill] sm:$0xff] }
 0x45e   : > { %v3435_v12 = vadd.f32 %v3434_v6, %v3304_v25 }
 0x45f   : > { %4373 = vmatmul.msk.f32.gmra.mxu3 %vm2352_vm3, %v4563_v51 }
 0x460   : > { %v3538_v17 = vmax.f32 %v3435_v12, 0.0  ;;  %3353 = vmatmul.f32.gmra.mxu2 %v4564_v54  ;;  %v4571_v12 = vld [vmem:[%s7998_s5 + $0x438] sm:$0xff] }
 0x462   : > { %v3440_v60 = vpop.f32.mrf.mxu3  ;;  %v3842_v39 = vmul.f32 %v8341_v47, %v3538_v17  ;;  %v4572_v17 = vld [vmem:[%s7998_s5 + $0x410] sm:$0xff] }
 0x463   : > { %v3306_v62 = vpop.f32.mrf.mxu2 }
 0x464   : > { %v3949_v59 = vadd.f32 %v3948_v40, %v3842_v39  ;;  %v3307_v14 = vadd.f32 %v3306_v62, %v3176_v63  ;;  %v4573_v62 = vld [vmem:[%s7998_s5 + $0x458] sm:$0xff] }
 0x466   : > { %v3438_v58 = vadd.f32 %v3437_v38, %v3307_v14 }
 0x467   : > { %4374 = vmatmul.msk.f32.gmra.mxu3 %vm2352_vm3, %v4565_v43  ;;  %v4574_v43 = vld [vmem:[%s7998_s5 + $0x430] sm:$0xff] }
 0x468   : > { %v3540_v35 = vmax.f32 %v3438_v58, 0.0  ;;  %3356 = vmatmul.f32.gmra.mxu2 %v4566_v28 }
 0x46a   : > { %v3443_v11 = vpop.f32.mrf.mxu3  ;;  %v3844_v6 = vmul.f32 %v8343_v57, %v3540_v35 }
 0x46b   : > { %v3309_v15 = vpop.f32.mrf.mxu2 }
 0x46c   : > { %v3950_v16 = vadd.f32 %v3949_v59, %v3844_v6  ;;  %v3310_v46 = vadd.f32 %v3309_v15, %v3179_v33  ;;  %v4576_v6 = vld [vmem:[%s7998_s5 + $0x450] sm:$0xff] }
 0x46e   : > { %v3441_v44 = vadd.f32 %v3440_v60, %v3310_v46  ;;  %v8346_v60 = vld [vmem:[#allocation54_spill] sm:$0xff] }
 0x46f   : > { %4375 = vmatmul.msk.f32.gmra.mxu3 %vm2352_vm3, %v4567_v20 }
 0x470   : > { %v3542_v41 = vmax.f32 %v3441_v44, 0.0  ;;  %3359 = vmatmul.f32.gmra.mxu2 %v4568_v22 }
 0x472   : > { %v3446_v27 = vpop.f32.mrf.mxu3  ;;  %v3846_v23 = vmul.f32 %v8344_v52, %v3542_v41  ;;  %v4577_v41 = vld [vmem:[%s7998_s5 + $0x498] sm:$0xff]  ;;  %v4578_v52 = vld [vmem:[%s7998_s5 + $0x470] sm:$0xff] }
 0x473   : > { %v3312_v5 = vpop.f32.mrf.mxu2 }
 0x474   : > { %v3951_v26 = vadd.f32 %v3950_v16, %v3846_v23  ;;  %v3313_v24 = vadd.f32 %v3312_v5, %v7591_v30  ;;  %v8348_v16 = vld [vmem:[#allocation8_spill] sm:$0xff]  ;;  %v8349_v5 = vld [vmem:[#allocation27_spill] sm:$0xff] }
 0x476   : > { %v3444_v38 = vadd.f32 %v3443_v11, %v3313_v24  ;;  %v4575_v11 = vld [vmem:[%s7998_s5 + $0x478] sm:$0xff] }
 0x477   : > { %4376 = vmatmul.msk.f32.gmra.mxu3 %vm2352_vm3, %v4569_v3 }
 0x478   : > { %v3544_v21 = vmax.f32 %v3444_v38, 0.0  ;;  %3362 = vmatmul.f32.gmra.mxu2 %v4570_v61  ;;  %v4579_v38 = vld [vmem:[%s7998_s5 + $0x4b8] sm:$0xf] }
 0x47a   : > { %v3449_v2 = vpop.f32.mrf.mxu3  ;;  %v3848_v40 = vmul.f32 %v8345_v50, %v3544_v21 }
 0x47b   : > { %v3315_v25 = vpop.f32.mrf.mxu2 }
 0x47c   : > { %v3952_v51 = vadd.f32 %v3951_v26, %v3848_v40  ;;  %v3316_v30 = vadd.f32 %v3315_v25, %v7613_v10  ;;  %v8350_v40 = vld [vmem:[#allocation38_spill] sm:$0xff] }
 0x47e   : > { %v3447_v0 = vadd.f32 %v3446_v27, %v3316_v30 }
 0x47f   : > { %4377 = vmatmul.msk.f32.gmra.mxu3 %vm2352_vm3, %v4571_v12 }
 0x480   : > { %v3546_v36 = vmax.f32 %v3447_v0, 0.0  ;;  %3365 = vmatmul.f32.gmra.mxu2 %v4572_v17 }
 0x482   : > { %v3452_v54 = vpop.f32.mrf.mxu3  ;;  %v3850_v63 = vmul.f32 %v8346_v60, %v3546_v36  ;;  %v4581_v36 = vld [vmem:[%s7998_s5 + $0x4b0] sm:$0xf] }
 0x483   : > { %v3318_v47 = vpop.f32.mrf.mxu2 }
 0x484   : > { %v3953_v39 = vadd.f32 %v3952_v51, %v3850_v63  ;;  %v3319_v10 = vadd.f32 %v3318_v47, %v7635_v31 }
 0x486   : > { %v3450_v59 = vadd.f32 %v3449_v2, %v3319_v10  ;;  %v4580_v2 = vld [vmem:[%s7998_s5 + $0x490] sm:$0xff] }
 0x487   : > { %4378 = vmatmul.msk.f32.gmra.mxu3 %vm2352_vm3, %v4573_v62 }
 0x488   : > { %v3548_v14 = vmax.f32 %v3450_v59, 0.0  ;;  %3368 = vmatmul.f32.gmra.mxu2 %v4574_v43 }
 0x48a   : > { %v3455_v58 = vpop.f32.mrf.mxu3  ;;  %v3852_v53 = vmul.f32 %v8347_v48, %v3548_v14  ;;  %v8352_v14 = vld [vmem:[#allocation44_spill] sm:$0xff] }
 0x48b   : > { %v3321_v35 = vpop.f32.mrf.mxu2 }
 0x48c   : > { %v3954_v28 = vadd.f32 %v3953_v39, %v3852_v53  ;;  %v3322_v31 = vadd.f32 %v3321_v35, %v7660_v19 }
 0x48e   : > { %v3453_v33 = vadd.f32 %v3452_v54, %v3322_v31  ;;  %v8351_v54 = vld [vmem:[#allocation17_spill] sm:$0xff] }
 0x48f   : > { %4379 = vmatmul.msk.f32.gmra.mxu3 %vm2352_vm3, %v4575_v11  ;;  %v8353_v31 = vld [vmem:[#allocation41_spill] sm:$0xff] }
 0x490   : > { %v3550_v57 = vmax.f32 %v3453_v33, 0.0  ;;  %3371 = vmatmul.f32.gmra.mxu2 %v4576_v6 }
 0x492   : > { %v3458_v15 = vpop.f32.mrf.mxu3  ;;  %v3854_v46 = vmul.f32 %v8348_v16, %v3550_v57 }
 0x493   : > { %v3324_v20 = vpop.f32.mrf.mxu2 }
 0x494   : > { %v3955_v44 = vadd.f32 %v3954_v28, %v3854_v46  ;;  %v3325_v19 = vadd.f32 %v3324_v20, %v7679_v55  ;;  %v3089_v46 = vpop.f32.mrf.mxu0  ;;  %v8354_v20 = vld [vmem:[#allocation48_spill] sm:$0xff] }
 0x496   : > { %v3456_v22 = vadd.f32 %v3455_v58, %v3325_v19  ;;  %v3220_v19 = vpop.f32.mrf.mxu1 }
 0x497   : > { %4380 = vmatmul.msk.f32.gmra.mxu3 %vm2352_vm3, %v4577_v41 }
 0x498   : > { %v3552_v27 = vmax.f32 %v3456_v22, 0.0  ;;  %3374 = vmatmul.f32.gmra.mxu2 %v4578_v52 }
 0x49a   : > { %v3461_v23 = vpop.f32.mrf.mxu3  ;;  %v3856_v26 = vmul.f32 %v8349_v5, %v3552_v27  ;;  %v8355_v5 = vld [vmem:[#allocation55_spill] sm:$0xff] }
 0x49b   : > { %v3327_v24 = vpop.f32.mrf.mxu2 }
 0x49c   : > { %v3956_v3 = vadd.f32 %v3955_v44, %v3856_v26  ;;  %v3328_v55 = vadd.f32 %v3327_v24, %v7700_v45  ;;  %v3092_v24 = vpop.f32.mrf.mxu0 }
 0x49e   : > { %v3459_v21 = vadd.f32 %v3458_v15, %v3328_v55 }
 0x49f   : > { %4381 = vmatmul.msk.f32.gmra.mxu3 %vm2352_vm3, %v4579_v38  ;;  %v3223_v38 = vpop.f32.mrf.mxu1 }
 0x4a0   : > { %v3554_v61 = vmax.f32 %v3459_v21, 0.0  ;;  %3377 = vmatmul.f32.gmra.mxu2 %v4580_v2 }
 0x4a2   : > { %v3464_v50 = vpop.f32.mrf.mxu3  ;;  %v3858_v25 = vmul.f32 %v8350_v40, %v3554_v61 }
 0x4a3   : > { %v3330_v51 = vpop.f32.mrf.mxu2 }
 0x4a4   : > { %v3957_v30 = vadd.f32 %v3956_v3, %v3858_v25  ;;  %v3331_v45 = vadd.f32 %v3330_v51, %v7720_v18 }
 0x4a6   : > { %v3462_v12 = vadd.f32 %v3461_v23, %v3331_v45 }
 0x4a8   : > { %v3556_v0 = vmax.f32 %v3462_v12, 0.0  ;;  %3380 = vmatmul.f32.gmra.mxu2 %v4581_v36  ;;  %v3226_v12 = vpop.f32.mrf.mxu1 }
 0x4aa   : > { %v3467_v17 = vpop.f32.mrf.mxu3  ;;  %v3860_v60 = vmul.f32 %v8351_v54, %v3556_v0 }
 0x4ab   : > { %v3333_v63 = vpop.f32.mrf.mxu2 }
 0x4ac   : > { %v3958_v47 = vadd.f32 %v3957_v30, %v3860_v60  ;;  %v3334_v39 = vadd.f32 %v3333_v63, %v7737_v49  ;;  %v3095_v30 = vpop.f32.mrf.mxu0 }
 0x4ae   : > { %v3465_v10 = vadd.f32 %v3464_v50, %v3334_v39  ;;  %v8356_v50 = vld [vmem:[#allocation56_spill] sm:$0xff] }
 0x4b0   : > { %v3558_v62 = vmax.f32 %v3465_v10, 0.0  ;;  %v3229_v39 = vpop.f32.mrf.mxu1 }
 0x4b2   : > { %v3470_v59 = vpop.f32.mrf.mxu3  ;;  %v3862_v43 = vmul.f32 %v8352_v14, %v3558_v62 }
 0x4b3   : > { %v3336_v18 = vpop.f32.mrf.mxu2 }
 0x4b4   : > { %v3959_v58 = vadd.f32 %v3958_v47, %v3862_v43  ;;  %v3337_v48 = vadd.f32 %v3336_v18, %v7754_v29 }
 0x4b6   : > { %v3468_v53 = vadd.f32 %v3467_v17, %v3337_v48  ;;  %v8357_v17 = vld [vmem:[#allocation57_spill] sm:$0xff] }
 0x4b8   : > { %v3560_v35 = vmax.f32 %v3468_v53, 0.0  ;;  %v3232_v14 = vpop.f32.mrf.mxu1 }
 0x4ba   : > { %v3473_v28 = vpop.f32.mrf.mxu3  ;;  %v3864_v11 = vmul.f32 %v8353_v31, %v3560_v35 }
 0x4bb   : > { %v3339_v33 = vpop.f32.mrf.mxu2 }
 0x4bc   : > { %v3960_v57 = vadd.f32 %v3959_v58, %v3864_v11  ;;  %v3340_v6 = vadd.f32 %v3339_v33, %v7768_v56 }
 0x4be   : > { %v3471_v15 = vadd.f32 %v3470_v59, %v3340_v6 }
 0x4c0   : > { %v3562_v49 = vmax.f32 %v3471_v15, 0.0  ;;  %v3235_v48 = vpop.f32.mrf.mxu1 }
 0x4c2   : > { %v3476_v16 = vpop.f32.mrf.mxu3  ;;  %v3866_v44 = vmul.f32 %v8354_v20, %v3562_v49  ;;  %v8358_v49 = vld [vmem:[#allocation21_spill] sm:$0xff] }
 0x4c3   : > { %v3342_v41 = vpop.f32.mrf.mxu2 }
 0x4c4   : > { %v3961_v22 = vadd.f32 %v3960_v57, %v3866_v44  ;;  %v3343_v29 = vadd.f32 %v3342_v41, %v7782_v13  ;;  %v8359_v41 = vld [vmem:[#allocation28_spill] sm:$0xff] }
 0x4c6   : > { %v3474_v27 = vadd.f32 %v3473_v28, %v3343_v29 }
 0x4c8   : > { %v3564_v52 = vmax.f32 %v3474_v27, 0.0  ;;  %v3238_v31 = vpop.f32.mrf.mxu1  ;;  %v8360_v27 = vld [vmem:[#allocation18_spill] sm:$0xff] }
 0x4ca   : > { %v3479_v23 = vpop.f32.mrf.mxu3  ;;  %v3868_v26 = vmul.f32 %v8355_v5, %v3564_v52  ;;  %v3096_v52 = vadd.f32 %v3095_v30, %v8360_v27 }
 0x4cb   : > { %v3345_v3 = vpop.f32.mrf.mxu2 }
 0x4cc   : > { %v3962_v55 = vadd.f32 %v3961_v22, %v3868_v26  ;;  %v3346_v56 = vadd.f32 %v3345_v3, %v7796_v32  ;;  %v3098_v32 = vpop.f32.mrf.mxu0  ;;  %v3093_v22 = vadd.f32 %v3092_v24, %v8359_v41  ;;  %v8361_v26 = vld [vmem:[#allocation26_spill] sm:$0xff]  ;;  %v8366_v41 = vld [vmem:[#allocation20_spill] sm:$0xff] }
 0x4cd   : > { %v3099_v3 = vadd.f32 %v3098_v32, %v8361_v26 }
 0x4ce   : > { %v3477_v21 = vadd.f32 %v3476_v16, %v3346_v56  ;;  %v3090_v16 = vadd.f32 %v3089_v46, %v8358_v49  ;;  %v8365_v49 = vld [vmem:[#allocation25_spill] sm:$0xff] }
 0x4d0   : > { %v3566_v61 = vmax.f32 %v3477_v21, 0.0  ;;  %v3241_v6 = vpop.f32.mrf.mxu1  ;;  %v3221_v44 = vadd.f32 %v3220_v19, %v3090_v16 }
 0x4d2   : > { %v3482_v2 = vpop.f32.mrf.mxu3  ;;  %v3870_v40 = vmul.f32 %v8356_v50, %v3566_v61 }
 0x4d3   : > { %v3348_v25 = vpop.f32.mrf.mxu2 }
 0x4d4   : > { %v3963_v51 = vadd.f32 %v3962_v55, %v3870_v40  ;;  %v3349_v13 = vadd.f32 %v3348_v25, %v7810_v34  ;;  %v3101_v59 = vpop.f32.mrf.mxu0  ;;  %v3227_v55 = vadd.f32 %v3226_v12, %v3096_v52  ;;  %v8362_v40 = vld [vmem:[#allocation32_spill] sm:$0xff] }
 0x4d5   : > { %v3102_v25 = vadd.f32 %v3101_v59, %v8362_v40 }
 0x4d6   : > { %v3480_v45 = vadd.f32 %v3479_v23, %v3349_v13  ;;  %v3224_v23 = vadd.f32 %v3223_v38, %v3093_v22  ;;  %v8363_v13 = vld [vmem:[#allocation29_spill] sm:$0xff]  ;;  %v8364_v38 = vld [vmem:[#allocation31_spill] sm:$0xff] }
 0x4d8   : > { %v3568_v0 = vmax.f32 %v3480_v45, 0.0  ;;  %v3244_v56 = vpop.f32.mrf.mxu1  ;;  %v3233_v45 = vadd.f32 %v3232_v14, %v3102_v25  ;;  %v8367_v14 = vld [vmem:[#allocation58_spill] sm:$0xff] }
 0x4da   : > { %v3485_v36 = vpop.f32.mrf.mxu3  ;;  %v3872_v54 = vmul.f32 %v8357_v17, %v3568_v0 }
 0x4db   : > { %v3351_v60 = vpop.f32.mrf.mxu2 }
 0x4dc   : > { %v7931_v63 = vadd.f32 %v3963_v51, %v3872_v54  ;;  %v3104_v34 = vpop.f32.mrf.mxu0  ;;  %v3352_v29 = vadd.f32 %v3351_v60, %v3221_v44  ;;  %v3230_v51 = vadd.f32 %v3229_v39, %v3099_v3 }
 0x4dd   : > { %v3105_v19 = vadd.f32 %v3104_v34, %v8363_v13 }
 0x4de   : > { %v3483_v50 = vadd.f32 %v3482_v2, %v3352_v29 }
 0x4df   : > { %v3236_v60 = vadd.f32 %v3235_v48, %v3105_v19 }
 0x4e0   : > { %v3570_v30 = vmax.f32 %v3483_v50, 0.0  ;;  %v3247_v22 = vpop.f32.mrf.mxu1 }
 0x4e2   : > { %v3488_v47 = vpop.f32.mrf.mxu3 }
 0x4e3   : > { %v3354_v10 = vpop.f32.mrf.mxu2 }
 0x4e4   : > { %v3107_v28 = vpop.f32.mrf.mxu0  ;;  %v3355_v21 = vadd.f32 %v3354_v10, %v3224_v23 }
 0x4e5   : > { %v3108_v54 = vadd.f32 %v3107_v28, %v8364_v38 }
 0x4e6   : > { %v3486_v24 = vadd.f32 %v3485_v36, %v3355_v21  ;;  %v3874_v36 = vmul.f32 %v8367_v14, %v3570_v30 }
 0x4e7   : > { %v3239_v16 = vadd.f32 %v3238_v31, %v3108_v54 }
 0x4e8   : > { %v3572_v44 = vmax.f32 %v3486_v24, 0.0  ;;  %v3250_v19 = vpop.f32.mrf.mxu1  ;;  %v8372_v24 = vld [vmem:[#allocation63_spill] sm:$0xff] }
 0x4ea   : > { %v3491_v62 = vpop.f32.mrf.mxu3 }
 0x4eb   : > { %v3357_v43 = vpop.f32.mrf.mxu2 }
 0x4ec   : > { %v3110_v57 = vpop.f32.mrf.mxu0  ;;  %v3358_v46 = vadd.f32 %v3357_v43, %v3227_v55 }
 0x4ed   : > { %v3111_v10 = vadd.f32 %v3110_v57, %v8365_v49 }
 0x4ee   : > { %v3489_v32 = vadd.f32 %v3488_v47, %v3358_v46  ;;  %v8368_v47 = vld [vmem:[#allocation59_spill] sm:$0xff]  ;;  %v8371_v46 = vld [vmem:[#allocation62_spill] sm:$0xff] }
 0x4f0   : > { %v3574_v29 = vmax.f32 %v3489_v32, 0.0 }
 0x4f2   : > { %v3494_v18 = vpop.f32.mrf.mxu3 }
 0x4f3   : > { %v3360_v58 = vpop.f32.mrf.mxu2 }
 0x4f4   : > { %v3113_v5 = vpop.f32.mrf.mxu0  ;;  %v3361_v0 = vadd.f32 %v3360_v58, %v3230_v51  ;;  %v3242_v58 = vadd.f32 %v3241_v6, %v3111_v10 }
 0x4f5   : > { %v3114_v34 = vadd.f32 %v3113_v5, %v8366_v41 }
 0x4f6   : > { %v3492_v59 = vadd.f32 %v3491_v62, %v3361_v0  ;;  %v3965_v62 = vadd.f32 %v7931_v63, %v3874_v36 }
 0x4f7   : > { %v3245_v48 = vadd.f32 %v3244_v56, %v3114_v34 }
 0x4f8   : > { %v3576_v52 = vmax.f32 %v3492_v59, 0.0  ;;  %v3933_v59 = vrot.slane %v7654_v9, 4 }
 0x4fa   : > { %v3497_v53 = vpop.f32.mrf.mxu3  ;;  %v3934_v36 = vadd.f32 %v3933_v59, %v7654_v9 }
 0x4fb   : > { %v3363_v35 = vpop.f32.mrf.mxu2 }
 0x4fc   : > { %v3364_v12 = vadd.f32 %v3363_v35, %v3233_v45  ;;  %v3116_v2 = vpop.f32.mrf.mxu0  ;;  %v3876_v35 = vmul.f32 %v8368_v47, %v3572_v44 }
 0x4fd   : > { %v3117_v23 = vadd.f32 %v3116_v2, %v8316_v7 }
 0x4fe   : > { %v3495_v27 = vadd.f32 %v3494_v18, %v3364_v12  ;;  %v3966_v50 = vadd.f32 %v3965_v62, %v3876_v35  ;;  %v8370_v18 = vld [vmem:[#allocation61_spill] sm:$0xff] }
 0x4ff   : > { %v3248_v21 = vadd.f32 %v3247_v22, %v3117_v23  ;;  %v3984_v23 = vstv %s3983_s29  ;;  %s4602_s29 = scalar_lea.hbm %s8002_s9, 4 }
 0x500   : > { %v3578_v5 = vmax.f32 %v3495_v27, 0.0  ;;  %v3935_v27 = vrot.slane %v3934_v36, 2  ;;  %p4604_p4 = scmp.lt.s32.totalorder %s4602_s29, %s4598_s8 }
 0x502   : > { %v3500_v33 = vpop.f32.mrf.mxu3  ;;  %v3882_v7 = vmul.f32 %v8371_v46, %v3578_v5  ;;  %v3936_v47 = vadd.f32 %v3935_v27, %v3934_v36  ;;  %p4605_p5 = por %p4604_p4, %p4603_p3 }
 0x503   : > { %v3366_v11 = vpop.f32.mrf.mxu2 }
 0x504   : > { %v3367_v39 = vadd.f32 %v3366_v11, %v3236_v60  ;;  %v8369_v11 = vld [vmem:[#allocation60_spill] sm:$0xff]  ;;  %p4606_p7 = pnand %p4605_p5, %p4601_p2 }
 0x505   : > { %v3878_v26 = vmul.f32 %v8369_v11, %v3574_v29  ;;  %v8373_v60 = vld [vmem:[#allocation64_spill] sm:$0xff] }
 0x506   : > { %v3498_v57 = vadd.f32 %v3497_v53, %v3367_v39  ;;  %v3119_v53 = vpop.f32.mrf.mxu0 }
 0x507   : > { %v3120_v38 = vadd.f32 %v3119_v53, %v8317_v4 }
 0x508   : > { %v3580_v56 = vmax.f32 %v3498_v57, 0.0 }
 0x509   : > { %v3251_v12 = vadd.f32 %v3250_v19, %v3120_v38 }
 0x50a   : > { %v3503_v20 = vpop.f32.mrf.mxu3 }
 0x50b   : > { %v3369_v15 = vpop.f32.mrf.mxu2 }
 0x50c   : > { %v3370_v28 = vadd.f32 %v3369_v15, %v3239_v16  ;;  %v3880_v15 = vmul.f32 %v8370_v18, %v3576_v52  ;;  %v3937_v52 = vrot.slane %v3936_v47, 1 }
 0x50e   : > { %v3501_v3 = vadd.f32 %v3500_v33, %v3370_v28  ;;  %v3884_v33 = vmul.f32 %v8372_v24, %v3580_v56 }
 0x510   : > { %v3582_v13 = vmax.f32 %v3501_v3, 0.0 }
 0x512   : > { %v3506_v17 = vpop.f32.mrf.mxu3  ;;  %v3886_v32 = vmul.f32 %v8373_v60, %v3582_v13 }
 0x513   : > { %v3372_v61 = vpop.f32.mrf.mxu2 }
 0x514   : > { %v3373_v31 = vadd.f32 %v3372_v61, %v3242_v58  ;;  %v3967_v61 = vadd.f32 %v3966_v50, %v3878_v26 }
 0x516   : > { %v3504_v40 = vadd.f32 %v3503_v20, %v3373_v31  ;;  %v3968_v45 = vadd.f32 %v3967_v61, %v3880_v15  ;;  %v3993_v31 = vlaneseq }
 0x518   : > { %v3584_v0 = vmax.f32 %v3504_v40, 0.0  ;;  %v3969_v54 = vadd.f32 %v3968_v45, %v3882_v7  ;;  %vm3995_vm5 = vcmp.lt.s32.totalorder %v3993_v31, 256 }
 0x51a   : > { %v3509_v6 = vpop.f32.mrf.mxu3  ;;  %v3970_v49 = vadd.f32 %v3969_v54, %v3884_v33  ;;  %v3888_v10 = vmul.f32 %v7579_v37, %v3584_v0 }
 0x51b   : > { %v3375_v43 = vpop.f32.mrf.mxu2 }
 0x51c   : > { %v3376_v55 = vadd.f32 %v3375_v43, %v3245_v48  ;;  %v3971_v39 = vadd.f32 %v3970_v49, %v3886_v32 }
 0x51e   : > { %v3507_v63 = vadd.f32 %v3506_v17, %v3376_v55  ;;  %v3972_v34 = vadd.f32 %v3971_v39, %v3888_v10 }
 0x520   : > { %v3586_v20 = vmax.f32 %v3507_v63, 0.0 }
 0x522   : > { %v3512_v44 = vpop.f32.mrf.mxu3  ;;  %v3890_v43 = vmul.f32 %v7601_v42, %v3586_v20 }
 0x523   : > { %v3378_v25 = vpop.f32.mrf.mxu2 }
 0x524   : > { %v3379_v51 = vadd.f32 %v3378_v25, %v3248_v21  ;;  %v3973_v58 = vadd.f32 %v3972_v34, %v3890_v43 }
 0x526   : > { %v3510_v30 = vadd.f32 %v3509_v6, %v3379_v51 }
 0x528   : > { %v3588_v16 = vmax.f32 %v3510_v30, 0.0 }
 0x52a   : > { %v3892_v4 = vmul.f32 %v7623_v1, %v3588_v16 }
 0x52b   : > { %v3381_v2 = vpop.f32.mrf.mxu2 }
 0x52c   : > { %v3382_v17 = vadd.f32 %v3381_v2, %v3251_v12  ;;  %v3974_v22 = vadd.f32 %v3973_v58, %v3892_v4 }
 0x52e   : > { %v3513_v41 = vadd.f32 %v3512_v44, %v3382_v17 }
 0x530   : > { %v3590_v14 = vmax.f32 %v3513_v41, 0.0 }
 0x532   : > { %v3894_v37 = vmul.f32 %v7645_v8, %v3590_v14  ;;  %v3938_v8 = vadd.f32 %v3937_v52, %v3936_v47 }
 0x534   : > { %v3975_v29 = vsel %vm642_vm0, %v3894_v37, 0.0  ;;  %v3985_v11 = vadd.f32 %v3984_v23, %v3938_v8 }
 0x535   : > { %v3976_v28 = vadd.f32 %v3975_v29, %v3974_v22 }
 0x537   : > { %v3977_v48 = vrot.slane %v3976_v28, 4 }
 0x539   : > { %v3978_v42 = vadd.f32 %v3977_v48, %v3976_v28 }
 0x53b   : > { %v3979_v35 = vrot.slane %v3978_v42, 2 }
 0x53d   : > { %v3980_v1 = vadd.f32 %v3979_v35, %v3978_v42 }
 0x53f   : > { %v3981_v57 = vrot.slane %v3980_v1, 1 }
 0x541   : > { %v3982_v9 = vadd.f32 %v3981_v57, %v3980_v1 }
 0x543   : > { %v3986_v62 = vadd.f32 %v3984_v23, %v3982_v9 }
 0x545   : > { %v3989_v26 = vrot.slane %v3986_v62, 7 }
 0x547   : > { %v3991_v5 = vsel %vm3990_vm4, %v3985_v11, %v3989_v26 }
 0x548   : > { %3997 = vst.msk [vmem:[%s373_s18] sm:$0x3] %vm3995_vm5, %v3991_v5 }
 0x549   : > { %4609 = shalt.err (!%p4606_p7)
}
 0x54a   : > { %4387 = dma.vmem_to_hbm [thread:$0]  (%p4738_p6), %s4012_s23, 32, %s4014_s24, %s3999_s25  }
 0x54b PF: > { %s4025_s17 = sand.u32 1, %s4632_s11   ;;  %p4390_p10 = pnand %p4093_p9, %p4742_p8 }
 0x54c   : > { %s4026_s10 = scalar_lea.sflag [#allocation5], %s4025_s17 }
 0x54d   : > { %p4391_p11 = pneg %p4390_p10 }
 0x54f   : > { %4627 = dma.done.wait (%p4391_p11), %s4026_s10, 32  }
 0x550   : > { %4629 = vsyncadd (%p4391_p11), %s4026_s10, 4294967264  ;;  %p20_p12 = scmp.ge.s32.totalorder %s4723_s16, 4   ;;  %s8374_s11 = smov %s4636_s12 }
 0x551   : > { %s8375_s12 = smov %s4640_s13  ;;  %s8376_s13 = smov %s4736_s19 }
 0x552   : > { %s8377_s14 = smov %s4723_s16  ;;  %22 = sbr.rel (!%p20_p12) target bundleno = 5 (0x5), region = 122 }
 0x557   :  { %4032 = vsyncpa [#allocation5], 1 }
 0x558   :  { %4034 = vsyncpa [#allocation5 + $0x1], 1 }

</bundles_post_ra>
